<compile_context>
chip_gen: v7x
topology: tpu7x:2x2x1
jax: 0.10.0
libtpu: 0.0.40
codegen_flags: <defaults>
</compile_context>

<pallas_src>
import jax
import jax.numpy as jnp
import numpy as np
from jax import lax
from jax.experimental import pallas as pl
from jax.experimental.pallas import tpu as pltpu


_COMPUTE_DTYPE = jnp.bfloat16  # MXU operand / activation storage dtype


# ----------------------------------------------------------------------------
# small helpers
# ----------------------------------------------------------------------------
def _pick_tile(m, cap=1024):
    """Largest row-tile <= cap that evenly divides m (multiple of 8 if tiling)."""
    if m <= cap:
        return m
    for t in range(cap - cap % 8, 7, -8):
        if m % t == 0:
            return t
    return m  # fall back to a single block


def _expand_up_weight(w_up, b_up, W):
    """ConvTranspose3d(1,2,2)/s(1,2,2) as one lane-dense matmul weight.

    w_up: (in_c, out_c, 1, 2, 2) (PyTorch layout).
    Returns wmat: (W*in_c, 2*W2*out_c) with columns ordered
    (ih, w2 = 2w+iw, co)  -> matmul output row = two consecutive output rows.
    """
    in_c, out_c = w_up.shape[0], w_up.shape[1]
    core = jnp.transpose(w_up[:, :, 0], (0, 2, 3, 1))          # (in_c, ih, iw, out_c)
    eye = jnp.eye(W, dtype=w_up.dtype)
    wmat = jnp.einsum("wv,cijo->wcivjo", eye, core)            # (W,in_c,2,W,2,out_c)
    wmat = wmat.reshape(W * in_c, 2 * W * 2 * out_c)
    bvec = jnp.tile(b_up, 2 * W * 2).reshape(1, 2 * W * 2 * out_c).astype(jnp.float32)
    return wmat, bvec


def _expand_conv_weight(w3, W2):
    """Fold the kw taps + W zero-padding of a 3x3x3 conv into the weight.

    w3: (3, 3, 3, Cin, Cout) DHWIO  ->  (3, 3, W2*Cin, W2*Cout) block-banded:
      Wexp[kd, kh, u*Cin+ci, w*Cout+co] = w3[kd, kh, kw, ci, co]  with u = w+kw-1.
    """
    kD, kH, kW, Cin, Cout = w3.shape
    exp = jnp.zeros((kD, kH, W2, Cin, W2, Cout), w3.dtype)
    for kw in range(kW):
        eye = jnp.eye(W2, k=1 - kw, dtype=w3.dtype)            # [u, w]: u = w+kw-1
        exp = exp + jnp.einsum("uv,dhio->dhuivo", eye, w3[:, :, kw])
    return exp.reshape(kD, kH, W2 * Cin, W2 * Cout)


def _bn_scale_shift(part_sum, part_sq, gamma, beta, count, W2, C, eps):
    """Training-mode BN scale/shift from fused partial sums (biased variance)."""
    ch_sum = part_sum[:, :, 0, :].sum(axis=(0, 1)).reshape(W2, C).sum(axis=0)
    ch_sq = part_sq[:, :, 0, :].sum(axis=(0, 1)).reshape(W2, C).sum(axis=0)
    mean = ch_sum / count
    var = jnp.maximum(ch_sq / count - mean * mean, 0.0)        # clamp fp cancellation
    scale = gamma / jnp.sqrt(var + eps)
    shift = beta - mean * scale
    # broadcast to the lane-dense (w-major, channel-minor) layout
    return (jnp.tile(scale, W2).reshape(1, W2 * C),
            jnp.tile(shift, W2).reshape(1, W2 * C))


# ----------------------------------------------------------------------------
# Kernel 1: upsample matmul (ConvTranspose3d(1,2,2)/s(1,2,2) + pixel shuffle)
# ----------------------------------------------------------------------------
def _up_kernel(x_ref, w_ref, b_ref, o_ref):
    o_ref[...] = (
        jnp.dot(x_ref[...], w_ref[...], preferred_element_type=jnp.float32)
        + b_ref[...]
    ).astype(o_ref.dtype)


def upsample_matmul(x2d, wmat, bvec):
    M, K = x2d.shape
    Nc = wmat.shape[1]
    tm = _pick_tile(M)
    return pl.pallas_call(
        _up_kernel,
        out_shape=jax.ShapeDtypeStruct((M, Nc), x2d.dtype),
        grid=(M // tm,),
        in_specs=[pl.BlockSpec((tm, K), lambda i: (i, 0)),
                  pl.BlockSpec((K, Nc), lambda i: (0, 0)),
                  pl.BlockSpec((1, Nc), lambda i: (0, 0))],
        out_specs=pl.BlockSpec((tm, Nc), lambda i: (i, 0)),
        compiler_params=pltpu.CompilerParams(dimension_semantics=("parallel",)),
    )(x2d, wmat, bvec)


# ----------------------------------------------------------------------------
# Kernels 2/3: fused 3x3x3 conv (+ batch stats, + optional BN/ReLU prologue)
# ----------------------------------------------------------------------------
def _accum_taps(acc_ref, plane, w_ref, kd):
    """acc[h] += sum_kh plane[h+kh-1] @ w[kd, kh]   (zero-padded along h)."""
    H = acc_ref.shape[0]
    acc_ref[1:, :] += jnp.dot(plane[:H - 1, :], w_ref[kd, 0],
                              preferred_element_type=jnp.float32)
    acc_ref[...] += jnp.dot(plane, w_ref[kd, 1],
                            preferred_element_type=jnp.float32)
    acc_ref[:H - 1, :] += jnp.dot(plane[1:, :], w_ref[kd, 2],
                                  preferred_element_type=jnp.float32)


def _conv_epilogue(acc_ref, z_ref, sum_ref, sq_ref):
    acc = acc_ref[...]
    z_ref[...] = acc.astype(z_ref.dtype)
    sum_ref[...] = jnp.broadcast_to(jnp.sum(acc, axis=0, keepdims=True),
                                    sum_ref.shape)
    sq_ref[...] = jnp.broadcast_to(jnp.sum(acc * acc, axis=0, keepdims=True),
                                   sq_ref.shape)


def _conv1_kernel(skip_ref, y_ref, ws_ref, wy_ref, z_ref, sum_ref, sq_ref,
                  acc_ref):
    # skip_ref/y_ref: (D, H2, W2*C) bf16 (full-D resident, lane-dense)
    # ws_ref/wy_ref : (3, 3, W2*C, W2*Cout) bf16 w-folded weights
    # z_ref: (H2, W2*Cout) bf16   sum/sq_ref: (8, W2*Cout) f32 partial stats
    d = pl.program_id(1)
    D = skip_ref.shape[0]
    acc_ref[...] = jnp.zeros_like(acc_ref)
    for kd in range(3):
        pd = d + kd - 1
        pdc = jnp.clip(pd, 0, D - 1)
        valid = ((pd >= 0) & (pd < D)).astype(jnp.float32)
        vb = valid.astype(skip_ref.dtype)
        _accum_taps(acc_ref, skip_ref[pdc] * vb, ws_ref, kd)   # concat: skip part
        _accum_taps(acc_ref, y_ref[pdc] * vb, wy_ref, kd)      # concat: up(x) part
    _conv_epilogue(acc_ref, z_ref, sum_ref, sq_ref)


def _conv2_kernel(z1_ref, w_ref, scale_ref, shift_ref, z_ref, sum_ref, sq_ref,
                  acc_ref):
    # BN1 + ReLU1 applied on the fly to each needed input plane (a1 never
    # hits HBM); D zero-padding applied AFTER the activation (matches PyTorch).
    d = pl.program_id(1)
    D = z1_ref.shape[0]
    acc_ref[...] = jnp.zeros_like(acc_ref)
    scale = scale_ref[...]          # (1, W2*C) f32, lane-dense broadcast of BN scale
    shift = shift_ref[...]
    for kd in range(3):
        pd = d + kd - 1
        pdc = jnp.clip(pd, 0, D - 1)
        valid = ((pd >= 0) & (pd < D)).astype(jnp.float32)
        a = jnp.maximum(z1_ref[pdc].astype(jnp.float32) * scale + shift, 0.0)
        _accum_taps(acc_ref, (a * valid).astype(w_ref.dtype), w_ref, kd)
    _conv_epilogue(acc_ref, z_ref, sum_ref, sq_ref)


def _conv_call(kernel, inputs, in_specs, N, D, H2, Nout, out_dtype):
    return pl.pallas_call(
        kernel,
        out_shape=(jax.ShapeDtypeStruct((N, D, H2, Nout), out_dtype),
                   jax.ShapeDtypeStruct((N, D, 8, Nout), jnp.float32),
                   jax.ShapeDtypeStruct((N, D, 8, Nout), jnp.float32)),
        grid=(N, D),
        in_specs=in_specs,
        out_specs=(
            pl.BlockSpec((None, None, H2, Nout), lambda n, d: (n, d, 0, 0)),
            pl.BlockSpec((None, None, 8, Nout), lambda n, d: (n, d, 0, 0)),
            pl.BlockSpec((None, None, 8, Nout), lambda n, d: (n, d, 0, 0)),
        ),
        scratch_shapes=[pltpu.VMEM((H2, Nout), jnp.float32)],
        compiler_params=pltpu.CompilerParams(
            dimension_semantics=("parallel", "parallel")),
    )(*inputs)


def conv1_fused(skip_d, y_d, wexp_skip, wexp_y):
    N, D, H2, Ls = skip_d.shape
    Ly = y_d.shape[3]
    Nout = wexp_skip.shape[3]
    in_specs = [
        pl.BlockSpec((None, D, H2, Ls), lambda n, d: (n, 0, 0, 0)),
        pl.BlockSpec((None, D, H2, Ly), lambda n, d: (n, 0, 0, 0)),
        pl.BlockSpec((3, 3, Ls, Nout), lambda n, d: (0, 0, 0, 0)),
        pl.BlockSpec((3, 3, Ly, Nout), lambda n, d: (0, 0, 0, 0)),
    ]
    return _conv_call(_conv1_kernel, (skip_d, y_d, wexp_skip, wexp_y),
                      in_specs, N, D, H2, Nout, skip_d.dtype)


def conv2_fused(z1, wexp, scale1, shift1):
    N, D, H2, L = z1.shape
    Nout = wexp.shape[3]
    in_specs = [
        pl.BlockSpec((None, D, H2, L), lambda n, d: (n, 0, 0, 0)),
        pl.BlockSpec((3, 3, L, Nout), lambda n, d: (0, 0, 0, 0)),
        pl.BlockSpec((1, L), lambda n, d: (0, 0)),
        pl.BlockSpec((1, L), lambda n, d: (0, 0)),
    ]
    return _conv_call(_conv2_kernel, (z1, wexp, scale1, shift1),
                      in_specs, N, D, H2, Nout, z1.dtype)


# ----------------------------------------------------------------------------
# Kernel 4: final fused BN2 + ReLU2 (lane-dense elementwise)
# ----------------------------------------------------------------------------
def _bn_relu_kernel(z_ref, scale_ref, shift_ref, o_ref):
    o_ref[...] = jnp.maximum(
        z_ref[...].astype(jnp.float32) * scale_ref[...] + shift_ref[...], 0.0)


def bn_relu(z2d, scale, shift):
    M, L = z2d.shape
    tm = _pick_tile(M)
    return pl.pallas_call(
        _bn_relu_kernel,
        out_shape=jax.ShapeDtypeStruct((M, L), jnp.float32),
        grid=(M // tm,),
        in_specs=[pl.BlockSpec((tm, L), lambda i: (i, 0)),
                  pl.BlockSpec((1, L), lambda i: (0, 0)),
                  pl.BlockSpec((1, L), lambda i: (0, 0))],
        out_specs=pl.BlockSpec((tm, L), lambda i: (i, 0)),
        compiler_params=pltpu.CompilerParams(dimension_semantics=("parallel",)),
    )(z2d, scale, shift)


# ----------------------------------------------------------------------------
# Full DecoderBlock3D forward
# ----------------------------------------------------------------------------
def decoder_block3d_forward(x, skip, params, eps=1e-5):
    # x: (N, in_c, D, H, W), skip: (N, skip_c, D, 2H, 2W)  -- NCDHW like PyTorch
    N, in_c, D, H, W = x.shape
    _, skip_c, Ds, H2, W2 = skip.shape
    out_c = params["w_up"].shape[1]
    # TODO(synk): F.interpolate trilinear fallback (mismatched skip size) not implemented.
    assert (Ds, H2, W2) == (D, 2 * H, 2 * W)

    cdt = _COMPUTE_DTYPE

    # NCDHW -> lane-dense channels-minor layouts
    x_d = jnp.transpose(x, (0, 2, 3, 4, 1)).reshape(N * D * H, W * in_c).astype(cdt)
    skip_d = jnp.transpose(skip, (0, 2, 3, 4, 1)).reshape(N, D, H2, W2 * skip_c).astype(cdt)

    # expanded weights (tiny, built once in JAX)
    w_up_mat, b_up_vec = _expand_up_weight(params["w_up"], params["b_up"], W)
    wexp_skip = _expand_conv_weight(params["w1"][:, :, :, :skip_c, :], W2).astype(cdt)
    wexp_y = _expand_conv_weight(params["w1"][:, :, :, skip_c:, :], W2).astype(cdt)
    wexp_2 = _expand_conv_weight(params["w2"], W2).astype(cdt)
    # NOTE: conv biases b1/b2 are intentionally unused -- training-mode BatchNorm
    # subtracts the batch mean, which cancels a per-channel constant exactly.

    # 1) ConvTranspose3d(1,2,2)/s(1,2,2): one lane-dense matmul (pixel shuffle
    #    folded into the expanded weight's column ordering).
    y2d = upsample_matmul(x_d, w_up_mat.astype(cdt), b_up_vec)
    y_d = y2d.reshape(N, D, H2, W2 * out_c)

    # 2) Conv3d #1 (concat folded via split weights) + fused batch stats
    z1, s1, q1 = conv1_fused(skip_d, y_d, wexp_skip, wexp_y)
    scale1, shift1 = _bn_scale_shift(s1, q1, params["gamma1"], params["beta1"],
                                     N * D * H2 * W2, W2, out_c, eps)

    # 3) Conv3d #2 with BN1+ReLU1 fused into its prologue, + fused batch stats
    z2, s2, q2 = conv2_fused(z1, wexp_2, scale1, shift1)
    scale2, shift2 = _bn_scale_shift(s2, q2, params["gamma2"], params["beta2"],
                                     N * D * H2 * W2, W2, out_c, eps)

    # 4) final BN2 + ReLU2 (lane-dense elementwise)
    out2d = bn_relu(z2.reshape(N * D * H2, W2 * out_c), scale2, shift2)
    out = out2d.reshape(N, D, H2, W2, out_c)
    return jnp.transpose(out, (0, 4, 1, 2, 3))      # back to NCDHW


# ----------------------------------------------------------------------------
# Pure-JAX f32 reference (independent lowering) for the correctness check
# ----------------------------------------------------------------------------
def ref_forward(x, skip, params):
    eps = 1e-5
    x = jnp.transpose(x, (0, 2, 3, 4, 1)).astype(jnp.float32)
    skip = jnp.transpose(skip, (0, 2, 3, 4, 1)).astype(jnp.float32)
    N, D, H, W, Cin = x.shape
    w_up = params["w_up"][:, :, 0]              # (ci, oc, ih, iw)
    out_c = w_up.shape[1]
    up = jnp.einsum("ndhwc,coij->ndhiwjo", x, w_up)
    up = up.reshape(N, D, 2 * H, 2 * W, out_c) + params["b_up"]
    xc = jnp.concatenate([skip, up], axis=-1)

    def conv_bn_relu(z, w, b, gamma, beta):
        y = lax.conv_general_dilated(
            z, w, (1, 1, 1), [(1, 1)] * 3,
            dimension_numbers=("NDHWC", "DHWIO", "NDHWC")) + b
        mean = jnp.mean(y, axis=(0, 1, 2, 3))
        var = jnp.mean((y - mean) ** 2, axis=(0, 1, 2, 3))
        return jnp.maximum((y - mean) / jnp.sqrt(var + eps) * gamma + beta, 0.0)

    y = conv_bn_relu(xc, params["w1"], params["b1"], params["gamma1"], params["beta1"])
    y = conv_bn_relu(y, params["w2"], params["b2"], params["gamma2"], params["beta2"])
    return jnp.transpose(y, (0, 4, 1, 2, 3))


if __name__ == "__main__":
    N, in_c, out_c, skip_c = 2, 16, 8, 8
    D, H, W = 4, 8, 8

    key = jax.random.PRNGKey(0)
    kx, ks = jax.random.split(key)
    x = jax.random.normal(kx, (N, in_c, D, H, W), jnp.float32)
    skip = jax.random.normal(ks, (N, skip_c, D, 2 * H, 2 * W), jnp.float32)

    pkey = jax.random.PRNGKey(42)
    k1, k2, k3, k4, k5, k6 = jax.random.split(pkey, 6)
    params = dict(
        # ConvTranspose3d weight layout: (in_c, out_c, kD=1, kH=2, kW=2)
        w_up=0.1 * jax.random.normal(k1, (in_c, out_c, 1, 2, 2), jnp.float32),
        b_up=0.1 * jax.random.normal(k2, (out_c,), jnp.float32),
        # Conv3d weights kept in DHWIO (channels-last) layout; concat order is
        # [skip channels, upsampled channels].
        w1=0.1 * jax.random.normal(k3, (3, 3, 3, skip_c + out_c, out_c), jnp.float32),
        b1=0.1 * jax.random.normal(k4, (out_c,), jnp.float32),
        gamma1=jnp.ones((out_c,), jnp.float32),
        beta1=jnp.zeros((out_c,), jnp.float32),
        w2=0.1 * jax.random.normal(k5, (3, 3, 3, out_c, out_c), jnp.float32),
        b2=0.1 * jax.random.normal(k6, (out_c,), jnp.float32),
        gamma2=jnp.ones((out_c,), jnp.float32),
        beta2=jnp.zeros((out_c,), jnp.float32),
    )

    out = jax.block_until_ready(jax.jit(decoder_block3d_forward)(x, skip, params))
    ref = jax.block_until_ready(ref_forward(x, skip, params))

    # Pallas path uses bf16 MXU operands / activation storage (f32 accumulation
    # and f32 BN math); tolerance reflects bf16 rounding vs the f32 reference.
    np.testing.assert_allclose(np.asarray(out), np.asarray(ref), rtol=5e-2, atol=5e-2)

    print("KERNEL_OK")
</pallas_src>

<mosaic_0001>
module attributes {stable_mosaic.version = 11 : i64} {
  func.func @_up_kernel(%arg0: i32, %arg1: memref<64x128xbf16, #tpu.memory_space<vmem>>, %arg2: memref<128x256xbf16, #tpu.memory_space<vmem>>, %arg3: memref<1x256xf32, #tpu.memory_space<vmem>>, %arg4: memref<64x256xbf16, #tpu.memory_space<vmem>>) attributes {dimension_semantics = [#tpu.dimension_semantics<parallel>], iteration_bounds = array<i64: 1>, scalar_prefetch = 0 : i64, scratch_operands = 0 : i64, tpu.core_type = #tpu.core_type<tc>, window_params = [{transform_indices = @transform_0, window_bounds = array<i64: 64, 128>}, {pipeline_mode = #tpu.pipeline_mode<synchronous>, transform_indices = @transform_1, window_bounds = array<i64: 128, 256>}, {pipeline_mode = #tpu.pipeline_mode<synchronous>, transform_indices = @transform_2, window_bounds = array<i64: 1, 256>}, {transform_indices = @transform_3, window_bounds = array<i64: 64, 256>}]} {
    %c0 = arith.constant 0 : index
    %c0_0 = arith.constant 0 : index
    %0 = vector.load %arg1[%c0, %c0_0] : memref<64x128xbf16, #tpu.memory_space<vmem>>, vector<64x128xbf16>
    %c0_1 = arith.constant 0 : index
    %c0_2 = arith.constant 0 : index
    %1 = vector.load %arg2[%c0_1, %c0_2] : memref<128x256xbf16, #tpu.memory_space<vmem>>, vector<128x256xbf16>
    %cst = arith.constant dense<0.000000e+00> : vector<64x256xf32>
    %2 = tpu.matmul %0, %1, %cst {dimension_numbers = #tpu.dot_dimension_numbers<[1], [0], [0], [1], [0, 0, 1, 1], [], []>} : vector<64x128xbf16>, vector<128x256xbf16>, vector<64x256xf32> -> vector<64x256xf32>
    %c0_3 = arith.constant 0 : index
    %c0_4 = arith.constant 0 : index
    %3 = vector.load %arg3[%c0_3, %c0_4] : memref<1x256xf32, #tpu.memory_space<vmem>>, vector<1x256xf32>
    %4 = vector.broadcast %3 : vector<1x256xf32> to vector<64x256xf32>
    %5 = arith.addf %2, %4 : vector<64x256xf32>
    %6 = arith.truncf %5 : vector<64x256xf32> to vector<64x256xbf16>
    %c0_5 = arith.constant 0 : index
    %c0_6 = arith.constant 0 : index
    %7 = vector.load %arg4[%c0_5, %c0_6] : memref<64x256xbf16, #tpu.memory_space<vmem>>, vector<64x256xbf16>
    tpu.vector_store %arg4[%c0_5, %c0_6], %6 {strides = array<i32>} : memref<64x256xbf16, #tpu.memory_space<vmem>>, vector<64x256xbf16>,
    return
  }
  func.func @transform_0(%arg0: i32) -> (i32, i32) {
    %c0_i32 = arith.constant 0 : i32
    %c0_i32_0 = arith.constant 0 : i32
    return %arg0, %c0_i32 : i32, i32
  }
  func.func @transform_1(%arg0: i32) -> (i32, i32) {
    %c0_i32 = arith.constant 0 : i32
    %c0_i32_0 = arith.constant 0 : i32
    %c0_i32_1 = arith.constant 0 : i32
    return %c0_i32, %c0_i32_0 : i32, i32
  }
  func.func @transform_2(%arg0: i32) -> (i32, i32) {
    %c0_i32 = arith.constant 0 : i32
    %c0_i32_0 = arith.constant 0 : i32
    %c0_i32_1 = arith.constant 0 : i32
    return %c0_i32, %c0_i32_0 : i32, i32
  }
  func.func @transform_3(%arg0: i32) -> (i32, i32) {
    %c0_i32 = arith.constant 0 : i32
    %c0_i32_0 = arith.constant 0 : i32
    return %arg0, %c0_i32 : i32, i32
  }
}

module attributes {stable_mosaic.version = 11 : i64} {
  func.func @_conv1_kernel(%arg0: i32, %arg1: i32, %arg2: memref<1x4x16x128xbf16, #tpu.memory_space<vmem>>, %arg3: memref<1x4x16x128xbf16, #tpu.memory_space<vmem>>, %arg4: memref<3x3x128x128xbf16, #tpu.memory_space<vmem>>, %arg5: memref<3x3x128x128xbf16, #tpu.memory_space<vmem>>, %arg6: memref<1x1x16x128xbf16, #tpu.memory_space<vmem>>, %arg7: memref<1x1x8x128xf32, #tpu.memory_space<vmem>>, %arg8: memref<1x1x8x128xf32, #tpu.memory_space<vmem>>, %arg9: memref<16x128xf32, #tpu.memory_space<vmem>>) attributes {dimension_semantics = [#tpu.dimension_semantics<parallel>, #tpu.dimension_semantics<parallel>], iteration_bounds = array<i64: 2, 4>, scalar_prefetch = 0 : i64, scratch_operands = 1 : i64, tpu.core_type = #tpu.core_type<tc>, window_params = [{transform_indices = @transform_0, window_bounds = array<i64: 1, 4, 16, 128>}, {transform_indices = @transform_1, window_bounds = array<i64: 1, 4, 16, 128>}, {pipeline_mode = #tpu.pipeline_mode<synchronous>, transform_indices = @transform_2, window_bounds = array<i64: 3, 3, 128, 128>}, {pipeline_mode = #tpu.pipeline_mode<synchronous>, transform_indices = @transform_3, window_bounds = array<i64: 3, 3, 128, 128>}, {transform_indices = @transform_4, window_bounds = array<i64: 1, 1, 16, 128>}, {transform_indices = @transform_5, window_bounds = array<i64: 1, 1, 8, 128>}, {transform_indices = @transform_6, window_bounds = array<i64: 1, 1, 8, 128>}]} {
    %cst = arith.constant 0.000000e+00 : f32
    %0 = vector.broadcast %cst : f32 to vector<16x128xf32>
    %c0 = arith.constant 0 : index
    %c0_0 = arith.constant 0 : index
    %1 = vector.load %arg9[%c0, %c0_0] : memref<16x128xf32, #tpu.memory_space<vmem>>, vector<16x128xf32>
    tpu.vector_store %arg9[%c0, %c0_0], %0 {strides = array<i32>} : memref<16x128xf32, #tpu.memory_space<vmem>>, vector<16x128xf32>,
    %c0_i32 = arith.constant 0 : i32
    %2 = arith.addi %arg1, %c0_i32 : i32
    %c1_i32 = arith.constant 1 : i32
    %3 = arith.subi %2, %c1_i32 : i32
    %c0_i32_1 = arith.constant 0 : i32
    %c3_i32 = arith.constant 3 : i32
    %4 = arith.maxsi %c0_i32_1, %3 : i32
    %5 = arith.minsi %c3_i32, %4 : i32
    %c0_i32_2 = arith.constant 0 : i32
    %6 = arith.cmpi sge, %3, %c0_i32_2 : i32
    %c4_i32 = arith.constant 4 : i32
    %7 = arith.cmpi slt, %3, %c4_i32 : i32
    %8 = arith.andi %6, %7 : i1
    %9 = arith.extui %8 : i1 to i32
    %10 = arith.sitofp %9 : i32 to f32
    %11 = arith.truncf %10 : f32 to bf16
    %c0_3 = arith.constant 0 : index
    %12 = arith.index_cast %5 : i32 to index
    %c0_4 = arith.constant 0 : index
    %c0_5 = arith.constant 0 : index
    %13 = vector.load %arg2[%c0_3, %12, %c0_4, %c0_5] : memref<1x4x16x128xbf16, #tpu.memory_space<vmem>>, vector<1x1x16x128xbf16>
    %14 = vector.shape_cast %13 : vector<1x1x16x128xbf16> to vector<16x128xbf16>
    %15 = vector.broadcast %11 : bf16 to vector<16x128xbf16>
    %16 = arith.mulf %14, %15 : vector<16x128xbf16>
    %c1 = arith.constant 1 : index
    %c0_6 = arith.constant 0 : index
    %17 = vector.load %arg9[%c1, %c0_6] : memref<16x128xf32, #tpu.memory_space<vmem>>, vector<15x128xf32>
    %18 = vector.extract_strided_slice %16 {offsets = [0, 0], sizes = [15, 128], strides = [1, 1]} : vector<16x128xbf16> to vector<15x128xbf16>
    %c0_7 = arith.constant 0 : index
    %c0_8 = arith.constant 0 : index
    %c0_9 = arith.constant 0 : index
    %c0_10 = arith.constant 0 : index
    %19 = vector.load %arg4[%c0_7, %c0_8, %c0_9, %c0_10] : memref<3x3x128x128xbf16, #tpu.memory_space<vmem>>, vector<1x1x128x128xbf16>
    %20 = vector.shape_cast %19 : vector<1x1x128x128xbf16> to vector<128x128xbf16>
    %cst_11 = arith.constant dense<0.000000e+00> : vector<15x128xf32>
    %21 = tpu.matmul %18, %20, %cst_11 {dimension_numbers = #tpu.dot_dimension_numbers<[1], [0], [0], [1], [0, 0, 1, 1], [], []>} : vector<15x128xbf16>, vector<128x128xbf16>, vector<15x128xf32> -> vector<15x128xf32>
    %22 = arith.addf %17, %21 : vector<15x128xf32>
    %c1_12 = arith.constant 1 : index
    %c0_13 = arith.constant 0 : index
    %23 = vector.load %arg9[%c1_12, %c0_13] : memref<16x128xf32, #tpu.memory_space<vmem>>, vector<15x128xf32>
    tpu.vector_store %arg9[%c1_12, %c0_13], %22 {strides = array<i32>} : memref<16x128xf32, #tpu.memory_space<vmem>>, vector<15x128xf32>,
    %c0_14 = arith.constant 0 : index
    %c0_15 = arith.constant 0 : index
    %24 = vector.load %arg9[%c0_14, %c0_15] : memref<16x128xf32, #tpu.memory_space<vmem>>, vector<16x128xf32>
    %c0_16 = arith.constant 0 : index
    %c1_17 = arith.constant 1 : index
    %c0_18 = arith.constant 0 : index
    %c0_19 = arith.constant 0 : index
    %25 = vector.load %arg4[%c0_16, %c1_17, %c0_18, %c0_19] : memref<3x3x128x128xbf16, #tpu.memory_space<vmem>>, vector<1x1x128x128xbf16>
    %26 = vector.shape_cast %25 : vector<1x1x128x128xbf16> to vector<128x128xbf16>
    %cst_20 = arith.constant dense<0.000000e+00> : vector<16x128xf32>
    %27 = tpu.matmul %16, %26, %cst_20 {dimension_numbers = #tpu.dot_dimension_numbers<[1], [0], [0], [1], [0, 0, 1, 1], [], []>} : vector<16x128xbf16>, vector<128x128xbf16>, vector<16x128xf32> -> vector<16x128xf32>
    %28 = arith.addf %24, %27 : vector<16x128xf32>
    %c0_21 = arith.constant 0 : index
    %c0_22 = arith.constant 0 : index
    %29 = vector.load %arg9[%c0_21, %c0_22] : memref<16x128xf32, #tpu.memory_space<vmem>>, vector<16x128xf32>
    tpu.vector_store %arg9[%c0_21, %c0_22], %28 {strides = array<i32>} : memref<16x128xf32, #tpu.memory_space<vmem>>, vector<16x128xf32>,
    %c0_23 = arith.constant 0 : index
    %c0_24 = arith.constant 0 : index
    %30 = vector.load %arg9[%c0_23, %c0_24] : memref<16x128xf32, #tpu.memory_space<vmem>>, vector<15x128xf32>
    %31 = vector.extract_strided_slice %16 {offsets = [1, 0], sizes = [15, 128], strides = [1, 1]} : vector<16x128xbf16> to vector<15x128xbf16>
    %c0_25 = arith.constant 0 : index
    %c2 = arith.constant 2 : index
    %c0_26 = arith.constant 0 : index
    %c0_27 = arith.constant 0 : index
    %32 = vector.load %arg4[%c0_25, %c2, %c0_26, %c0_27] : memref<3x3x128x128xbf16, #tpu.memory_space<vmem>>, vector<1x1x128x128xbf16>
    %33 = vector.shape_cast %32 : vector<1x1x128x128xbf16> to vector<128x128xbf16>
    %cst_28 = arith.constant dense<0.000000e+00> : vector<15x128xf32>
    %34 = tpu.matmul %31, %33, %cst_28 {dimension_numbers = #tpu.dot_dimension_numbers<[1], [0], [0], [1], [0, 0, 1, 1], [], []>} : vector<15x128xbf16>, vector<128x128xbf16>, vector<15x128xf32> -> vector<15x128xf32>
    %35 = arith.addf %30, %34 : vector<15x128xf32>
    %c0_29 = arith.constant 0 : index
    %c0_30 = arith.constant 0 : index
    %36 = vector.load %arg9[%c0_29, %c0_30] : memref<16x128xf32, #tpu.memory_space<vmem>>, vector<15x128xf32>
    tpu.vector_store %arg9[%c0_29, %c0_30], %35 {strides = array<i32>} : memref<16x128xf32, #tpu.memory_space<vmem>>, vector<15x128xf32>,
    %c0_31 = arith.constant 0 : index
    %37 = arith.index_cast %5 : i32 to index
    %c0_32 = arith.constant 0 : index
    %c0_33 = arith.constant 0 : index
    %38 = vector.load %arg3[%c0_31, %37, %c0_32, %c0_33] : memref<1x4x16x128xbf16, #tpu.memory_space<vmem>>, vector<1x1x16x128xbf16>
    %39 = vector.shape_cast %38 : vector<1x1x16x128xbf16> to vector<16x128xbf16>
    %40 = vector.broadcast %11 : bf16 to vector<16x128xbf16>
    %41 = arith.mulf %39, %40 : vector<16x128xbf16>
    %c1_34 = arith.constant 1 : index
    %c0_35 = arith.constant 0 : index
    %42 = vector.load %arg9[%c1_34, %c0_35] : memref<16x128xf32, #tpu.memory_space<vmem>>, vector<15x128xf32>
    %43 = vector.extract_strided_slice %41 {offsets = [0, 0], sizes = [15, 128], strides = [1, 1]} : vector<16x128xbf16> to vector<15x128xbf16>
    %c0_36 = arith.constant 0 : index
    %c0_37 = arith.constant 0 : index
    %c0_38 = arith.constant 0 : index
    %c0_39 = arith.constant 0 : index
    %44 = vector.load %arg5[%c0_36, %c0_37, %c0_38, %c0_39] : memref<3x3x128x128xbf16, #tpu.memory_space<vmem>>, vector<1x1x128x128xbf16>
    %45 = vector.shape_cast %44 : vector<1x1x128x128xbf16> to vector<128x128xbf16>
    %cst_40 = arith.constant dense<0.000000e+00> : vector<15x128xf32>
    %46 = tpu.matmul %43, %45, %cst_40 {dimension_numbers = #tpu.dot_dimension_numbers<[1], [0], [0], [1], [0, 0, 1, 1], [], []>} : vector<15x128xbf16>, vector<128x128xbf16>, vector<15x128xf32> -> vector<15x128xf32>
    %47 = arith.addf %42, %46 : vector<15x128xf32>
    %c1_41 = arith.constant 1 : index
    %c0_42 = arith.constant 0 : index
    %48 = vector.load %arg9[%c1_41, %c0_42] : memref<16x128xf32, #tpu.memory_space<vmem>>, vector<15x128xf32>
    tpu.vector_store %arg9[%c1_41, %c0_42], %47 {strides = array<i32>} : memref<16x128xf32, #tpu.memory_space<vmem>>, vector<15x128xf32>,
    %c0_43 = arith.constant 0 : index
    %c0_44 = arith.constant 0 : index
    %49 = vector.load %arg9[%c0_43, %c0_44] : memref<16x128xf32, #tpu.memory_space<vmem>>, vector<16x128xf32>
    %c0_45 = arith.constant 0 : index
    %c1_46 = arith.constant 1 : index
    %c0_47 = arith.constant 0 : index
    %c0_48 = arith.constant 0 : index
    %50 = vector.load %arg5[%c0_45, %c1_46, %c0_47, %c0_48] : memref<3x3x128x128xbf16, #tpu.memory_space<vmem>>, vector<1x1x128x128xbf16>
    %51 = vector.shape_cast %50 : vector<1x1x128x128xbf16> to vector<128x128xbf16>
    %cst_49 = arith.constant dense<0.000000e+00> : vector<16x128xf32>
    %52 = tpu.matmul %41, %51, %cst_49 {dimension_numbers = #tpu.dot_dimension_numbers<[1], [0], [0], [1], [0, 0, 1, 1], [], []>} : vector<16x128xbf16>, vector<128x128xbf16>, vector<16x128xf32> -> vector<16x128xf32>
    %53 = arith.addf %49, %52 : vector<16x128xf32>
    %c0_50 = arith.constant 0 : index
    %c0_51 = arith.constant 0 : index
    %54 = vector.load %arg9[%c0_50, %c0_51] : memref<16x128xf32, #tpu.memory_space<vmem>>, vector<16x128xf32>
    tpu.vector_store %arg9[%c0_50, %c0_51], %53 {strides = array<i32>} : memref<16x128xf32, #tpu.memory_space<vmem>>, vector<16x128xf32>,
    %c0_52 = arith.constant 0 : index
    %c0_53 = arith.constant 0 : index
    %55 = vector.load %arg9[%c0_52, %c0_53] : memref<16x128xf32, #tpu.memory_space<vmem>>, vector<15x128xf32>
    %56 = vector.extract_strided_slice %41 {offsets = [1, 0], sizes = [15, 128], strides = [1, 1]} : vector<16x128xbf16> to vector<15x128xbf16>
    %c0_54 = arith.constant 0 : index
    %c2_55 = arith.constant 2 : index
    %c0_56 = arith.constant 0 : index
    %c0_57 = arith.constant 0 : index
    %57 = vector.load %arg5[%c0_54, %c2_55, %c0_56, %c0_57] : memref<3x3x128x128xbf16, #tpu.memory_space<vmem>>, vector<1x1x128x128xbf16>
    %58 = vector.shape_cast %57 : vector<1x1x128x128xbf16> to vector<128x128xbf16>
    %cst_58 = arith.constant dense<0.000000e+00> : vector<15x128xf32>
    %59 = tpu.matmul %56, %58, %cst_58 {dimension_numbers = #tpu.dot_dimension_numbers<[1], [0], [0], [1], [0, 0, 1, 1], [], []>} : vector<15x128xbf16>, vector<128x128xbf16>, vector<15x128xf32> -> vector<15x128xf32>
    %60 = arith.addf %55, %59 : vector<15x128xf32>
    %c0_59 = arith.constant 0 : index
    %c0_60 = arith.constant 0 : index
    %61 = vector.load %arg9[%c0_59, %c0_60] : memref<16x128xf32, #tpu.memory_space<vmem>>, vector<15x128xf32>
    tpu.vector_store %arg9[%c0_59, %c0_60], %60 {strides = array<i32>} : memref<16x128xf32, #tpu.memory_space<vmem>>, vector<15x128xf32>,
    %c1_i32_61 = arith.constant 1 : i32
    %62 = arith.addi %arg1, %c1_i32_61 : i32
    %c1_i32_62 = arith.constant 1 : i32
    %63 = arith.subi %62, %c1_i32_62 : i32
    %c0_i32_63 = arith.constant 0 : i32
    %c3_i32_64 = arith.constant 3 : i32
    %64 = arith.maxsi %c0_i32_63, %63 : i32
    %65 = arith.minsi %c3_i32_64, %64 : i32
    %c0_i32_65 = arith.constant 0 : i32
    %66 = arith.cmpi sge, %63, %c0_i32_65 : i32
    %c4_i32_66 = arith.constant 4 : i32
    %67 = arith.cmpi slt, %63, %c4_i32_66 : i32
    %68 = arith.andi %66, %67 : i1
    %69 = arith.extui %68 : i1 to i32
    %70 = arith.sitofp %69 : i32 to f32
    %71 = arith.truncf %70 : f32 to bf16
    %c0_67 = arith.constant 0 : index
    %72 = arith.index_cast %65 : i32 to index
    %c0_68 = arith.constant 0 : index
    %c0_69 = arith.constant 0 : index
    %73 = vector.load %arg2[%c0_67, %72, %c0_68, %c0_69] : memref<1x4x16x128xbf16, #tpu.memory_space<vmem>>, vector<1x1x16x128xbf16>
    %74 = vector.shape_cast %73 : vector<1x1x16x128xbf16> to vector<16x128xbf16>
    %75 = vector.broadcast %71 : bf16 to vector<16x128xbf16>
    %76 = arith.mulf %74, %75 : vector<16x128xbf16>
    %c1_70 = arith.constant 1 : index
    %c0_71 = arith.constant 0 : index
    %77 = vector.load %arg9[%c1_70, %c0_71] : memref<16x128xf32, #tpu.memory_space<vmem>>, vector<15x128xf32>
    %78 = vector.extract_strided_slice %76 {offsets = [0, 0], sizes = [15, 128], strides = [1, 1]} : vector<16x128xbf16> to vector<15x128xbf16>
    %c1_72 = arith.constant 1 : index
    %c0_73 = arith.constant 0 : index
    %c0_74 = arith.constant 0 : index
    %c0_75 = arith.constant 0 : index
    %79 = vector.load %arg4[%c1_72, %c0_73, %c0_74, %c0_75] : memref<3x3x128x128xbf16, #tpu.memory_space<vmem>>, vector<1x1x128x128xbf16>
    %80 = vector.shape_cast %79 : vector<1x1x128x128xbf16> to vector<128x128xbf16>
    %cst_76 = arith.constant dense<0.000000e+00> : vector<15x128xf32>
    %81 = tpu.matmul %78, %80, %cst_76 {dimension_numbers = #tpu.dot_dimension_numbers<[1], [0], [0], [1], [0, 0, 1, 1], [], []>} : vector<15x128xbf16>, vector<128x128xbf16>, vector<15x128xf32> -> vector<15x128xf32>
    %82 = arith.addf %77, %81 : vector<15x128xf32>
    %c1_77 = arith.constant 1 : index
    %c0_78 = arith.constant 0 : index
    %83 = vector.load %arg9[%c1_77, %c0_78] : memref<16x128xf32, #tpu.memory_space<vmem>>, vector<15x128xf32>
    tpu.vector_store %arg9[%c1_77, %c0_78], %82 {strides = array<i32>} : memref<16x128xf32, #tpu.memory_space<vmem>>, vector<15x128xf32>,
    %c0_79 = arith.constant 0 : index
    %c0_80 = arith.constant 0 : index
    %84 = vector.load %arg9[%c0_79, %c0_80] : memref<16x128xf32, #tpu.memory_space<vmem>>, vector<16x128xf32>
    %c1_81 = arith.constant 1 : index
    %c1_82 = arith.constant 1 : index
    %c0_83 = arith.constant 0 : index
    %c0_84 = arith.constant 0 : index
    %85 = vector.load %arg4[%c1_81, %c1_82, %c0_83, %c0_84] : memref<3x3x128x128xbf16, #tpu.memory_space<vmem>>, vector<1x1x128x128xbf16>
    %86 = vector.shape_cast %85 : vector<1x1x128x128xbf16> to vector<128x128xbf16>
    %cst_85 = arith.constant dense<0.000000e+00> : vector<16x128xf32>
    %87 = tpu.matmul %76, %86, %cst_85 {dimension_numbers = #tpu.dot_dimension_numbers<[1], [0], [0], [1], [0, 0, 1, 1], [], []>} : vector<16x128xbf16>, vector<128x128xbf16>, vector<16x128xf32> -> vector<16x128xf32>
    %88 = arith.addf %84, %87 : vector<16x128xf32>
    %c0_86 = arith.constant 0 : index
    %c0_87 = arith.constant 0 : index
    %89 = vector.load %arg9[%c0_86, %c0_87] : memref<16x128xf32, #tpu.memory_space<vmem>>, vector<16x128xf32>
    tpu.vector_store %arg9[%c0_86, %c0_87], %88 {strides = array<i32>} : memref<16x128xf32, #tpu.memory_space<vmem>>, vector<16x128xf32>,
    %c0_88 = arith.constant 0 : index
    %c0_89 = arith.constant 0 : index
    %90 = vector.load %arg9[%c0_88, %c0_89] : memref<16x128xf32, #tpu.memory_space<vmem>>, vector<15x128xf32>
    %91 = vector.extract_strided_slice %76 {offsets = [1, 0], sizes = [15, 128], strides = [1, 1]} : vector<16x128xbf16> to vector<15x128xbf16>
    %c1_90 = arith.constant 1 : index
    %c2_91 = arith.constant 2 : index
    %c0_92 = arith.constant 0 : index
    %c0_93 = arith.constant 0 : index
    %92 = vector.load %arg4[%c1_90, %c2_91, %c0_92, %c0_93] : memref<3x3x128x128xbf16, #tpu.memory_space<vmem>>, vector<1x1x128x128xbf16>
    %93 = vector.shape_cast %92 : vector<1x1x128x128xbf16> to vector<128x128xbf16>
    %cst_94 = arith.constant dense<0.000000e+00> : vector<15x128xf32>
    %94 = tpu.matmul %91, %93, %cst_94 {dimension_numbers = #tpu.dot_dimension_numbers<[1], [0], [0], [1], [0, 0, 1, 1], [], []>} : vector<15x128xbf16>, vector<128x128xbf16>, vector<15x128xf32> -> vector<15x128xf32>
    %95 = arith.addf %90, %94 : vector<15x128xf32>
    %c0_95 = arith.constant 0 : index
    %c0_96 = arith.constant 0 : index
    %96 = vector.load %arg9[%c0_95, %c0_96] : memref<16x128xf32, #tpu.memory_space<vmem>>, vector<15x128xf32>
    tpu.vector_store %arg9[%c0_95, %c0_96], %95 {strides = array<i32>} : memref<16x128xf32, #tpu.memory_space<vmem>>, vector<15x128xf32>,
    %c0_97 = arith.constant 0 : index
    %97 = arith.index_cast %65 : i32 to index
    %c0_98 = arith.constant 0 : index
    %c0_99 = arith.constant 0 : index
    %98 = vector.load %arg3[%c0_97, %97, %c0_98, %c0_99] : memref<1x4x16x128xbf16, #tpu.memory_space<vmem>>, vector<1x1x16x128xbf16>
    %99 = vector.shape_cast %98 : vector<1x1x16x128xbf16> to vector<16x128xbf16>
    %100 = vector.broadcast %71 : bf16 to vector<16x128xbf16>
    %101 = arith.mulf %99, %100 : vector<16x128xbf16>
    %c1_100 = arith.constant 1 : index
    %c0_101 = arith.constant 0 : index
    %102 = vector.load %arg9[%c1_100, %c0_101] : memref<16x128xf32, #tpu.memory_space<vmem>>, vector<15x128xf32>
    %103 = vector.extract_strided_slice %101 {offsets = [0, 0], sizes = [15, 128], strides = [1, 1]} : vector<16x128xbf16> to vector<15x128xbf16>
    %c1_102 = arith.constant 1 : index
    %c0_103 = arith.constant 0 : index
    %c0_104 = arith.constant 0 : index
    %c0_105 = arith.constant 0 : index
    %104 = vector.load %arg5[%c1_102, %c0_103, %c0_104, %c0_105] : memref<3x3x128x128xbf16, #tpu.memory_space<vmem>>, vector<1x1x128x128xbf16>
    %105 = vector.shape_cast %104 : vector<1x1x128x128xbf16> to vector<128x128xbf16>
    %cst_106 = arith.constant dense<0.000000e+00> : vector<15x128xf32>
    %106 = tpu.matmul %103, %105, %cst_106 {dimension_numbers = #tpu.dot_dimension_numbers<[1], [0], [0], [1], [0, 0, 1, 1], [], []>} : vector<15x128xbf16>, vector<128x128xbf16>, vector<15x128xf32> -> vector<15x128xf32>
    %107 = arith.addf %102, %106 : vector<15x128xf32>
    %c1_107 = arith.constant 1 : index
    %c0_108 = arith.constant 0 : index
    %108 = vector.load %arg9[%c1_107, %c0_108] : memref<16x128xf32, #tpu.memory_space<vmem>>, vector<15x128xf32>
    tpu.vector_store %arg9[%c1_107, %c0_108], %107 {strides = array<i32>} : memref<16x128xf32, #tpu.memory_space<vmem>>, vector<15x128xf32>,
    %c0_109 = arith.constant 0 : index
    %c0_110 = arith.constant 0 : index
    %109 = vector.load %arg9[%c0_109, %c0_110] : memref<16x128xf32, #tpu.memory_space<vmem>>, vector<16x128xf32>
    %c1_111 = arith.constant 1 : index
    %c1_112 = arith.constant 1 : index
    %c0_113 = arith.constant 0 : index
    %c0_114 = arith.constant 0 : index
    %110 = vector.load %arg5[%c1_111, %c1_112, %c0_113, %c0_114] : memref<3x3x128x128xbf16, #tpu.memory_space<vmem>>, vector<1x1x128x128xbf16>
    %111 = vector.shape_cast %110 : vector<1x1x128x128xbf16> to vector<128x128xbf16>
    %cst_115 = arith.constant dense<0.000000e+00> : vector<16x128xf32>
    %112 = tpu.matmul %101, %111, %cst_115 {dimension_numbers = #tpu.dot_dimension_numbers<[1], [0], [0], [1], [0, 0, 1, 1], [], []>} : vector<16x128xbf16>, vector<128x128xbf16>, vector<16x128xf32> -> vector<16x128xf32>
    %113 = arith.addf %109, %112 : vector<16x128xf32>
    %c0_116 = arith.constant 0 : index
    %c0_117 = arith.constant 0 : index
    %114 = vector.load %arg9[%c0_116, %c0_117] : memref<16x128xf32, #tpu.memory_space<vmem>>, vector<16x128xf32>
    tpu.vector_store %arg9[%c0_116, %c0_117], %113 {strides = array<i32>} : memref<16x128xf32, #tpu.memory_space<vmem>>, vector<16x128xf32>,
    %c0_118 = arith.constant 0 : index
    %c0_119 = arith.constant 0 : index
    %115 = vector.load %arg9[%c0_118, %c0_119] : memref<16x128xf32, #tpu.memory_space<vmem>>, vector<15x128xf32>
    %116 = vector.extract_strided_slice %101 {offsets = [1, 0], sizes = [15, 128], strides = [1, 1]} : vector<16x128xbf16> to vector<15x128xbf16>
    %c1_120 = arith.constant 1 : index
    %c2_121 = arith.constant 2 : index
    %c0_122 = arith.constant 0 : index
    %c0_123 = arith.constant 0 : index
    %117 = vector.load %arg5[%c1_120, %c2_121, %c0_122, %c0_123] : memref<3x3x128x128xbf16, #tpu.memory_space<vmem>>, vector<1x1x128x128xbf16>
    %118 = vector.shape_cast %117 : vector<1x1x128x128xbf16> to vector<128x128xbf16>
    %cst_124 = arith.constant dense<0.000000e+00> : vector<15x128xf32>
    %119 = tpu.matmul %116, %118, %cst_124 {dimension_numbers = #tpu.dot_dimension_numbers<[1], [0], [0], [1], [0, 0, 1, 1], [], []>} : vector<15x128xbf16>, vector<128x128xbf16>, vector<15x128xf32> -> vector<15x128xf32>
    %120 = arith.addf %115, %119 : vector<15x128xf32>
    %c0_125 = arith.constant 0 : index
    %c0_126 = arith.constant 0 : index
    %121 = vector.load %arg9[%c0_125, %c0_126] : memref<16x128xf32, #tpu.memory_space<vmem>>, vector<15x128xf32>
    tpu.vector_store %arg9[%c0_125, %c0_126], %120 {strides = array<i32>} : memref<16x128xf32, #tpu.memory_space<vmem>>, vector<15x128xf32>,
    %c2_i32 = arith.constant 2 : i32
    %122 = arith.addi %arg1, %c2_i32 : i32
    %c1_i32_127 = arith.constant 1 : i32
    %123 = arith.subi %122, %c1_i32_127 : i32
    %c0_i32_128 = arith.constant 0 : i32
    %c3_i32_129 = arith.constant 3 : i32
    %124 = arith.maxsi %c0_i32_128, %123 : i32
    %125 = arith.minsi %c3_i32_129, %124 : i32
    %c0_i32_130 = arith.constant 0 : i32
    %126 = arith.cmpi sge, %123, %c0_i32_130 : i32
    %c4_i32_131 = arith.constant 4 : i32
    %127 = arith.cmpi slt, %123, %c4_i32_131 : i32
    %128 = arith.andi %126, %127 : i1
    %129 = arith.extui %128 : i1 to i32
    %130 = arith.sitofp %129 : i32 to f32
    %131 = arith.truncf %130 : f32 to bf16
    %c0_132 = arith.constant 0 : index
    %132 = arith.index_cast %125 : i32 to index
    %c0_133 = arith.constant 0 : index
    %c0_134 = arith.constant 0 : index
    %133 = vector.load %arg2[%c0_132, %132, %c0_133, %c0_134] : memref<1x4x16x128xbf16, #tpu.memory_space<vmem>>, vector<1x1x16x128xbf16>
    %134 = vector.shape_cast %133 : vector<1x1x16x128xbf16> to vector<16x128xbf16>
    %135 = vector.broadcast %131 : bf16 to vector<16x128xbf16>
    %136 = arith.mulf %134, %135 : vector<16x128xbf16>
    %c1_135 = arith.constant 1 : index
    %c0_136 = arith.constant 0 : index
    %137 = vector.load %arg9[%c1_135, %c0_136] : memref<16x128xf32, #tpu.memory_space<vmem>>, vector<15x128xf32>
    %138 = vector.extract_strided_slice %136 {offsets = [0, 0], sizes = [15, 128], strides = [1, 1]} : vector<16x128xbf16> to vector<15x128xbf16>
    %c2_137 = arith.constant 2 : index
    %c0_138 = arith.constant 0 : index
    %c0_139 = arith.constant 0 : index
    %c0_140 = arith.constant 0 : index
    %139 = vector.load %arg4[%c2_137, %c0_138, %c0_139, %c0_140] : memref<3x3x128x128xbf16, #tpu.memory_space<vmem>>, vector<1x1x128x128xbf16>
    %140 = vector.shape_cast %139 : vector<1x1x128x128xbf16> to vector<128x128xbf16>
    %cst_141 = arith.constant dense<0.000000e+00> : vector<15x128xf32>
    %141 = tpu.matmul %138, %140, %cst_141 {dimension_numbers = #tpu.dot_dimension_numbers<[1], [0], [0], [1], [0, 0, 1, 1], [], []>} : vector<15x128xbf16>, vector<128x128xbf16>, vector<15x128xf32> -> vector<15x128xf32>
    %142 = arith.addf %137, %141 : vector<15x128xf32>
    %c1_142 = arith.constant 1 : index
    %c0_143 = arith.constant 0 : index
    %143 = vector.load %arg9[%c1_142, %c0_143] : memref<16x128xf32, #tpu.memory_space<vmem>>, vector<15x128xf32>
    tpu.vector_store %arg9[%c1_142, %c0_143], %142 {strides = array<i32>} : memref<16x128xf32, #tpu.memory_space<vmem>>, vector<15x128xf32>,
    %c0_144 = arith.constant 0 : index
    %c0_145 = arith.constant 0 : index
    %144 = vector.load %arg9[%c0_144, %c0_145] : memref<16x128xf32, #tpu.memory_space<vmem>>, vector<16x128xf32>
    %c2_146 = arith.constant 2 : index
    %c1_147 = arith.constant 1 : index
    %c0_148 = arith.constant 0 : index
    %c0_149 = arith.constant 0 : index
    %145 = vector.load %arg4[%c2_146, %c1_147, %c0_148, %c0_149] : memref<3x3x128x128xbf16, #tpu.memory_space<vmem>>, vector<1x1x128x128xbf16>
    %146 = vector.shape_cast %145 : vector<1x1x128x128xbf16> to vector<128x128xbf16>
    %cst_150 = arith.constant dense<0.000000e+00> : vector<16x128xf32>
    %147 = tpu.matmul %136, %146, %cst_150 {dimension_numbers = #tpu.dot_dimension_numbers<[1], [0], [0], [1], [0, 0, 1, 1], [], []>} : vector<16x128xbf16>, vector<128x128xbf16>, vector<16x128xf32> -> vector<16x128xf32>
    %148 = arith.addf %144, %147 : vector<16x128xf32>
    %c0_151 = arith.constant 0 : index
    %c0_152 = arith.constant 0 : index
    %149 = vector.load %arg9[%c0_151, %c0_152] : memref<16x128xf32, #tpu.memory_space<vmem>>, vector<16x128xf32>
    tpu.vector_store %arg9[%c0_151, %c0_152], %148 {strides = array<i32>} : memref<16x128xf32, #tpu.memory_space<vmem>>, vector<16x128xf32>,
    %c0_153 = arith.constant 0 : index
    %c0_154 = arith.constant 0 : index
    %150 = vector.load %arg9[%c0_153, %c0_154] : memref<16x128xf32, #tpu.memory_space<vmem>>, vector<15x128xf32>
    %151 = vector.extract_strided_slice %136 {offsets = [1, 0], sizes = [15, 128], strides = [1, 1]} : vector<16x128xbf16> to vector<15x128xbf16>
    %c2_155 = arith.constant 2 : index
    %c2_156 = arith.constant 2 : index
    %c0_157 = arith.constant 0 : index
    %c0_158 = arith.constant 0 : index
    %152 = vector.load %arg4[%c2_155, %c2_156, %c0_157, %c0_158] : memref<3x3x128x128xbf16, #tpu.memory_space<vmem>>, vector<1x1x128x128xbf16>
    %153 = vector.shape_cast %152 : vector<1x1x128x128xbf16> to vector<128x128xbf16>
    %cst_159 = arith.constant dense<0.000000e+00> : vector<15x128xf32>
    %154 = tpu.matmul %151, %153, %cst_159 {dimension_numbers = #tpu.dot_dimension_numbers<[1], [0], [0], [1], [0, 0, 1, 1], [], []>} : vector<15x128xbf16>, vector<128x128xbf16>, vector<15x128xf32> -> vector<15x128xf32>
    %155 = arith.addf %150, %154 : vector<15x128xf32>
    %c0_160 = arith.constant 0 : index
    %c0_161 = arith.constant 0 : index
    %156 = vector.load %arg9[%c0_160, %c0_161] : memref<16x128xf32, #tpu.memory_space<vmem>>, vector<15x128xf32>
    tpu.vector_store %arg9[%c0_160, %c0_161], %155 {strides = array<i32>} : memref<16x128xf32, #tpu.memory_space<vmem>>, vector<15x128xf32>,
    %c0_162 = arith.constant 0 : index
    %157 = arith.index_cast %125 : i32 to index
    %c0_163 = arith.constant 0 : index
    %c0_164 = arith.constant 0 : index
    %158 = vector.load %arg3[%c0_162, %157, %c0_163, %c0_164] : memref<1x4x16x128xbf16, #tpu.memory_space<vmem>>, vector<1x1x16x128xbf16>
    %159 = vector.shape_cast %158 : vector<1x1x16x128xbf16> to vector<16x128xbf16>
    %160 = vector.broadcast %131 : bf16 to vector<16x128xbf16>
    %161 = arith.mulf %159, %160 : vector<16x128xbf16>
    %c1_165 = arith.constant 1 : index
    %c0_166 = arith.constant 0 : index
    %162 = vector.load %arg9[%c1_165, %c0_166] : memref<16x128xf32, #tpu.memory_space<vmem>>, vector<15x128xf32>
    %163 = vector.extract_strided_slice %161 {offsets = [0, 0], sizes = [15, 128], strides = [1, 1]} : vector<16x128xbf16> to vector<15x128xbf16>
    %c2_167 = arith.constant 2 : index
    %c0_168 = arith.constant 0 : index
    %c0_169 = arith.constant 0 : index
    %c0_170 = arith.constant 0 : index
    %164 = vector.load %arg5[%c2_167, %c0_168, %c0_169, %c0_170] : memref<3x3x128x128xbf16, #tpu.memory_space<vmem>>, vector<1x1x128x128xbf16>
    %165 = vector.shape_cast %164 : vector<1x1x128x128xbf16> to vector<128x128xbf16>
    %cst_171 = arith.constant dense<0.000000e+00> : vector<15x128xf32>
    %166 = tpu.matmul %163, %165, %cst_171 {dimension_numbers = #tpu.dot_dimension_numbers<[1], [0], [0], [1], [0, 0, 1, 1], [], []>} : vector<15x128xbf16>, vector<128x128xbf16>, vector<15x128xf32> -> vector<15x128xf32>
    %167 = arith.addf %162, %166 : vector<15x128xf32>
    %c1_172 = arith.constant 1 : index
    %c0_173 = arith.constant 0 : index
    %168 = vector.load %arg9[%c1_172, %c0_173] : memref<16x128xf32, #tpu.memory_space<vmem>>, vector<15x128xf32>
    tpu.vector_store %arg9[%c1_172, %c0_173], %167 {strides = array<i32>} : memref<16x128xf32, #tpu.memory_space<vmem>>, vector<15x128xf32>,
    %c0_174 = arith.constant 0 : index
    %c0_175 = arith.constant 0 : index
    %169 = vector.load %arg9[%c0_174, %c0_175] : memref<16x128xf32, #tpu.memory_space<vmem>>, vector<16x128xf32>
    %c2_176 = arith.constant 2 : index
    %c1_177 = arith.constant 1 : index
    %c0_178 = arith.constant 0 : index
    %c0_179 = arith.constant 0 : index
    %170 = vector.load %arg5[%c2_176, %c1_177, %c0_178, %c0_179] : memref<3x3x128x128xbf16, #tpu.memory_space<vmem>>, vector<1x1x128x128xbf16>
    %171 = vector.shape_cast %170 : vector<1x1x128x128xbf16> to vector<128x128xbf16>
    %cst_180 = arith.constant dense<0.000000e+00> : vector<16x128xf32>
    %172 = tpu.matmul %161, %171, %cst_180 {dimension_numbers = #tpu.dot_dimension_numbers<[1], [0], [0], [1], [0, 0, 1, 1], [], []>} : vector<16x128xbf16>, vector<128x128xbf16>, vector<16x128xf32> -> vector<16x128xf32>
    %173 = arith.addf %169, %172 : vector<16x128xf32>
    %c0_181 = arith.constant 0 : index
    %c0_182 = arith.constant 0 : index
    %174 = vector.load %arg9[%c0_181, %c0_182] : memref<16x128xf32, #tpu.memory_space<vmem>>, vector<16x128xf32>
    tpu.vector_store %arg9[%c0_181, %c0_182], %173 {strides = array<i32>} : memref<16x128xf32, #tpu.memory_space<vmem>>, vector<16x128xf32>,
    %c0_183 = arith.constant 0 : index
    %c0_184 = arith.constant 0 : index
    %175 = vector.load %arg9[%c0_183, %c0_184] : memref<16x128xf32, #tpu.memory_space<vmem>>, vector<15x128xf32>
    %176 = vector.extract_strided_slice %161 {offsets = [1, 0], sizes = [15, 128], strides = [1, 1]} : vector<16x128xbf16> to vector<15x128xbf16>
    %c2_185 = arith.constant 2 : index
    %c2_186 = arith.constant 2 : index
    %c0_187 = arith.constant 0 : index
    %c0_188 = arith.constant 0 : index
    %177 = vector.load %arg5[%c2_185, %c2_186, %c0_187, %c0_188] : memref<3x3x128x128xbf16, #tpu.memory_space<vmem>>, vector<1x1x128x128xbf16>
    %178 = vector.shape_cast %177 : vector<1x1x128x128xbf16> to vector<128x128xbf16>
    %cst_189 = arith.constant dense<0.000000e+00> : vector<15x128xf32>
    %179 = tpu.matmul %176, %178, %cst_189 {dimension_numbers = #tpu.dot_dimension_numbers<[1], [0], [0], [1], [0, 0, 1, 1], [], []>} : vector<15x128xbf16>, vector<128x128xbf16>, vector<15x128xf32> -> vector<15x128xf32>
    %180 = arith.addf %175, %179 : vector<15x128xf32>
    %c0_190 = arith.constant 0 : index
    %c0_191 = arith.constant 0 : index
    %181 = vector.load %arg9[%c0_190, %c0_191] : memref<16x128xf32, #tpu.memory_space<vmem>>, vector<15x128xf32>
    tpu.vector_store %arg9[%c0_190, %c0_191], %180 {strides = array<i32>} : memref<16x128xf32, #tpu.memory_space<vmem>>, vector<15x128xf32>,
    %c0_192 = arith.constant 0 : index
    %c0_193 = arith.constant 0 : index
    %182 = vector.load %arg9[%c0_192, %c0_193] : memref<16x128xf32, #tpu.memory_space<vmem>>, vector<16x128xf32>
    %183 = arith.truncf %182 : vector<16x128xf32> to vector<16x128xbf16>
    %c0_194 = arith.constant 0 : index
    %c0_195 = arith.constant 0 : index
    %c0_196 = arith.constant 0 : index
    %c0_197 = arith.constant 0 : index
    %184 = vector.load %arg6[%c0_194, %c0_195, %c0_196, %c0_197] : memref<1x1x16x128xbf16, #tpu.memory_space<vmem>>, vector<1x1x16x128xbf16>
    %185 = vector.shape_cast %184 : vector<1x1x16x128xbf16> to vector<16x128xbf16>
    %186 = vector.shape_cast %183 : vector<16x128xbf16> to vector<1x1x16x128xbf16>
    tpu.vector_store %arg6[%c0_194, %c0_195, %c0_196, %c0_197], %186 {strides = array<i32>} : memref<1x1x16x128xbf16, #tpu.memory_space<vmem>>, vector<1x1x16x128xbf16>,
    %cst_198 = arith.constant dense<0.000000e+00> : vector<128xf32>
    %187 = vector.multi_reduction <add>, %182, %cst_198 [0] : vector<16x128xf32> to vector<128xf32>
    %188 = vector.shape_cast %187 : vector<128xf32> to vector<1x128xf32>
    %189 = vector.shape_cast %188 : vector<1x128xf32> to vector<1x128xf32>
    %190 = vector.broadcast %189 : vector<1x128xf32> to vector<8x128xf32>
    %c0_199 = arith.constant 0 : index
    %c0_200 = arith.constant 0 : index
    %c0_201 = arith.constant 0 : index
    %c0_202 = arith.constant 0 : index
    %191 = vector.load %arg7[%c0_199, %c0_200, %c0_201, %c0_202] : memref<1x1x8x128xf32, #tpu.memory_space<vmem>>, vector<1x1x8x128xf32>
    %192 = vector.shape_cast %191 : vector<1x1x8x128xf32> to vector<8x128xf32>
    %193 = vector.shape_cast %190 : vector<8x128xf32> to vector<1x1x8x128xf32>
    tpu.vector_store %arg7[%c0_199, %c0_200, %c0_201, %c0_202], %193 {strides = array<i32>} : memref<1x1x8x128xf32, #tpu.memory_space<vmem>>, vector<1x1x8x128xf32>,
    %194 = arith.mulf %182, %182 : vector<16x128xf32>
    %cst_203 = arith.constant dense<0.000000e+00> : vector<128xf32>
    %195 = vector.multi_reduction <add>, %194, %cst_203 [0] : vector<16x128xf32> to vector<128xf32>
    %196 = vector.shape_cast %195 : vector<128xf32> to vector<1x128xf32>
    %197 = vector.shape_cast %196 : vector<1x128xf32> to vector<1x128xf32>
    %198 = vector.broadcast %197 : vector<1x128xf32> to vector<8x128xf32>
    %c0_204 = arith.constant 0 : index
    %c0_205 = arith.constant 0 : index
    %c0_206 = arith.constant 0 : index
    %c0_207 = arith.constant 0 : index
    %199 = vector.load %arg8[%c0_204, %c0_205, %c0_206, %c0_207] : memref<1x1x8x128xf32, #tpu.memory_space<vmem>>, vector<1x1x8x128xf32>
    %200 = vector.shape_cast %199 : vector<1x1x8x128xf32> to vector<8x128xf32>
    %201 = vector.shape_cast %198 : vector<8x128xf32> to vector<1x1x8x128xf32>
    tpu.vector_store %arg8[%c0_204, %c0_205, %c0_206, %c0_207], %201 {strides = array<i32>} : memref<1x1x8x128xf32, #tpu.memory_space<vmem>>, vector<1x1x8x128xf32>,
    return
  }
  func.func @transform_0(%arg0: i32, %arg1: i32) -> (i32, i32, i32, i32) {
    %c0_i32 = arith.constant 0 : i32
    %c0_i32_0 = arith.constant 0 : i32
    %c0_i32_1 = arith.constant 0 : i32
    %c0_i32_2 = arith.constant 0 : i32
    return %arg0, %c0_i32, %c0_i32_0, %c0_i32_1 : i32, i32, i32, i32
  }
  func.func @transform_1(%arg0: i32, %arg1: i32) -> (i32, i32, i32, i32) {
    %c0_i32 = arith.constant 0 : i32
    %c0_i32_0 = arith.constant 0 : i32
    %c0_i32_1 = arith.constant 0 : i32
    %c0_i32_2 = arith.constant 0 : i32
    return %arg0, %c0_i32, %c0_i32_0, %c0_i32_1 : i32, i32, i32, i32
  }
  func.func @transform_2(%arg0: i32, %arg1: i32) -> (i32, i32, i32, i32) {
    %c0_i32 = arith.constant 0 : i32
    %c0_i32_0 = arith.constant 0 : i32
    %c0_i32_1 = arith.constant 0 : i32
    %c0_i32_2 = arith.constant 0 : i32
    %c0_i32_3 = arith.constant 0 : i32
    return %c0_i32, %c0_i32_0, %c0_i32_1, %c0_i32_2 : i32, i32, i32, i32
  }
  func.func @transform_3(%arg0: i32, %arg1: i32) -> (i32, i32, i32, i32) {
    %c0_i32 = arith.constant 0 : i32
    %c0_i32_0 = arith.constant 0 : i32
    %c0_i32_1 = arith.constant 0 : i32
    %c0_i32_2 = arith.constant 0 : i32
    %c0_i32_3 = arith.constant 0 : i32
    return %c0_i32, %c0_i32_0, %c0_i32_1, %c0_i32_2 : i32, i32, i32, i32
  }
  func.func @transform_4(%arg0: i32, %arg1: i32) -> (i32, i32, i32, i32) {
    %c0_i32 = arith.constant 0 : i32
    %c0_i32_0 = arith.constant 0 : i32
    %c0_i32_1 = arith.constant 0 : i32
    return %arg0, %arg1, %c0_i32, %c0_i32_0 : i32, i32, i32, i32
  }
  func.func @transform_5(%arg0: i32, %arg1: i32) -> (i32, i32, i32, i32) {
    %c0_i32 = arith.constant 0 : i32
    %c0_i32_0 = arith.constant 0 : i32
    %c0_i32_1 = arith.constant 0 : i32
    return %arg0, %arg1, %c0_i32, %c0_i32_0 : i32, i32, i32, i32
  }
  func.func @transform_6(%arg0: i32, %arg1: i32) -> (i32, i32, i32, i32) {
    %c0_i32 = arith.constant 0 : i32
    %c0_i32_0 = arith.constant 0 : i32
    %c0_i32_1 = arith.constant 0 : i32
    return %arg0, %arg1, %c0_i32, %c0_i32_0 : i32, i32, i32, i32
  }
}

module attributes {stable_mosaic.version = 11 : i64} {
  func.func @_conv2_kernel(%arg0: i32, %arg1: i32, %arg2: memref<1x4x16x128xbf16, #tpu.memory_space<vmem>>, %arg3: memref<3x3x128x128xbf16, #tpu.memory_space<vmem>>, %arg4: memref<1x128xf32, #tpu.memory_space<vmem>>, %arg5: memref<1x128xf32, #tpu.memory_space<vmem>>, %arg6: memref<1x1x16x128xbf16, #tpu.memory_space<vmem>>, %arg7: memref<1x1x8x128xf32, #tpu.memory_space<vmem>>, %arg8: memref<1x1x8x128xf32, #tpu.memory_space<vmem>>, %arg9: memref<16x128xf32, #tpu.memory_space<vmem>>) attributes {dimension_semantics = [#tpu.dimension_semantics<parallel>, #tpu.dimension_semantics<parallel>], iteration_bounds = array<i64: 2, 4>, scalar_prefetch = 0 : i64, scratch_operands = 1 : i64, tpu.core_type = #tpu.core_type<tc>, window_params = [{transform_indices = @transform_0, window_bounds = array<i64: 1, 4, 16, 128>}, {pipeline_mode = #tpu.pipeline_mode<synchronous>, transform_indices = @transform_1, window_bounds = array<i64: 3, 3, 128, 128>}, {pipeline_mode = #tpu.pipeline_mode<synchronous>, transform_indices = @transform_2, window_bounds = array<i64: 1, 128>}, {pipeline_mode = #tpu.pipeline_mode<synchronous>, transform_indices = @transform_3, window_bounds = array<i64: 1, 128>}, {transform_indices = @transform_4, window_bounds = array<i64: 1, 1, 16, 128>}, {transform_indices = @transform_5, window_bounds = array<i64: 1, 1, 8, 128>}, {transform_indices = @transform_6, window_bounds = array<i64: 1, 1, 8, 128>}]} {
    %cst = arith.constant 0.000000e+00 : f32
    %0 = vector.broadcast %cst : f32 to vector<16x128xf32>
    %c0 = arith.constant 0 : index
    %c0_0 = arith.constant 0 : index
    %1 = vector.load %arg9[%c0, %c0_0] : memref<16x128xf32, #tpu.memory_space<vmem>>, vector<16x128xf32>
    tpu.vector_store %arg9[%c0, %c0_0], %0 {strides = array<i32>} : memref<16x128xf32, #tpu.memory_space<vmem>>, vector<16x128xf32>,
    %c0_1 = arith.constant 0 : index
    %c0_2 = arith.constant 0 : index
    %2 = vector.load %arg4[%c0_1, %c0_2] : memref<1x128xf32, #tpu.memory_space<vmem>>, vector<1x128xf32>
    %c0_3 = arith.constant 0 : index
    %c0_4 = arith.constant 0 : index
    %3 = vector.load %arg5[%c0_3, %c0_4] : memref<1x128xf32, #tpu.memory_space<vmem>>, vector<1x128xf32>
    %c0_i32 = arith.constant 0 : i32
    %4 = arith.addi %arg1, %c0_i32 : i32
    %c1_i32 = arith.constant 1 : i32
    %5 = arith.subi %4, %c1_i32 : i32
    %c0_i32_5 = arith.constant 0 : i32
    %c3_i32 = arith.constant 3 : i32
    %6 = arith.maxsi %c0_i32_5, %5 : i32
    %7 = arith.minsi %c3_i32, %6 : i32
    %c0_i32_6 = arith.constant 0 : i32
    %8 = arith.cmpi sge, %5, %c0_i32_6 : i32
    %c4_i32 = arith.constant 4 : i32
    %9 = arith.cmpi slt, %5, %c4_i32 : i32
    %10 = arith.andi %8, %9 : i1
    %11 = arith.extui %10 : i1 to i32
    %12 = arith.sitofp %11 : i32 to f32
    %c0_7 = arith.constant 0 : index
    %13 = arith.index_cast %7 : i32 to index
    %c0_8 = arith.constant 0 : index
    %c0_9 = arith.constant 0 : index
    %14 = vector.load %arg2[%c0_7, %13, %c0_8, %c0_9] : memref<1x4x16x128xbf16, #tpu.memory_space<vmem>>, vector<1x1x16x128xbf16>
    %15 = vector.shape_cast %14 : vector<1x1x16x128xbf16> to vector<16x128xbf16>
    %16 = arith.extf %15 : vector<16x128xbf16> to vector<16x128xf32>
    %17 = vector.broadcast %2 : vector<1x128xf32> to vector<16x128xf32>
    %18 = arith.mulf %16, %17 : vector<16x128xf32>
    %19 = vector.broadcast %3 : vector<1x128xf32> to vector<16x128xf32>
    %20 = arith.addf %18, %19 : vector<16x128xf32>
    %cst_10 = arith.constant 0.000000e+00 : f32
    %21 = vector.broadcast %cst_10 : f32 to vector<16x128xf32>
    %22 = arith.maximumf %20, %21 : vector<16x128xf32>
    %23 = vector.broadcast %12 : f32 to vector<16x128xf32>
    %24 = arith.mulf %22, %23 : vector<16x128xf32>
    %25 = arith.truncf %24 : vector<16x128xf32> to vector<16x128xbf16>
    %c1 = arith.constant 1 : index
    %c0_11 = arith.constant 0 : index
    %26 = vector.load %arg9[%c1, %c0_11] : memref<16x128xf32, #tpu.memory_space<vmem>>, vector<15x128xf32>
    %27 = vector.extract_strided_slice %25 {offsets = [0, 0], sizes = [15, 128], strides = [1, 1]} : vector<16x128xbf16> to vector<15x128xbf16>
    %c0_12 = arith.constant 0 : index
    %c0_13 = arith.constant 0 : index
    %c0_14 = arith.constant 0 : index
    %c0_15 = arith.constant 0 : index
    %28 = vector.load %arg3[%c0_12, %c0_13, %c0_14, %c0_15] : memref<3x3x128x128xbf16, #tpu.memory_space<vmem>>, vector<1x1x128x128xbf16>
    %29 = vector.shape_cast %28 : vector<1x1x128x128xbf16> to vector<128x128xbf16>
    %cst_16 = arith.constant dense<0.000000e+00> : vector<15x128xf32>
    %30 = tpu.matmul %27, %29, %cst_16 {dimension_numbers = #tpu.dot_dimension_numbers<[1], [0], [0], [1], [0, 0, 1, 1], [], []>} : vector<15x128xbf16>, vector<128x128xbf16>, vector<15x128xf32> -> vector<15x128xf32>
    %31 = arith.addf %26, %30 : vector<15x128xf32>
    %c1_17 = arith.constant 1 : index
    %c0_18 = arith.constant 0 : index
    %32 = vector.load %arg9[%c1_17, %c0_18] : memref<16x128xf32, #tpu.memory_space<vmem>>, vector<15x128xf32>
    tpu.vector_store %arg9[%c1_17, %c0_18], %31 {strides = array<i32>} : memref<16x128xf32, #tpu.memory_space<vmem>>, vector<15x128xf32>,
    %c0_19 = arith.constant 0 : index
    %c0_20 = arith.constant 0 : index
    %33 = vector.load %arg9[%c0_19, %c0_20] : memref<16x128xf32, #tpu.memory_space<vmem>>, vector<16x128xf32>
    %c0_21 = arith.constant 0 : index
    %c1_22 = arith.constant 1 : index
    %c0_23 = arith.constant 0 : index
    %c0_24 = arith.constant 0 : index
    %34 = vector.load %arg3[%c0_21, %c1_22, %c0_23, %c0_24] : memref<3x3x128x128xbf16, #tpu.memory_space<vmem>>, vector<1x1x128x128xbf16>
    %35 = vector.shape_cast %34 : vector<1x1x128x128xbf16> to vector<128x128xbf16>
    %cst_25 = arith.constant dense<0.000000e+00> : vector<16x128xf32>
    %36 = tpu.matmul %25, %35, %cst_25 {dimension_numbers = #tpu.dot_dimension_numbers<[1], [0], [0], [1], [0, 0, 1, 1], [], []>} : vector<16x128xbf16>, vector<128x128xbf16>, vector<16x128xf32> -> vector<16x128xf32>
    %37 = arith.addf %33, %36 : vector<16x128xf32>
    %c0_26 = arith.constant 0 : index
    %c0_27 = arith.constant 0 : index
    %38 = vector.load %arg9[%c0_26, %c0_27] : memref<16x128xf32, #tpu.memory_space<vmem>>, vector<16x128xf32>
    tpu.vector_store %arg9[%c0_26, %c0_27], %37 {strides = array<i32>} : memref<16x128xf32, #tpu.memory_space<vmem>>, vector<16x128xf32>,
    %c0_28 = arith.constant 0 : index
    %c0_29 = arith.constant 0 : index
    %39 = vector.load %arg9[%c0_28, %c0_29] : memref<16x128xf32, #tpu.memory_space<vmem>>, vector<15x128xf32>
    %40 = vector.extract_strided_slice %25 {offsets = [1, 0], sizes = [15, 128], strides = [1, 1]} : vector<16x128xbf16> to vector<15x128xbf16>
    %c0_30 = arith.constant 0 : index
    %c2 = arith.constant 2 : index
    %c0_31 = arith.constant 0 : index
    %c0_32 = arith.constant 0 : index
    %41 = vector.load %arg3[%c0_30, %c2, %c0_31, %c0_32] : memref<3x3x128x128xbf16, #tpu.memory_space<vmem>>, vector<1x1x128x128xbf16>
    %42 = vector.shape_cast %41 : vector<1x1x128x128xbf16> to vector<128x128xbf16>
    %cst_33 = arith.constant dense<0.000000e+00> : vector<15x128xf32>
    %43 = tpu.matmul %40, %42, %cst_33 {dimension_numbers = #tpu.dot_dimension_numbers<[1], [0], [0], [1], [0, 0, 1, 1], [], []>} : vector<15x128xbf16>, vector<128x128xbf16>, vector<15x128xf32> -> vector<15x128xf32>
    %44 = arith.addf %39, %43 : vector<15x128xf32>
    %c0_34 = arith.constant 0 : index
    %c0_35 = arith.constant 0 : index
    %45 = vector.load %arg9[%c0_34, %c0_35] : memref<16x128xf32, #tpu.memory_space<vmem>>, vector<15x128xf32>
    tpu.vector_store %arg9[%c0_34, %c0_35], %44 {strides = array<i32>} : memref<16x128xf32, #tpu.memory_space<vmem>>, vector<15x128xf32>,
    %c1_i32_36 = arith.constant 1 : i32
    %46 = arith.addi %arg1, %c1_i32_36 : i32
    %c1_i32_37 = arith.constant 1 : i32
    %47 = arith.subi %46, %c1_i32_37 : i32
    %c0_i32_38 = arith.constant 0 : i32
    %c3_i32_39 = arith.constant 3 : i32
    %48 = arith.maxsi %c0_i32_38, %47 : i32
    %49 = arith.minsi %c3_i32_39, %48 : i32
    %c0_i32_40 = arith.constant 0 : i32
    %50 = arith.cmpi sge, %47, %c0_i32_40 : i32
    %c4_i32_41 = arith.constant 4 : i32
    %51 = arith.cmpi slt, %47, %c4_i32_41 : i32
    %52 = arith.andi %50, %51 : i1
    %53 = arith.extui %52 : i1 to i32
    %54 = arith.sitofp %53 : i32 to f32
    %c0_42 = arith.constant 0 : index
    %55 = arith.index_cast %49 : i32 to index
    %c0_43 = arith.constant 0 : index
    %c0_44 = arith.constant 0 : index
    %56 = vector.load %arg2[%c0_42, %55, %c0_43, %c0_44] : memref<1x4x16x128xbf16, #tpu.memory_space<vmem>>, vector<1x1x16x128xbf16>
    %57 = vector.shape_cast %56 : vector<1x1x16x128xbf16> to vector<16x128xbf16>
    %58 = arith.extf %57 : vector<16x128xbf16> to vector<16x128xf32>
    %59 = vector.broadcast %2 : vector<1x128xf32> to vector<16x128xf32>
    %60 = arith.mulf %58, %59 : vector<16x128xf32>
    %61 = vector.broadcast %3 : vector<1x128xf32> to vector<16x128xf32>
    %62 = arith.addf %60, %61 : vector<16x128xf32>
    %cst_45 = arith.constant 0.000000e+00 : f32
    %63 = vector.broadcast %cst_45 : f32 to vector<16x128xf32>
    %64 = arith.maximumf %62, %63 : vector<16x128xf32>
    %65 = vector.broadcast %54 : f32 to vector<16x128xf32>
    %66 = arith.mulf %64, %65 : vector<16x128xf32>
    %67 = arith.truncf %66 : vector<16x128xf32> to vector<16x128xbf16>
    %c1_46 = arith.constant 1 : index
    %c0_47 = arith.constant 0 : index
    %68 = vector.load %arg9[%c1_46, %c0_47] : memref<16x128xf32, #tpu.memory_space<vmem>>, vector<15x128xf32>
    %69 = vector.extract_strided_slice %67 {offsets = [0, 0], sizes = [15, 128], strides = [1, 1]} : vector<16x128xbf16> to vector<15x128xbf16>
    %c1_48 = arith.constant 1 : index
    %c0_49 = arith.constant 0 : index
    %c0_50 = arith.constant 0 : index
    %c0_51 = arith.constant 0 : index
    %70 = vector.load %arg3[%c1_48, %c0_49, %c0_50, %c0_51] : memref<3x3x128x128xbf16, #tpu.memory_space<vmem>>, vector<1x1x128x128xbf16>
    %71 = vector.shape_cast %70 : vector<1x1x128x128xbf16> to vector<128x128xbf16>
    %cst_52 = arith.constant dense<0.000000e+00> : vector<15x128xf32>
    %72 = tpu.matmul %69, %71, %cst_52 {dimension_numbers = #tpu.dot_dimension_numbers<[1], [0], [0], [1], [0, 0, 1, 1], [], []>} : vector<15x128xbf16>, vector<128x128xbf16>, vector<15x128xf32> -> vector<15x128xf32>
    %73 = arith.addf %68, %72 : vector<15x128xf32>
    %c1_53 = arith.constant 1 : index
    %c0_54 = arith.constant 0 : index
    %74 = vector.load %arg9[%c1_53, %c0_54] : memref<16x128xf32, #tpu.memory_space<vmem>>, vector<15x128xf32>
    tpu.vector_store %arg9[%c1_53, %c0_54], %73 {strides = array<i32>} : memref<16x128xf32, #tpu.memory_space<vmem>>, vector<15x128xf32>,
    %c0_55 = arith.constant 0 : index
    %c0_56 = arith.constant 0 : index
    %75 = vector.load %arg9[%c0_55, %c0_56] : memref<16x128xf32, #tpu.memory_space<vmem>>, vector<16x128xf32>
    %c1_57 = arith.constant 1 : index
    %c1_58 = arith.constant 1 : index
    %c0_59 = arith.constant 0 : index
    %c0_60 = arith.constant 0 : index
    %76 = vector.load %arg3[%c1_57, %c1_58, %c0_59, %c0_60] : memref<3x3x128x128xbf16, #tpu.memory_space<vmem>>, vector<1x1x128x128xbf16>
    %77 = vector.shape_cast %76 : vector<1x1x128x128xbf16> to vector<128x128xbf16>
    %cst_61 = arith.constant dense<0.000000e+00> : vector<16x128xf32>
    %78 = tpu.matmul %67, %77, %cst_61 {dimension_numbers = #tpu.dot_dimension_numbers<[1], [0], [0], [1], [0, 0, 1, 1], [], []>} : vector<16x128xbf16>, vector<128x128xbf16>, vector<16x128xf32> -> vector<16x128xf32>
    %79 = arith.addf %75, %78 : vector<16x128xf32>
    %c0_62 = arith.constant 0 : index
    %c0_63 = arith.constant 0 : index
    %80 = vector.load %arg9[%c0_62, %c0_63] : memref<16x128xf32, #tpu.memory_space<vmem>>, vector<16x128xf32>
    tpu.vector_store %arg9[%c0_62, %c0_63], %79 {strides = array<i32>} : memref<16x128xf32, #tpu.memory_space<vmem>>, vector<16x128xf32>,
    %c0_64 = arith.constant 0 : index
    %c0_65 = arith.constant 0 : index
    %81 = vector.load %arg9[%c0_64, %c0_65] : memref<16x128xf32, #tpu.memory_space<vmem>>, vector<15x128xf32>
    %82 = vector.extract_strided_slice %67 {offsets = [1, 0], sizes = [15, 128], strides = [1, 1]} : vector<16x128xbf16> to vector<15x128xbf16>
    %c1_66 = arith.constant 1 : index
    %c2_67 = arith.constant 2 : index
    %c0_68 = arith.constant 0 : index
    %c0_69 = arith.constant 0 : index
    %83 = vector.load %arg3[%c1_66, %c2_67, %c0_68, %c0_69] : memref<3x3x128x128xbf16, #tpu.memory_space<vmem>>, vector<1x1x128x128xbf16>
    %84 = vector.shape_cast %83 : vector<1x1x128x128xbf16> to vector<128x128xbf16>
    %cst_70 = arith.constant dense<0.000000e+00> : vector<15x128xf32>
    %85 = tpu.matmul %82, %84, %cst_70 {dimension_numbers = #tpu.dot_dimension_numbers<[1], [0], [0], [1], [0, 0, 1, 1], [], []>} : vector<15x128xbf16>, vector<128x128xbf16>, vector<15x128xf32> -> vector<15x128xf32>
    %86 = arith.addf %81, %85 : vector<15x128xf32>
    %c0_71 = arith.constant 0 : index
    %c0_72 = arith.constant 0 : index
    %87 = vector.load %arg9[%c0_71, %c0_72] : memref<16x128xf32, #tpu.memory_space<vmem>>, vector<15x128xf32>
    tpu.vector_store %arg9[%c0_71, %c0_72], %86 {strides = array<i32>} : memref<16x128xf32, #tpu.memory_space<vmem>>, vector<15x128xf32>,
    %c2_i32 = arith.constant 2 : i32
    %88 = arith.addi %arg1, %c2_i32 : i32
    %c1_i32_73 = arith.constant 1 : i32
    %89 = arith.subi %88, %c1_i32_73 : i32
    %c0_i32_74 = arith.constant 0 : i32
    %c3_i32_75 = arith.constant 3 : i32
    %90 = arith.maxsi %c0_i32_74, %89 : i32
    %91 = arith.minsi %c3_i32_75, %90 : i32
    %c0_i32_76 = arith.constant 0 : i32
    %92 = arith.cmpi sge, %89, %c0_i32_76 : i32
    %c4_i32_77 = arith.constant 4 : i32
    %93 = arith.cmpi slt, %89, %c4_i32_77 : i32
    %94 = arith.andi %92, %93 : i1
    %95 = arith.extui %94 : i1 to i32
    %96 = arith.sitofp %95 : i32 to f32
    %c0_78 = arith.constant 0 : index
    %97 = arith.index_cast %91 : i32 to index
    %c0_79 = arith.constant 0 : index
    %c0_80 = arith.constant 0 : index
    %98 = vector.load %arg2[%c0_78, %97, %c0_79, %c0_80] : memref<1x4x16x128xbf16, #tpu.memory_space<vmem>>, vector<1x1x16x128xbf16>
    %99 = vector.shape_cast %98 : vector<1x1x16x128xbf16> to vector<16x128xbf16>
    %100 = arith.extf %99 : vector<16x128xbf16> to vector<16x128xf32>
    %101 = vector.broadcast %2 : vector<1x128xf32> to vector<16x128xf32>
    %102 = arith.mulf %100, %101 : vector<16x128xf32>
    %103 = vector.broadcast %3 : vector<1x128xf32> to vector<16x128xf32>
    %104 = arith.addf %102, %103 : vector<16x128xf32>
    %cst_81 = arith.constant 0.000000e+00 : f32
    %105 = vector.broadcast %cst_81 : f32 to vector<16x128xf32>
    %106 = arith.maximumf %104, %105 : vector<16x128xf32>
    %107 = vector.broadcast %96 : f32 to vector<16x128xf32>
    %108 = arith.mulf %106, %107 : vector<16x128xf32>
    %109 = arith.truncf %108 : vector<16x128xf32> to vector<16x128xbf16>
    %c1_82 = arith.constant 1 : index
    %c0_83 = arith.constant 0 : index
    %110 = vector.load %arg9[%c1_82, %c0_83] : memref<16x128xf32, #tpu.memory_space<vmem>>, vector<15x128xf32>
    %111 = vector.extract_strided_slice %109 {offsets = [0, 0], sizes = [15, 128], strides = [1, 1]} : vector<16x128xbf16> to vector<15x128xbf16>
    %c2_84 = arith.constant 2 : index
    %c0_85 = arith.constant 0 : index
    %c0_86 = arith.constant 0 : index
    %c0_87 = arith.constant 0 : index
    %112 = vector.load %arg3[%c2_84, %c0_85, %c0_86, %c0_87] : memref<3x3x128x128xbf16, #tpu.memory_space<vmem>>, vector<1x1x128x128xbf16>
    %113 = vector.shape_cast %112 : vector<1x1x128x128xbf16> to vector<128x128xbf16>
    %cst_88 = arith.constant dense<0.000000e+00> : vector<15x128xf32>
    %114 = tpu.matmul %111, %113, %cst_88 {dimension_numbers = #tpu.dot_dimension_numbers<[1], [0], [0], [1], [0, 0, 1, 1], [], []>} : vector<15x128xbf16>, vector<128x128xbf16>, vector<15x128xf32> -> vector<15x128xf32>
    %115 = arith.addf %110, %114 : vector<15x128xf32>
    %c1_89 = arith.constant 1 : index
    %c0_90 = arith.constant 0 : index
    %116 = vector.load %arg9[%c1_89, %c0_90] : memref<16x128xf32, #tpu.memory_space<vmem>>, vector<15x128xf32>
    tpu.vector_store %arg9[%c1_89, %c0_90], %115 {strides = array<i32>} : memref<16x128xf32, #tpu.memory_space<vmem>>, vector<15x128xf32>,
    %c0_91 = arith.constant 0 : index
    %c0_92 = arith.constant 0 : index
    %117 = vector.load %arg9[%c0_91, %c0_92] : memref<16x128xf32, #tpu.memory_space<vmem>>, vector<16x128xf32>
    %c2_93 = arith.constant 2 : index
    %c1_94 = arith.constant 1 : index
    %c0_95 = arith.constant 0 : index
    %c0_96 = arith.constant 0 : index
    %118 = vector.load %arg3[%c2_93, %c1_94, %c0_95, %c0_96] : memref<3x3x128x128xbf16, #tpu.memory_space<vmem>>, vector<1x1x128x128xbf16>
    %119 = vector.shape_cast %118 : vector<1x1x128x128xbf16> to vector<128x128xbf16>
    %cst_97 = arith.constant dense<0.000000e+00> : vector<16x128xf32>
    %120 = tpu.matmul %109, %119, %cst_97 {dimension_numbers = #tpu.dot_dimension_numbers<[1], [0], [0], [1], [0, 0, 1, 1], [], []>} : vector<16x128xbf16>, vector<128x128xbf16>, vector<16x128xf32> -> vector<16x128xf32>
    %121 = arith.addf %117, %120 : vector<16x128xf32>
    %c0_98 = arith.constant 0 : index
    %c0_99 = arith.constant 0 : index
    %122 = vector.load %arg9[%c0_98, %c0_99] : memref<16x128xf32, #tpu.memory_space<vmem>>, vector<16x128xf32>
    tpu.vector_store %arg9[%c0_98, %c0_99], %121 {strides = array<i32>} : memref<16x128xf32, #tpu.memory_space<vmem>>, vector<16x128xf32>,
    %c0_100 = arith.constant 0 : index
    %c0_101 = arith.constant 0 : index
    %123 = vector.load %arg9[%c0_100, %c0_101] : memref<16x128xf32, #tpu.memory_space<vmem>>, vector<15x128xf32>
    %124 = vector.extract_strided_slice %109 {offsets = [1, 0], sizes = [15, 128], strides = [1, 1]} : vector<16x128xbf16> to vector<15x128xbf16>
    %c2_102 = arith.constant 2 : index
    %c2_103 = arith.constant 2 : index
    %c0_104 = arith.constant 0 : index
    %c0_105 = arith.constant 0 : index
    %125 = vector.load %arg3[%c2_102, %c2_103, %c0_104, %c0_105] : memref<3x3x128x128xbf16, #tpu.memory_space<vmem>>, vector<1x1x128x128xbf16>
    %126 = vector.shape_cast %125 : vector<1x1x128x128xbf16> to vector<128x128xbf16>
    %cst_106 = arith.constant dense<0.000000e+00> : vector<15x128xf32>
    %127 = tpu.matmul %124, %126, %cst_106 {dimension_numbers = #tpu.dot_dimension_numbers<[1], [0], [0], [1], [0, 0, 1, 1], [], []>} : vector<15x128xbf16>, vector<128x128xbf16>, vector<15x128xf32> -> vector<15x128xf32>
    %128 = arith.addf %123, %127 : vector<15x128xf32>
    %c0_107 = arith.constant 0 : index
    %c0_108 = arith.constant 0 : index
    %129 = vector.load %arg9[%c0_107, %c0_108] : memref<16x128xf32, #tpu.memory_space<vmem>>, vector<15x128xf32>
    tpu.vector_store %arg9[%c0_107, %c0_108], %128 {strides = array<i32>} : memref<16x128xf32, #tpu.memory_space<vmem>>, vector<15x128xf32>,
    %c0_109 = arith.constant 0 : index
    %c0_110 = arith.constant 0 : index
    %130 = vector.load %arg9[%c0_109, %c0_110] : memref<16x128xf32, #tpu.memory_space<vmem>>, vector<16x128xf32>
    %131 = arith.truncf %130 : vector<16x128xf32> to vector<16x128xbf16>
    %c0_111 = arith.constant 0 : index
    %c0_112 = arith.constant 0 : index
    %c0_113 = arith.constant 0 : index
    %c0_114 = arith.constant 0 : index
    %132 = vector.load %arg6[%c0_111, %c0_112, %c0_113, %c0_114] : memref<1x1x16x128xbf16, #tpu.memory_space<vmem>>, vector<1x1x16x128xbf16>
    %133 = vector.shape_cast %132 : vector<1x1x16x128xbf16> to vector<16x128xbf16>
    %134 = vector.shape_cast %131 : vector<16x128xbf16> to vector<1x1x16x128xbf16>
    tpu.vector_store %arg6[%c0_111, %c0_112, %c0_113, %c0_114], %134 {strides = array<i32>} : memref<1x1x16x128xbf16, #tpu.memory_space<vmem>>, vector<1x1x16x128xbf16>,
    %cst_115 = arith.constant dense<0.000000e+00> : vector<128xf32>
    %135 = vector.multi_reduction <add>, %130, %cst_115 [0] : vector<16x128xf32> to vector<128xf32>
    %136 = vector.shape_cast %135 : vector<128xf32> to vector<1x128xf32>
    %137 = vector.shape_cast %136 : vector<1x128xf32> to vector<1x128xf32>
    %138 = vector.broadcast %137 : vector<1x128xf32> to vector<8x128xf32>
    %c0_116 = arith.constant 0 : index
    %c0_117 = arith.constant 0 : index
    %c0_118 = arith.constant 0 : index
    %c0_119 = arith.constant 0 : index
    %139 = vector.load %arg7[%c0_116, %c0_117, %c0_118, %c0_119] : memref<1x1x8x128xf32, #tpu.memory_space<vmem>>, vector<1x1x8x128xf32>
    %140 = vector.shape_cast %139 : vector<1x1x8x128xf32> to vector<8x128xf32>
    %141 = vector.shape_cast %138 : vector<8x128xf32> to vector<1x1x8x128xf32>
    tpu.vector_store %arg7[%c0_116, %c0_117, %c0_118, %c0_119], %141 {strides = array<i32>} : memref<1x1x8x128xf32, #tpu.memory_space<vmem>>, vector<1x1x8x128xf32>,
    %142 = arith.mulf %130, %130 : vector<16x128xf32>
    %cst_120 = arith.constant dense<0.000000e+00> : vector<128xf32>
    %143 = vector.multi_reduction <add>, %142, %cst_120 [0] : vector<16x128xf32> to vector<128xf32>
    %144 = vector.shape_cast %143 : vector<128xf32> to vector<1x128xf32>
    %145 = vector.shape_cast %144 : vector<1x128xf32> to vector<1x128xf32>
    %146 = vector.broadcast %145 : vector<1x128xf32> to vector<8x128xf32>
    %c0_121 = arith.constant 0 : index
    %c0_122 = arith.constant 0 : index
    %c0_123 = arith.constant 0 : index
    %c0_124 = arith.constant 0 : index
    %147 = vector.load %arg8[%c0_121, %c0_122, %c0_123, %c0_124] : memref<1x1x8x128xf32, #tpu.memory_space<vmem>>, vector<1x1x8x128xf32>
    %148 = vector.shape_cast %147 : vector<1x1x8x128xf32> to vector<8x128xf32>
    %149 = vector.shape_cast %146 : vector<8x128xf32> to vector<1x1x8x128xf32>
    tpu.vector_store %arg8[%c0_121, %c0_122, %c0_123, %c0_124], %149 {strides = array<i32>} : memref<1x1x8x128xf32, #tpu.memory_space<vmem>>, vector<1x1x8x128xf32>,
    return
  }
  func.func @transform_0(%arg0: i32, %arg1: i32) -> (i32, i32, i32, i32) {
    %c0_i32 = arith.constant 0 : i32
    %c0_i32_0 = arith.constant 0 : i32
    %c0_i32_1 = arith.constant 0 : i32
    %c0_i32_2 = arith.constant 0 : i32
    return %arg0, %c0_i32, %c0_i32_0, %c0_i32_1 : i32, i32, i32, i32
  }
  func.func @transform_1(%arg0: i32, %arg1: i32) -> (i32, i32, i32, i32) {
    %c0_i32 = arith.constant 0 : i32
    %c0_i32_0 = arith.constant 0 : i32
    %c0_i32_1 = arith.constant 0 : i32
    %c0_i32_2 = arith.constant 0 : i32
    %c0_i32_3 = arith.constant 0 : i32
    return %c0_i32, %c0_i32_0, %c0_i32_1, %c0_i32_2 : i32, i32, i32, i32
  }
  func.func @transform_2(%arg0: i32, %arg1: i32) -> (i32, i32) {
    %c0_i32 = arith.constant 0 : i32
    %c0_i32_0 = arith.constant 0 : i32
    %c0_i32_1 = arith.constant 0 : i32
    return %c0_i32, %c0_i32_0 : i32, i32
  }
  func.func @transform_3(%arg0: i32, %arg1: i32) -> (i32, i32) {
    %c0_i32 = arith.constant 0 : i32
    %c0_i32_0 = arith.constant 0 : i32
    %c0_i32_1 = arith.constant 0 : i32
    return %c0_i32, %c0_i32_0 : i32, i32
  }
  func.func @transform_4(%arg0: i32, %arg1: i32) -> (i32, i32, i32, i32) {
    %c0_i32 = arith.constant 0 : i32
    %c0_i32_0 = arith.constant 0 : i32
    %c0_i32_1 = arith.constant 0 : i32
    return %arg0, %arg1, %c0_i32, %c0_i32_0 : i32, i32, i32, i32
  }
  func.func @transform_5(%arg0: i32, %arg1: i32) -> (i32, i32, i32, i32) {
    %c0_i32 = arith.constant 0 : i32
    %c0_i32_0 = arith.constant 0 : i32
    %c0_i32_1 = arith.constant 0 : i32
    return %arg0, %arg1, %c0_i32, %c0_i32_0 : i32, i32, i32, i32
  }
  func.func @transform_6(%arg0: i32, %arg1: i32) -> (i32, i32, i32, i32) {
    %c0_i32 = arith.constant 0 : i32
    %c0_i32_0 = arith.constant 0 : i32
    %c0_i32_1 = arith.constant 0 : i32
    return %arg0, %arg1, %c0_i32, %c0_i32_0 : i32, i32, i32, i32
  }
}

module attributes {stable_mosaic.version = 11 : i64} {
  func.func @_bn_relu_kernel(%arg0: i32, %arg1: memref<128x128xbf16, #tpu.memory_space<vmem>>, %arg2: memref<1x128xf32, #tpu.memory_space<vmem>>, %arg3: memref<1x128xf32, #tpu.memory_space<vmem>>, %arg4: memref<128x128xf32, #tpu.memory_space<vmem>>) attributes {dimension_semantics = [#tpu.dimension_semantics<parallel>], iteration_bounds = array<i64: 1>, scalar_prefetch = 0 : i64, scratch_operands = 0 : i64, tpu.core_type = #tpu.core_type<tc>, window_params = [{transform_indices = @transform_0, window_bounds = array<i64: 128, 128>}, {pipeline_mode = #tpu.pipeline_mode<synchronous>, transform_indices = @transform_1, window_bounds = array<i64: 1, 128>}, {pipeline_mode = #tpu.pipeline_mode<synchronous>, transform_indices = @transform_2, window_bounds = array<i64: 1, 128>}, {transform_indices = @transform_3, window_bounds = array<i64: 128, 128>}]} {
    %c0 = arith.constant 0 : index
    %c0_0 = arith.constant 0 : index
    %0 = vector.load %arg1[%c0, %c0_0] : memref<128x128xbf16, #tpu.memory_space<vmem>>, vector<128x128xbf16>
    %1 = arith.extf %0 : vector<128x128xbf16> to vector<128x128xf32>
    %c0_1 = arith.constant 0 : index
    %c0_2 = arith.constant 0 : index
    %2 = vector.load %arg2[%c0_1, %c0_2] : memref<1x128xf32, #tpu.memory_space<vmem>>, vector<1x128xf32>
    %3 = vector.broadcast %2 : vector<1x128xf32> to vector<128x128xf32>
    %4 = arith.mulf %1, %3 : vector<128x128xf32>
    %c0_3 = arith.constant 0 : index
    %c0_4 = arith.constant 0 : index
    %5 = vector.load %arg3[%c0_3, %c0_4] : memref<1x128xf32, #tpu.memory_space<vmem>>, vector<1x128xf32>
    %6 = vector.broadcast %5 : vector<1x128xf32> to vector<128x128xf32>
    %7 = arith.addf %4, %6 : vector<128x128xf32>
    %cst = arith.constant 0.000000e+00 : f32
    %8 = vector.broadcast %cst : f32 to vector<128x128xf32>
    %9 = arith.maximumf %7, %8 : vector<128x128xf32>
    %c0_5 = arith.constant 0 : index
    %c0_6 = arith.constant 0 : index
    %10 = vector.load %arg4[%c0_5, %c0_6] : memref<128x128xf32, #tpu.memory_space<vmem>>, vector<128x128xf32>
    tpu.vector_store %arg4[%c0_5, %c0_6], %9 {strides = array<i32>} : memref<128x128xf32, #tpu.memory_space<vmem>>, vector<128x128xf32>,
    return
  }
  func.func @transform_0(%arg0: i32) -> (i32, i32) {
    %c0_i32 = arith.constant 0 : i32
    %c0_i32_0 = arith.constant 0 : i32
    return %arg0, %c0_i32 : i32, i32
  }
  func.func @transform_1(%arg0: i32) -> (i32, i32) {
    %c0_i32 = arith.constant 0 : i32
    %c0_i32_0 = arith.constant 0 : i32
    %c0_i32_1 = arith.constant 0 : i32
    return %c0_i32, %c0_i32_0 : i32, i32
  }
  func.func @transform_2(%arg0: i32) -> (i32, i32) {
    %c0_i32 = arith.constant 0 : i32
    %c0_i32_0 = arith.constant 0 : i32
    %c0_i32_1 = arith.constant 0 : i32
    return %c0_i32, %c0_i32_0 : i32, i32
  }
  func.func @transform_3(%arg0: i32) -> (i32, i32) {
    %c0_i32 = arith.constant 0 : i32
    %c0_i32_0 = arith.constant 0 : i32
    return %arg0, %c0_i32 : i32, i32
  }
}

</mosaic_0001>

<bundles_post_ra>
// kernel: tile.28
= control target key start
LH: loop header
LB: loop body
LE: loop exit
PB: predicated region body
PF: predicated region fallthrough
CT: control target
= control target key end

     0   :  { %s40_s0 = inlined_call_operand.vmem [shape: f32[8], index: 0, kind: input, shape index: {}]   ;;  %s41_s1 = inlined_call_operand.vmem [shape: f32[32,8], index: 1, kind: output, shape index: {}]  }
   0x1   :  { %v4_v0 = vld [vmem:[%s40_s0] ss:$0 sm:$0xff] }
   0x2   :  { %5 = vst [vmem:[%s41_s1] sm:$0xff] %v4_v0  ;;  %12 = vst [vmem:[%s41_s1 + $0x8] sm:$0xff] %v4_v0 }
   0x3   :  { %13 = vst [vmem:[%s41_s1 + $0x10] sm:$0xff] %v4_v0  ;;  %14 = vst [vmem:[%s41_s1 + $0x18] sm:$0xff] %v4_v0 }

// kernel: tile.29
= control target key start
LH: loop header
LB: loop body
LE: loop exit
PB: predicated region body
PF: predicated region fallthrough
CT: control target
= control target key end

     0   :  { %s7_s6 = smov 3  ;;  %s21_s9 = smov 3  ;;  %vm4_vm0 = vcmask 64512   ;;  %vm11_vm1 = vcmask 1048512   ;;  %vm18_vm2 = vcmask 982912   ;;  %vm25_vm3 = vcmask 917312   ;;  %s232_s0 = inlined_call_operand.vmem [shape: f32[32,8], index: 0, kind: input, shape index: {}]   ;;  %s233_s1 = inlined_call_operand.vmem [shape: f32[1,256], index: 1, kind: output, shape index: {}]  }
   0x1   :  { %v122_v0 = vld [vmem:[%s232_s0 + $0xf] ss:$16 sm:%s7_s6]   ;;  %s153_s10 = smov 120   ;;  %v124_v1 = vld [vmem:[%s232_s0 + $0xd] ss:$16 sm:%s21_s9]   ;;  %s14_s13 = smov 3 }
   0x2   :  { %9 = vrot.lane.b32.xlu0 %v122_v0, %s153_s10  ;;  %s154_s14 = smov 104   ;;  %v123_v2 = vld [vmem:[%s232_s0 + $0xe] ss:$16 sm:%s14_s13]   ;;  %s28_s17 = smov 3  ;;  %vm32_vm4 = vcmask 851712   ;;  %vm39_vm5 = vcmask 786112  }
   0x3   :  { %23 = vrot.lane.b32.xlu1 %v124_v1, %s154_s14  ;;  %v125_v3 = vld [vmem:[%s232_s0 + $0xc] ss:$16 sm:%s28_s17]   ;;  %s35_s20 = smov 3  ;;  %s42_s21 = smov 3  ;;  %vm46_vm6 = vcmask 720512   ;;  %vm53_vm7 = vcmask 654912  }
   0x4   :  { %s155_s22 = smov 112   ;;  %s156_s23 = smov 96   ;;  %v126_v4 = vld [vmem:[%s232_s0 + $0xb] ss:$16 sm:%s35_s20]   ;;  %v127_v5 = vld [vmem:[%s232_s0 + $0xa] ss:$16 sm:%s42_s21]  }
   0x5   :  { %s49_s28 = smov 3  ;;  %s56_s29 = smov 3  ;;  %vm60_vm8 = vcmask 589312   ;;  %vm67_vm9 = vcmask 523712   ;;  %vm74_vm10 = vcmask 458112   ;;  %vm81_vm11 = vcmask 392512  }
   0x6   :  { %16 = vrot.lane.b32.xlu0 %v123_v2, %s155_s22  ;;  %s157_s30 = smov 88   ;;  %s158_s2 = smov 80   ;;  %v128_v6 = vld [vmem:[%s232_s0 + $0x9] ss:$16 sm:%s49_s28]   ;;  %vm88_vm12 = vcmask 326912   ;;  %vm95_vm13 = vcmask 261312  }
   0x7   :  { %30 = vrot.lane.b32.xlu1 %v125_v3, %s156_s23  ;;  %v129_v7 = vld [vmem:[%s232_s0 + $0x8] ss:$16 sm:%s56_s29]   ;;  %s63_s7 = smov 3  ;;  %s70_s8 = smov 3  ;;  %vm102_vm14 = vcmask 195712   ;;  %vm109_vm15 = vcmask 130112  }
   0x8   :  { %s159_s9 = smov 72   ;;  %s160_s10 = smov 64   ;;  %v130_v8 = vld [vmem:[%s232_s0 + $0x7] ss:$16 sm:%s63_s7]   ;;  %v131_v9 = vld [vmem:[%s232_s0 + $0x6] ss:$16 sm:%s70_s8]  }
   0x9   :  { %s2_s13 = smov 3  ;;  %s77_s16 = smov 3 }
   0xa   :  { %37 = vrot.lane.b32.xlu0 %v126_v4, %s157_s30  ;;  %v3_v10 = vld [vmem:[%s232_s0] ss:$16 sm:%s2_s13]   ;;  %s84_s19 = smov 3  ;;  %s161_s20 = smov 56  }
   0xb   :  { %44 = vrot.lane.b32.xlu1 %v127_v5, %s158_s2  ;;  %5 = vst.msk [vmem:[#allocation0] ss:$8 sm:$0x3] %vm4_vm0, %v3_v10   ;;  %s162_s21 = smov 48   ;;  %v132_v11 = vld [vmem:[%s232_s0 + $0x5] ss:$16 sm:%s77_s16]  }
   0xc   :  { %v133_v12 = vld [vmem:[%s232_s0 + $0x4] ss:$16 sm:%s84_s19]   ;;  %s91_s26 = smov 3  ;;  %s98_s27 = smov 3 }
   0xd   :  { %s163_s28 = smov 40   ;;  %s164_s29 = smov 32   ;;  %v134_v13 = vld [vmem:[%s232_s0 + $0x3] ss:$16 sm:%s91_s26]   ;;  %v135_v14 = vld [vmem:[%s232_s0 + $0x2] ss:$16 sm:%s98_s27]  }
   0xe   :  { %51 = vrot.lane.b32.xlu0 %v128_v6, %s159_s9  ;;  %s105_s5 = smov 3  ;;  %s165_s6 = smov 24  }
   0xf   :  { %58 = vrot.lane.b32.xlu1 %v129_v7, %s160_s10  ;;  %s166_s7 = smov 16   ;;  %v136_v15 = vld [vmem:[%s232_s0 + $0x1] ss:$16 sm:%s105_s5]   ;;  %s167_s0 = smov 8  }
  0x12   :  { %65 = vrot.lane.b32.xlu0 %v130_v8, %s161_s20 }
  0x13   :  { %72 = vrot.lane.b32.xlu1 %v131_v9, %s162_s21 }
  0x16   :  { %79 = vrot.lane.b32.xlu0 %v132_v11, %s163_s28 }
  0x17   :  { %86 = vrot.lane.b32.xlu1 %v133_v12, %s164_s29 }
  0x1a   :  { %93 = vrot.lane.b32.xlu0 %v134_v13, %s165_s6 }
  0x1b   :  { %100 = vrot.lane.b32.xlu1 %v135_v14, %s166_s7 }
  0x1e   :  { %107 = vrot.lane.b32.xlu0 %v136_v15, %s167_s0 }
  0x74   :  { %v10_v16 = vpop.permute.xlu0 %9  }
  0x75   :  { %12 = vst.msk [vmem:[#allocation0] ss:$8 sm:$0x3] %vm11_vm1, %v10_v16   ;;  %v24_v17 = vpop.permute.xlu1 %23  }
  0x78   :  { %v17_v18 = vpop.permute.xlu0 %16  }
  0x79   :  { %19 = vst.msk [vmem:[#allocation0] ss:$8 sm:$0x3] %vm18_vm2, %v17_v18   ;;  %v31_v19 = vpop.permute.xlu1 %30  }
  0x7a   :  { %26 = vst.msk [vmem:[#allocation0] ss:$8 sm:$0x3] %vm25_vm3, %v24_v17  }
  0x7b   :  { %33 = vst.msk [vmem:[#allocation0] ss:$8 sm:$0x3] %vm32_vm4, %v31_v19  }
  0x7c   :  { %v38_v20 = vpop.permute.xlu0 %37  }
  0x7d   :  { %40 = vst.msk [vmem:[#allocation0] ss:$8 sm:$0x3] %vm39_vm5, %v38_v20   ;;  %v45_v21 = vpop.permute.xlu1 %44  }
  0x7e   :  { %47 = vst.msk [vmem:[#allocation0] ss:$8 sm:$0x3] %vm46_vm6, %v45_v21  }
  0x80   :  { %v52_v22 = vpop.permute.xlu0 %51  }
  0x81   :  { %54 = vst.msk [vmem:[#allocation0] ss:$8 sm:$0x3] %vm53_vm7, %v52_v22   ;;  %v59_v23 = vpop.permute.xlu1 %58  }
  0x82   :  { %61 = vst.msk [vmem:[#allocation0] ss:$8 sm:$0x3] %vm60_vm8, %v59_v23  }
  0x84   :  { %v66_v24 = vpop.permute.xlu0 %65  }
  0x85   :  { %68 = vst.msk [vmem:[#allocation0] ss:$8 sm:$0x3] %vm67_vm9, %v66_v24   ;;  %v73_v25 = vpop.permute.xlu1 %72  }
  0x86   :  { %75 = vst.msk [vmem:[#allocation0] ss:$8 sm:$0x3] %vm74_vm10, %v73_v25  }
  0x88   :  { %v80_v26 = vpop.permute.xlu0 %79  }
  0x89   :  { %82 = vst.msk [vmem:[#allocation0] ss:$8 sm:$0x3] %vm81_vm11, %v80_v26   ;;  %v87_v27 = vpop.permute.xlu1 %86  }
  0x8a   :  { %89 = vst.msk [vmem:[#allocation0] ss:$8 sm:$0x3] %vm88_vm12, %v87_v27  }
  0x8c   :  { %v94_v28 = vpop.permute.xlu0 %93  }
  0x8d   :  { %96 = vst.msk [vmem:[#allocation0] ss:$8 sm:$0x3] %vm95_vm13, %v94_v28   ;;  %v101_v29 = vpop.permute.xlu1 %100  }
  0x8e   :  { %103 = vst.msk [vmem:[#allocation0] ss:$8 sm:$0x3] %vm102_vm14, %v101_v29  }
  0x90   :  { %v108_v30 = vpop.permute.xlu0 %107  }
  0x91   :  { %110 = vst.msk [vmem:[#allocation0] ss:$8 sm:$0x3] %vm109_vm15, %v108_v30  }
  0x98   :  { %v114_v31 = vld [vmem:[#allocation0] sm:$0x1]  ;;  %v118_v32 = vld [vmem:[#allocation0 + $0x8] sm:$0x1] }
  0x99   :  { %116 = vst [vmem:[%s233_s1] sm:$0x1] %v114_v31  ;;  %137 = vst [vmem:[%s233_s1 + $0x1] sm:$0x1] %v118_v32 }

// kernel: decoder_block3d_forward.4
= control target key start
LH: loop header
LB: loop body
LE: loop exit
PB: predicated region body
PF: predicated region fallthrough
CT: control target
= control target key end

     0   :  { %v369_v1 = vmov 0   ;;  %v41_v21 = vlaneseq  ;;  %s477_s1 = inlined_call_operand.vmem [shape: bf16[128,256], index: 1, kind: input, shape index: {}]   ;;  %s478_s0 = inlined_call_operand.vmem [shape: bf16[64,128], index: 0, kind: input, shape index: {}]   ;;  %s479_s2 = inlined_call_operand.vmem [shape: f32[1,256], index: 2, kind: input, shape index: {}]   ;;  %s480_s3 = inlined_call_operand.vmem [shape: bf16[64,256], index: 3, kind: output, shape index: {}]  }
   0x1   :  { %v341_v0 = vld [vmem:[%s477_s1 + $0x4] ss:$8 sps:$4 sm:$0xff]   ;;  %187 = vmatprep.mubr.bf16.mxu0 %v369_v1  ;;  %207 = vmatprep.mubr.bf16.mxu1 %v369_v1  ;;  %v343_v2 = vld [vmem:[%s477_s1] ss:$8 sps:$4 sm:$0xff]   ;;  %v344_v3 = vld [vmem:[%s477_s1 + $0x14] ss:$8 sps:$4 sm:$0xff]  }
   0x2   :  { %155 = vmatprep.subr.bf16.mxu0 %v341_v0  ;;  %324 = vmatprep.subr.bf16.mxu1 %v341_v0  ;;  %v346_v4 = vld [vmem:[%s477_s1 + $0x10] ss:$8 sps:$4 sm:$0xff]   ;;  %v347_v5 = vld [vmem:[%s477_s1 + $0x24] ss:$8 sps:$4 sm:$0xff]   ;;  %v349_v6 = vld [vmem:[%s477_s1 + $0x20] ss:$8 sps:$4 sm:$0xff]  }
   0x3   :  { %156 = vmatpush1.bf16.msra.mxu0 %v343_v2  ;;  %332 = vmatpush1.bf16.msra.mxu1 %v343_v2  ;;  %v350_v7 = vld [vmem:[%s477_s1 + $0x34] ss:$8 sps:$4 sm:$0xff]   ;;  %v352_v8 = vld [vmem:[%s477_s1 + $0x30] ss:$8 sps:$4 sm:$0xff]   ;;  %v353_v9 = vld [vmem:[%s477_s1 + $0x44] ss:$8 sps:$4 sm:$0xff]  }
   0x4   :  { %157 = vmatprep.subr.bf16.mxu0 %v344_v3  ;;  %325 = vmatprep.subr.bf16.mxu1 %v344_v3  ;;  %v355_v10 = vld [vmem:[%s477_s1 + $0x40] ss:$8 sps:$4 sm:$0xff]   ;;  %v356_v11 = vld [vmem:[%s477_s1 + $0x54] ss:$8 sps:$4 sm:$0xff]   ;;  %v358_v12 = vld [vmem:[%s477_s1 + $0x50] ss:$8 sps:$4 sm:$0xff]  }
   0x5   :  { %v359_v13 = vld [vmem:[%s477_s1 + $0x64] ss:$8 sps:$4 sm:$0xff]   ;;  %v361_v14 = vld [vmem:[%s477_s1 + $0x60] ss:$8 sps:$4 sm:$0xff]   ;;  %v362_v15 = vld [vmem:[%s477_s1 + $0x74] ss:$8 sps:$4 sm:$0xff]  }
   0x6   :  { %v364_v16 = vld [vmem:[%s477_s1 + $0x70] ss:$8 sps:$4 sm:$0xff]   ;;  %v365_v17 = vld [vmem:[%s478_s0] sm:$0xff]   ;;  %v367_v19 = vld [vmem:[%s478_s0 + $0x8] sm:$0xff]   ;;  %v42_v22 = vshrl.u32 %v41_v21, 7 }
   0x7   :  { %158 = vmatpush1.bf16.msra.mxu0 %v346_v4  ;;  %333 = vmatpush1.bf16.msra.mxu1 %v346_v4  ;;  %v366_v18 = vld [vmem:[%s478_s0 + $0x10] sm:$0xff]   ;;  %v368_v20 = vld [vmem:[%s478_s0 + $0x18] sm:$0xff]   ;;  %v39_v24 = vld [vmem:[%s479_s2] sm:$0x3] }
   0x8   :  { %159 = vmatprep.subr.bf16.mxu0 %v347_v5  ;;  %326 = vmatprep.subr.bf16.mxu1 %v347_v5  ;;  %v43_v23 = vsub.s32 0, %v42_v22  ;;  %v47_v25 = vsub.s32 1, %v42_v22 }
   0xa   :  { %v44_v26 = vrot.slane %v39_v24, %v43_v23  ;;  %v48_v27 = vrot.slane %v39_v24, %v47_v25 }
   0xb   :  { %160 = vmatpush1.bf16.msra.mxu0 %v349_v6  ;;  %334 = vmatpush1.bf16.msra.mxu1 %v349_v6 }
   0xc   :  { %161 = vmatprep.subr.bf16.mxu0 %v350_v7  ;;  %327 = vmatprep.subr.bf16.mxu1 %v350_v7 }
   0xf   :  { %162 = vmatpush1.bf16.msra.mxu0 %v352_v8  ;;  %335 = vmatpush1.bf16.msra.mxu1 %v352_v8 }
  0x10   :  { %163 = vmatprep.subr.bf16.mxu0 %v353_v9  ;;  %328 = vmatprep.subr.bf16.mxu1 %v353_v9 }
  0x13   :  { %164 = vmatpush1.bf16.msra.mxu0 %v355_v10  ;;  %336 = vmatpush1.bf16.msra.mxu1 %v355_v10 }
  0x14   :  { %165 = vmatprep.subr.bf16.mxu0 %v356_v11  ;;  %329 = vmatprep.subr.bf16.mxu1 %v356_v11 }
  0x17   :  { %166 = vmatpush1.bf16.msra.mxu0 %v358_v12  ;;  %337 = vmatpush1.bf16.msra.mxu1 %v358_v12 }
  0x18   :  { %167 = vmatprep.subr.bf16.mxu0 %v359_v13  ;;  %330 = vmatprep.subr.bf16.mxu1 %v359_v13 }
  0x1b   :  { %168 = vmatpush1.bf16.msra.mxu0 %v361_v14  ;;  %338 = vmatpush1.bf16.msra.mxu1 %v361_v14 }
  0x1c   :  { %169 = vmatprep.subr.bf16.mxu0 %v362_v15  ;;  %331 = vmatprep.subr.bf16.mxu1 %v362_v15 }
  0x1f   :  { %170 = vmatpush1.bf16.msra.mxu0 %v364_v16  ;;  %339 = vmatpush1.bf16.msra.mxu1 %v364_v16 }
  0x22   :  { %188 = vmatmul.mubr.bf16.vlgmr.msra.gmra.mrb[0].mxu0 %v365_v17  ;;  %208 = vmatmul.mubr.bf16.vlgmr.msra.gmra.mrb[0].mxu1 %v366_v18 }
  0x23   :  { %197 = vmatprep.mubr.bf16.mxu0 %v369_v1  ;;  %217 = vmatprep.mubr.bf16.mxu1 %v369_v1 }
  0x2a   :  { %198 = vmatmul.mubr.bf16.gmra.mrb[4].mxu0 %v367_v19  ;;  %218 = vmatmul.mubr.bf16.gmra.mrb[4].mxu1 %v368_v20 }
  0xf5   :  { %v189_v28 = vpop.f32.mrb[0].mxu0  ;;  %v209_v29 = vpop.f32.mrb[0].mxu1 }
  0xf6   :  { %v190_v30 = vadd.f32 %v189_v28, %v44_v26  ;;  %v210_v31 = vadd.f32 %v209_v29, %v44_v26  ;;  %v191_v32 = vpop.f32.mrb[1].mxu0  ;;  %v211_v33 = vpop.f32.mrb[1].mxu1 }
  0xf7   :  { %v192_v34 = vadd.f32 %v191_v32, %v48_v27  ;;  %v212_v35 = vadd.f32 %v211_v33, %v48_v27  ;;  %v193_v36 = vpop.f32.mrb[2].mxu0  ;;  %v213_v37 = vpop.f32.mrb[2].mxu1 }
  0xf8   :  { %v194_v38 = vadd.f32 %v193_v36, %v44_v26  ;;  %v214_v39 = vadd.f32 %v213_v37, %v44_v26  ;;  %v195_v40 = vpop.f32.mrb[3].mxu0  ;;  %v215_v41 = vpop.f32.mrb[3].mxu1 }
  0xf9   :  { %v316_v42 = vpack.c.bf16 %v192_v34, %v190_v30  ;;  %v320_v43 = vpack.c.bf16 %v212_v35, %v210_v31  ;;  %v196_v44 = vadd.f32 %v195_v40, %v48_v27  ;;  %v216_v45 = vadd.f32 %v215_v41, %v48_v27 }
  0xfb   :  { %276 = vst [vmem:[%s480_s3] sm:$0xff] %v316_v42  ;;  %280 = vst [vmem:[%s480_s3 + $0x20] sm:$0xff] %v320_v43  ;;  %v317_v46 = vpack.c.bf16 %v196_v44, %v194_v38  ;;  %v321_v47 = vpack.c.bf16 %v216_v45, %v214_v39 }
  0xfd   :  { %277 = vst [vmem:[%s480_s3 + $0x8] sm:$0xff] %v317_v46  ;;  %281 = vst [vmem:[%s480_s3 + $0x28] sm:$0xff] %v321_v47  ;;  %v199_v48 = vpop.f32.mrb[4].mxu0  ;;  %v219_v49 = vpop.f32.mrb[4].mxu1 }
  0xfe   :  { %v200_v50 = vadd.f32 %v199_v48, %v44_v26  ;;  %v220_v51 = vadd.f32 %v219_v49, %v44_v26  ;;  %v201_v52 = vpop.f32.mrb[5].mxu0  ;;  %v221_v53 = vpop.f32.mrb[5].mxu1 }
  0xff   :  { %v202_v54 = vadd.f32 %v201_v52, %v48_v27  ;;  %v222_v55 = vadd.f32 %v221_v53, %v48_v27  ;;  %v203_v56 = vpop.f32.mrb[6].mxu0  ;;  %v223_v57 = vpop.f32.mrb[6].mxu1 }
 0x100   :  { %v204_v58 = vadd.f32 %v203_v56, %v44_v26  ;;  %v224_v59 = vadd.f32 %v223_v57, %v44_v26  ;;  %v205_v60 = vpop.f32.mrb[7].mxu0  ;;  %v225_v61 = vpop.f32.mrb[7].mxu1 }
 0x101   :  { %v318_v62 = vpack.c.bf16 %v202_v54, %v200_v50  ;;  %v322_v63 = vpack.c.bf16 %v222_v55, %v220_v51  ;;  %v206_v0 = vadd.f32 %v205_v60, %v48_v27  ;;  %v226_v1 = vadd.f32 %v225_v61, %v48_v27 }
 0x103   :  { %278 = vst [vmem:[%s480_s3 + $0x10] sm:$0xff] %v318_v62  ;;  %282 = vst [vmem:[%s480_s3 + $0x30] sm:$0xff] %v322_v63  ;;  %v319_v2 = vpack.c.bf16 %v206_v0, %v204_v58  ;;  %v323_v3 = vpack.c.bf16 %v226_v1, %v224_v59 }
 0x105   :  { %279 = vst [vmem:[%s480_s3 + $0x18] sm:$0xff] %v319_v2  ;;  %283 = vst [vmem:[%s480_s3 + $0x38] sm:$0xff] %v323_v3 }

// kernel: tile.33
= control target key start
LH: loop header
LB: loop body
LE: loop exit
PB: predicated region body
PF: predicated region fallthrough
CT: control target
= control target key end

     0   :  { %s28_s0 = inlined_call_operand.vmem [shape: f32[8], index: 0, kind: input, shape index: {}]   ;;  %s29_s1 = inlined_call_operand.vmem [shape: f32[16,8], index: 1, kind: output, shape index: {}]  }
   0x1   :  { %v4_v0 = vld [vmem:[%s28_s0] ss:$0 sm:$0xff] }
   0x2   :  { %5 = vst [vmem:[%s29_s1] sm:$0xff] %v4_v0  ;;  %8 = vst [vmem:[%s29_s1 + $0x8] sm:$0xff] %v4_v0 }

// kernel: tile.34
= control target key start
LH: loop header
LB: loop body
LE: loop exit
PB: predicated region body
PF: predicated region fallthrough
CT: control target
= control target key end

     0   :  { %s131_s10 = smov 120   ;;  %s132_s11 = smov 104   ;;  %vm3_vm0 = vcmask 64512   ;;  %vm9_vm1 = vcmask 1048512   ;;  %vm15_vm2 = vcmask 982912   ;;  %vm21_vm3 = vcmask 917312   ;;  %s207_s0 = inlined_call_operand.vmem [shape: f32[16,8], index: 0, kind: input, shape index: {}]   ;;  %s208_s1 = inlined_call_operand.vmem [shape: f32[1,128], index: 1, kind: output, shape index: {}]  }
   0x1   :  { %v101_v0 = vld [vmem:[%s207_s0 + $0xf] sm:$0x1]   ;;  %v103_v1 = vld [vmem:[%s207_s0 + $0xd] sm:$0x1]   ;;  %v102_v2 = vld [vmem:[%s207_s0 + $0xe] sm:$0x1]  }
   0x2   :  { %7 = vrot.lane.b32.xlu0 %v101_v0, %s131_s10  ;;  %19 = vrot.lane.b32.xlu1 %v103_v1, %s132_s11  ;;  %v104_v3 = vld [vmem:[%s207_s0 + $0xc] sm:$0x1]   ;;  %s133_s16 = smov 112   ;;  %s134_s17 = smov 96   ;;  %v105_v4 = vld [vmem:[%s207_s0 + $0xb] sm:$0x1]  }
   0x3   :  { %v106_v5 = vld [vmem:[%s207_s0 + $0xa] sm:$0x1]   ;;  %v2_v6 = vld [vmem:[%s207_s0] sm:$0x1]   ;;  %s135_s24 = smov 88   ;;  %s136_s25 = smov 80  }
   0x4   :  { %4 = vst.msk [vmem:[#allocation0] sm:$0x1] %vm3_vm0, %v2_v6   ;;  %v107_v7 = vld [vmem:[%s207_s0 + $0x9] sm:$0x1]   ;;  %v108_v8 = vld [vmem:[%s207_s0 + $0x8] sm:$0x1]  }
   0x5   :  { %s137_s30 = smov 72   ;;  %s138_s2 = smov 64   ;;  %v109_v9 = vld [vmem:[%s207_s0 + $0x7] sm:$0x1]   ;;  %v110_v10 = vld [vmem:[%s207_s0 + $0x6] sm:$0x1]  }
   0x6   :  { %13 = vrot.lane.b32.xlu0 %v102_v2, %s133_s16  ;;  %25 = vrot.lane.b32.xlu1 %v104_v3, %s134_s17  ;;  %s139_s7 = smov 56   ;;  %s140_s8 = smov 48   ;;  %v111_v11 = vld [vmem:[%s207_s0 + $0x5] sm:$0x1]   ;;  %v112_v12 = vld [vmem:[%s207_s0 + $0x4] sm:$0x1]  }
   0x7   :  { %s141_s13 = smov 40   ;;  %s142_s14 = smov 32   ;;  %v113_v13 = vld [vmem:[%s207_s0 + $0x3] sm:$0x1]   ;;  %v114_v14 = vld [vmem:[%s207_s0 + $0x2] sm:$0x1]  }
   0x8   :  { %s143_s19 = smov 24   ;;  %s144_s20 = smov 16   ;;  %v115_v15 = vld [vmem:[%s207_s0 + $0x1] sm:$0x1]   ;;  %vm27_vm4 = vcmask 851712   ;;  %vm33_vm5 = vcmask 786112  }
   0x9   :  { %s145_s0 = smov 8   ;;  %vm39_vm6 = vcmask 720512   ;;  %vm45_vm7 = vcmask 654912   ;;  %vm51_vm8 = vcmask 589312   ;;  %vm57_vm9 = vcmask 523712  }
   0xa   :  { %31 = vrot.lane.b32.xlu0 %v105_v4, %s135_s24  ;;  %37 = vrot.lane.b32.xlu1 %v106_v5, %s136_s25  ;;  %vm63_vm10 = vcmask 458112   ;;  %vm69_vm11 = vcmask 392512   ;;  %vm75_vm12 = vcmask 326912   ;;  %vm81_vm13 = vcmask 261312  }
   0xb   :  { %vm87_vm14 = vcmask 195712   ;;  %vm93_vm15 = vcmask 130112  }
   0xe   :  { %43 = vrot.lane.b32.xlu0 %v107_v7, %s137_s30  ;;  %49 = vrot.lane.b32.xlu1 %v108_v8, %s138_s2 }
  0x12   :  { %55 = vrot.lane.b32.xlu0 %v109_v9, %s139_s7  ;;  %61 = vrot.lane.b32.xlu1 %v110_v10, %s140_s8 }
  0x16   :  { %67 = vrot.lane.b32.xlu0 %v111_v11, %s141_s13  ;;  %73 = vrot.lane.b32.xlu1 %v112_v12, %s142_s14 }
  0x1a   :  { %79 = vrot.lane.b32.xlu0 %v113_v13, %s143_s19  ;;  %85 = vrot.lane.b32.xlu1 %v114_v14, %s144_s20 }
  0x1e   :  { %91 = vrot.lane.b32.xlu0 %v115_v15, %s145_s0 }
  0x74   :  { %v8_v16 = vpop.permute.xlu0 %7   ;;  %v20_v17 = vpop.permute.xlu1 %19  }
  0x75   :  { %10 = vst.msk [vmem:[#allocation0] sm:$0x1] %vm9_vm1, %v8_v16  }
  0x78   :  { %v14_v18 = vpop.permute.xlu0 %13   ;;  %v26_v19 = vpop.permute.xlu1 %25  }
  0x79   :  { %16 = vst.msk [vmem:[#allocation0] sm:$0x1] %vm15_vm2, %v14_v18  }
  0x7a   :  { %22 = vst.msk [vmem:[#allocation0] sm:$0x1] %vm21_vm3, %v20_v17  }
  0x7b   :  { %28 = vst.msk [vmem:[#allocation0] sm:$0x1] %vm27_vm4, %v26_v19  }
  0x7c   :  { %v32_v20 = vpop.permute.xlu0 %31   ;;  %v38_v21 = vpop.permute.xlu1 %37  }
  0x7d   :  { %34 = vst.msk [vmem:[#allocation0] sm:$0x1] %vm33_vm5, %v32_v20  }
  0x7e   :  { %40 = vst.msk [vmem:[#allocation0] sm:$0x1] %vm39_vm6, %v38_v21  }
  0x80   :  { %v44_v22 = vpop.permute.xlu0 %43   ;;  %v50_v23 = vpop.permute.xlu1 %49  }
  0x81   :  { %46 = vst.msk [vmem:[#allocation0] sm:$0x1] %vm45_vm7, %v44_v22  }
  0x82   :  { %52 = vst.msk [vmem:[#allocation0] sm:$0x1] %vm51_vm8, %v50_v23  }
  0x84   :  { %v56_v24 = vpop.permute.xlu0 %55   ;;  %v62_v25 = vpop.permute.xlu1 %61  }
  0x85   :  { %58 = vst.msk [vmem:[#allocation0] sm:$0x1] %vm57_vm9, %v56_v24  }
  0x86   :  { %64 = vst.msk [vmem:[#allocation0] sm:$0x1] %vm63_vm10, %v62_v25  }
  0x88   :  { %v68_v26 = vpop.permute.xlu0 %67   ;;  %v74_v27 = vpop.permute.xlu1 %73  }
  0x89   :  { %70 = vst.msk [vmem:[#allocation0] sm:$0x1] %vm69_vm11, %v68_v26  }
  0x8a   :  { %76 = vst.msk [vmem:[#allocation0] sm:$0x1] %vm75_vm12, %v74_v27  }
  0x8c   :  { %v80_v28 = vpop.permute.xlu0 %79   ;;  %v86_v29 = vpop.permute.xlu1 %85  }
  0x8d   :  { %82 = vst.msk [vmem:[#allocation0] sm:$0x1] %vm81_vm13, %v80_v28  }
  0x8e   :  { %88 = vst.msk [vmem:[#allocation0] sm:$0x1] %vm87_vm14, %v86_v29  }
  0x90   :  { %v92_v30 = vpop.permute.xlu0 %91  }
  0x91   :  { %94 = vst.msk [vmem:[#allocation0] sm:$0x1] %vm93_vm15, %v92_v30  }
  0x98   :  { %v98_v31 = vld [vmem:[#allocation0] sm:$0x1] }
  0x99   :  { %100 = vst [vmem:[%s208_s1] sm:$0x1] %v98_v31 }

// kernel: decoder_block3d_forward.5
= control target key start
LH: loop header
LB: loop body
LE: loop exit
PB: predicated region body
PF: predicated region fallthrough
CT: control target
= control target key end

     0   :  { %s4043_s21 = smov 0   ;;  %s4045_s22 = smov 0   ;;  %s4860_s0 = inlined_call_operand.vmem [shape: bf16[2,4,16,128], index: 0, kind: input, shape index: {}]   ;;  %s4861_s1 = inlined_call_operand.vmem [shape: bf16[2,4,16,128], index: 1, kind: input, shape index: {}]   ;;  %s4862_s2 = inlined_call_operand.vmem [shape: bf16[3,3,128,128], index: 2, kind: input, shape index: {}]   ;;  %s4863_s3 = inlined_call_operand.vmem [shape: bf16[3,3,128,128], index: 3, kind: input, shape index: {}]   ;;  %s4864_s4 = inlined_call_operand.vmem [shape: bf16[2,4,16,128], index: 4, kind: output, shape index: {0}]   ;;  %s4865_s5 = inlined_call_operand.vmem [shape: f32[2,4,8,128], index: 5, kind: output, shape index: {1}]   ;;  %s4866_s6 = inlined_call_operand.vmem [shape: f32[2,4,8,128], index: 6, kind: output, shape index: {2}]  }
   0x1   :  { %s4047_s23 = smov 0   ;;  %s4049_s24 = smov 0  }
   0x2   :  { %s4051_s25 = smov 0  }
   0x3 LB: > { %s26_s26 = sadd.s32 1, %s3996_s23  ;;  %s29_s27 = sadd.s32 1, %s4000_s24  ;;  %s4004_s25 = sphi %s4051_s25, %s17_s25   ;;  %s4000_s24 = sphi %s4049_s24, %s4872_s24   ;;  %s3996_s23 = sphi %s4047_s23, %s4871_s23   ;;  %s3992_s22 = sphi %s4045_s22, %s4870_s22   ;;  %s3988_s21 = sphi %s4043_s21, %s4869_s21  }
   0x4   : > { %p27_p0 = scmp.ge.s32.totalorder %s26_s26, 4  ;;  %p2787_p1 = scmp.ge.s32.totalorder %s4004_s25, 1 }
   0x5   : > { %p245_p2 = scmp.lt.s32.totalorder %s4004_s25, 9 }
   0x6   : > { %s4874_s26 = smov (%p27_p0, %s26_s26), 0  ;;  %s4876_s27 = smov (!%p27_p0, %s29_s27), %s4000_s24 }
   0x7   : > { %p246_p3 = pnand %p2787_p1, %p245_p2  ;;  %p31_p4 = scmp.ge.s32.totalorder %s4876_s27, 2 }
   0x8   : > { %v3821_v0 = vld [vmem:[%s4862_s2] sm:$0xff] (!%p246_p3)   ;;  %v4006_v1 = vmov (!%p246_p3), 0.0   ;;  %v3822_v2 = vld [vmem:[%s4862_s2 + $0x8] sm:$0xff] (!%p246_p3)   ;;  %vm4007_vm0 = vmmov (!%p246_p3), 0   ;;  %p300_p5 = scmp.lt.s32.totalorder (!%p246_p3), %s3992_s22, 1  ;;  %s338_s12 = sadd.s32 (!%p246_p3), 4294967295, %s3988_s21 }
   0x9   : > { %s4878_s27 = smov (%p31_p4, %s4876_s27), 0  ;;  %249 = sbr.rel (%p246_p3) target bundleno = 549 (0x225), region = 36 }
   0xa   : > { %3419 = vmatprep.subr.bf16.mxu0 (!%p246_p3), %v4006_v1  ;;  %336 = vst [vmem:[#allocation2] sm:$0xff] (!%p246_p3), %v4006_v1  ;;  %337 = vst [vmem:[#allocation2 + $0x8] sm:$0xff] (!%p246_p3), %v4006_v1  ;;  %3439 = vmatprep.subr.bf16.mxu1 (!%p246_p3), %v4006_v1  ;;  %v3823_v3 = vld [vmem:[%s4862_s2 + $0x40] sm:$0xff] (!%p246_p3)   ;;  %v3825_v4 = vld [vmem:[%s4862_s2 + $0x48] sm:$0xff] (!%p246_p3)   ;;  %p339_p6 = scmp.gt.s32.totalorder (!%p246_p3), %s338_s12, 0  ;;  %p2799_p7 = scmp.lt.s32.totalorder (!%p246_p3), %s338_s12, 3 }
   0xb   : > { %3420 = vmatpush3.bf16.msra.mxu0 (!%p246_p3), %v3821_v0  ;;  %3435 = vmatprep.mubr.msk.bf16.mxu0 (!%p246_p3), %vm4007_vm0, %v4006_v1  ;;  %v3824_v5 = vld [vmem:[%s4862_s2 + $0x10] sm:$0xff] (!%p246_p3)   ;;  %p343_p8 = scmp.ge.s32.totalorder (!%p246_p3), %s338_s12, 0  ;;  %v3826_v7 = vld [vmem:[%s4862_s2 + $0x18] sm:$0xff] (!%p246_p3)   ;;  %p344_p9 = scmp.lt.s32.totalorder (!%p246_p3), %s338_s12, 4  ;;  %v3828_v9 = vld [vmem:[%s4862_s2 + $0x20] sm:$0xff] (!%p246_p3)  }
   0xc   : > { %3421 = vmatprep.subr.bf16.mxu0 (!%p246_p3), %v4006_v1  ;;  %3455 = vmatprep.mubr.msk.bf16.mxu1 (!%p246_p3), %vm4007_vm0, %v4006_v1  ;;  %v3827_v6 = vld [vmem:[%s4862_s2 + $0x50] sm:$0xff] (!%p246_p3)   ;;  %v3829_v8 = vld [vmem:[%s4862_s2 + $0x58] sm:$0xff] (!%p246_p3)   ;;  %v3831_v10 = vld [vmem:[%s4862_s2 + $0x60] sm:$0xff] (!%p246_p3)   ;;  %p312_p12 = scmp.lt.s32.totalorder (!%p246_p3), %s3988_s21, 3  ;;  %p1078_p13 = scmp.ge.s32.totalorder (!%p246_p3), %s3988_s21, 0 }
   0xd   : > { %3440 = vmatpush3.bf16.msra.mxu1 (!%p246_p3), %v3823_v3  ;;  %p345_p10 = pnand (!%p246_p3), %p344_p9, %p343_p8  ;;  %v3830_v11 = vld [vmem:[%s4862_s2 + $0x28] sm:$0xff] (!%p246_p3)   ;;  %v3832_v13 = vld [vmem:[%s4862_s2 + $0x30] sm:$0xff] (!%p246_p3)   ;;  %v3834_v15 = vld [vmem:[%s4862_s2 + $0x38] sm:$0xff] (!%p246_p3)   ;;  %p1079_p0 = scmp.lt.s32.totalorder (!%p246_p3), %s3988_s21, 4 }
   0xe   : > { %3441 = vmatprep.subr.bf16.mxu1 (!%p246_p3), %v4006_v1  ;;  %v3833_v12 = vld [vmem:[%s4862_s2 + $0x68] sm:$0xff] (!%p246_p3)   ;;  %v3835_v14 = vld [vmem:[%s4862_s2 + $0x70] sm:$0xff] (!%p246_p3)   ;;  %v3837_v18 = vld [vmem:[%s4862_s2 + $0x78] sm:$0xff] (!%p246_p3)   ;;  %p1074_p2 = scmp.gt.s32.totalorder (!%p246_p3), %s3988_s21, 0 }
   0xf   : > { %3422 = vmatpush3.bf16.msra.mxu0 (!%p246_p3), %v3822_v2  ;;  %v3836_v22 = vld [vmem:[%s4862_s2 + $0x80] sm:$0xff] (!%p246_p3)   ;;  %v3838_v25 = vld [vmem:[%s4862_s2 + $0x88] sm:$0xff] (!%p246_p3)   ;;  %v3840_v27 = vld [vmem:[%s4862_s2 + $0x90] sm:$0xff] (!%p246_p3)   ;;  %p4305_p1 = pnand (!%p246_p3), %p1079_p0, %p1078_p13 }
  0x10   : > { %3423 = vmatprep.subr.bf16.mxu0 %v4006_v1  ;;  %s4880_s22 = smov (!%p300_p5, %s3992_s22), 1  ;;  %v3839_v24 = vld [vmem:[%s4863_s3] sm:$0xff]   ;;  %v3841_v26 = vld [vmem:[%s4863_s3 + $0x8] sm:$0xff]   ;;  %v3843_v28 = vld [vmem:[%s4863_s3 + $0x10] sm:$0xff]  }
  0x11   : > { %3442 = vmatpush3.bf16.msra.mxu1 %v3825_v4  ;;  %s340_s19 = scalar_select %p339_p6, %s338_s12, 0  ;;  %v3842_v29 = vld [vmem:[%s4862_s2 + $0x98] sm:$0xff]   ;;  %v3844_v31 = vld [vmem:[%s4862_s2 + $0xa0] sm:$0xff]   ;;  %v3846_v33 = vld [vmem:[%s4862_s2 + $0xa8] sm:$0xff]  }
  0x12   : > { %3443 = vmatprep.subr.bf16.mxu1 %v4006_v1  ;;  %s3236_s29 = sshll.u32 %s4880_s22, 5  ;;  %s2795_s12 = sshll.u32 %s4880_s22, 2  ;;  %v3845_v30 = vld [vmem:[%s4863_s3 + $0x18] sm:$0xff]   ;;  %v3847_v32 = vld [vmem:[%s4863_s3 + $0x20] sm:$0xff]   ;;  %v3849_v34 = vld [vmem:[%s4863_s3 + $0x28] sm:$0xff]  }
  0x13   : > { %3424 = vmatpush3.bf16.msra.mxu0 %v3824_v5  ;;  %s4882_s19 = smov (!%p2799_p7, %s340_s19), 3  ;;  %s4140_s16 = scalar_lea.vmem %s4860_s0, %s3236_s29  ;;  %v3848_v35 = vld [vmem:[%s4862_s2 + $0xb0] sm:$0xff]   ;;  %v3850_v42 = vld [vmem:[%s4862_s2 + $0xb8] sm:$0xff]   ;;  %v3852_v47 = vld [vmem:[%s4863_s3 + $0x40] sm:$0xff]  }
  0x14   : > { %3425 = vmatprep.subr.bf16.mxu0 %v4006_v1  ;;  %s2804_s10 = scalar_select %p345_p10, 0, 1  ;;  %v3851_v37 = vld [vmem:[%s4863_s3 + $0x30] sm:$0xff]   ;;  %v3853_v45 = vld [vmem:[%s4863_s3 + $0x38] sm:$0xff]   ;;  %v3855_v49 = vld [vmem:[%s4863_s3 + $0x80] sm:$0xff]  }
  0x15   : > { %3444 = vmatpush3.bf16.msra.mxu1 %v3827_v6  ;;  %s3240_s17 = sshll.u32 %s4882_s19, 3  ;;  %v3854_v50 = vld [vmem:[%s4863_s3 + $0x48] sm:$0xff]   ;;  %v3856_v52 = vld [vmem:[%s4863_s3 + $0x50] sm:$0xff]   ;;  %v3858_v54 = vld [vmem:[%s4863_s3 + $0x58] sm:$0xff]  }
  0x16   : > { %3445 = vmatprep.subr.bf16.mxu1 %v4006_v1  ;;  %s348_s11 = scvt.s32.f32 %s2804_s10  ;;  %s361_s8 = scalar_lea.vmem %s4140_s16, %s3240_s17  ;;  %v3857_v51 = vld [vmem:[%s4863_s3 + $0x88] sm:$0xff]   ;;  %v3859_v53 = vld [vmem:[%s4863_s3 + $0x90] sm:$0xff]   ;;  %v3861_v55 = vld [vmem:[%s4863_s3 + $0x98] sm:$0xff]  }
  0x17   : > { %3426 = vmatpush3.bf16.msra.mxu0 %v3826_v7  ;;  %v362_v16 = vld [vmem:[%s361_s8] sm:$0xf]  ;;  %v363_v17 = vld [vmem:[%s361_s8 + $0x4] sm:$0xf]  ;;  %v3862_v58 = vld [vmem:[%s4863_s3 + $0x68] sm:$0xff]  }
  0x18   : > { %3427 = vmatprep.subr.bf16.mxu0 %v4006_v1  ;;  %s351_s18 = sshrl.u32 %s348_s11, 16  ;;  %p350_p11 = scmp.ne.f32.partialorder %s348_s11, %s348_s11  ;;  %v3860_v56 = vld [vmem:[%s4863_s3 + $0x60] sm:$0xff]   ;;  %v3865_v59 = vld [vmem:[%s4863_s3 + $0xa8] sm:$0xff]   ;;  %v3864_v61 = vld [vmem:[%s4863_s3 + $0x70] sm:$0xff]  }
  0x19   : > { %3446 = vmatpush3.bf16.msra.mxu1 %v3829_v8  ;;  %s352_s30 = sand.u32 1, %s351_s18  ;;  %v3863_v57 = vld [vmem:[%s4863_s3 + $0xa0] sm:$0xff]   ;;  %v3867_v62 = vld [vmem:[%s4863_s3 + $0xb0] sm:$0xff]   ;;  %v3866_v2 = vld [vmem:[%s4863_s3 + $0x78] sm:$0xff]  }
  0x1a   : > { %3447 = vmatprep.subr.bf16.mxu1 %v4006_v1  ;;  %s353_s7 = sadd.s32 32767, %s352_s30  ;;  %v3869_v3 = vld [vmem:[%s4863_s3 + $0xb8] sm:$0xff]   ;;  %v3868_v4 = vld [vmem:[%s4862_s2 + $0xc0] sm:$0xff]   ;;  %v3870_v7 = vld [vmem:[%s4862_s2 + $0xc8] sm:$0xff]  }
  0x1b   : > { %3428 = vmatpush3.bf16.msra.mxu0 %v3828_v9  ;;  %s354_s13 = sadd.s32 %s353_s7, %s348_s11  ;;  %s2793_s7 = sshll.u32 %s4880_s22, 3  ;;  %v3871_v6 = vld [vmem:[%s4862_s2 + $0x100] sm:$0xff]   ;;  %v3873_v8 = vld [vmem:[%s4862_s2 + $0x108] sm:$0xff]   ;;  %v3872_v9 = vld [vmem:[%s4862_s2 + $0xd0] sm:$0xff]  }
  0x1c   : > { %3429 = vmatprep.subr.bf16.mxu0 %v4006_v1  ;;  %s355_s14 = sand.u32 4294901760, %s354_s13 }
  0x1d   : > { %3448 = vmatpush3.bf16.msra.mxu1 %v3831_v10  ;;  %s4884_s14 = smov (%p350_p11, %s355_s14), 2143289344  ;;  %v3875_v10 = vld [vmem:[%s4862_s2 + $0x110] sm:$0xff]  }
  0x1e   : > { %3449 = vmatprep.subr.bf16.mxu1 %v4006_v1  ;;  %s313_s11 = scalar_select %p312_p12, %s3988_s21, 3 }
  0x1f   : > { %3430 = vmatpush3.bf16.msra.mxu0 %v3830_v11  ;;  %s358_s30 = sshrl.u32 %s4884_s14, 16  ;;  %s4230_s14 = scalar_lea.vmem %s4861_s1, %s3236_s29  ;;  %v3874_v11 = vld [vmem:[%s4862_s2 + $0xd8] sm:$0xff]  }
  0x20   : > { %3431 = vmatprep.subr.bf16.mxu0 %v4006_v1  ;;  %s364_s9 = sshll.u32 %s358_s30, 16  ;;  %s4169_s10 = sadd.s32 %s2795_s12, %s313_s11 }
  0x21   : > { %3450 = vmatpush3.bf16.msra.mxu1 %v3833_v12  ;;  %s365_s13 = sor.u32 %s364_s9, %s358_s30  ;;  %s2792_s20 = sshll.u32 %s313_s11, 1  ;;  %v3877_v12 = vld [vmem:[%s4862_s2 + $0x118] sm:$0xff]  }
  0x22   : > { %3451 = vmatprep.subr.bf16.mxu1 %v4006_v1  ;;  %v4174_v19 = vstv %s365_s13  ;;  %s4177_s8 = sadd.s32 %s2793_s7, %s2792_s20  ;;  %s720_s22 = scalar_lea.vmem %s4230_s14, %s3240_s17 }
  0x23   : > { %3432 = vmatpush3.bf16.msra.mxu0 %v3832_v13  ;;  %v368_v20 = vmul.bf16 %v4174_v19, %v362_v16  ;;  %v369_v21 = vmul.bf16 %v4174_v19, %v363_v17  ;;  %v721_v38 = vld [vmem:[%s720_s22] sm:$0xf]  ;;  %v722_v39 = vld [vmem:[%s720_s22 + $0x4] sm:$0xf]  ;;  %s2927_s13 = scalar_select %p4305_p1, 0, 1 }
  0x24   : > { %3433 = vmatprep.subr.bf16.mxu0 %v4006_v1  ;;  %v723_v43 = vmul.bf16 %v721_v38, %v4174_v19  ;;  %v724_v44 = vmul.bf16 %v722_v39, %v4174_v19  ;;  %s1075_s17 = scalar_select %p1074_p2, %s3988_s21, 0  ;;  %v3876_v13 = vld [vmem:[%s4862_s2 + $0xe0] sm:$0xff]   ;;  %v3881_v16 = vld [vmem:[%s4862_s2 + $0x128] sm:$0xff]   ;;  %v3880_v17 = vld [vmem:[%s4862_s2 + $0xf0] sm:$0xff]  }
  0x25   : > { %3452 = vmatpush3.bf16.msra.mxu1 %v3835_v14  ;;  %v2807_v23 = vcombine.low %v368_v20, %v369_v21  ;;  %s4328_s20 = scvt.s32.f32 %s2927_s13  ;;  %v3879_v14 = vld [vmem:[%s4862_s2 + $0x120] sm:$0xff]   ;;  %v3883_v21 = vld [vmem:[%s4862_s2 + $0x130] sm:$0xff]   ;;  %v3897_v38 = vld [vmem:[%s4863_s3 + $0xe8] sm:$0xff]   ;;  %s4537_s30 = sadd.s32 1, %s3988_s21 }
  0x26   : > { %3453 = vmatprep.subr.bf16.mxu1 %v4006_v1  ;;  %v4264_v48 = vcombine.low %v723_v43, %v724_v44  ;;  %s4888_s17 = smov (!%p312_p12, %s1075_s17), 3  ;;  %p1816_p4 = scmp.ge.s32.totalorder %s4537_s30, 0 }
  0x27   : > { %3434 = vmatpush3.bf16.msra.mxu0 %v3834_v15  ;;  %v621_v36 = vshll.u32 %v2807_v23, 16  ;;  %v619_v40 = vshrl.u32 %v2807_v23, 16  ;;  %s1086_s22 = sshrl.u32 %s4328_s20, 16  ;;  %p1085_p3 = scmp.ne.f32.partialorder %s4328_s20, %s4328_s20  ;;  %v3878_v15 = vld [vmem:[%s4862_s2 + $0xe8] sm:$0xff]  }
  0x28   : > { %3459 = vmatprep.subr.bf16.mxu0 %v4006_v1  ;;  %v976_v60 = vshll.u32 %v4264_v48, 16  ;;  %v974_v63 = vshrl.u32 %v4264_v48, 16  ;;  %s1087_s29 = sand.u32 1, %s1086_s22  ;;  %s3244_s9 = sshll.u32 %s4888_s17, 3 }
  0x29   : > { %3454 = vmatpush3.bf16.msra.mxu1 %v3837_v18  ;;  %v623_v41 = vrot.slane %v621_v36, 1  ;;  %s1088_s18 = sadd.s32 32767, %s1087_s29  ;;  %v3895_v36 = vld [vmem:[%s4863_s3 + $0xe0] sm:$0xff]   ;;  %p1817_p5 = scmp.lt.s32.totalorder %s4537_s30, 4 }
  0x2a   : > { %3479 = vmatprep.subr.bf16.mxu1 %v4006_v1  ;;  %3436 = vmatmul.mubr.bf16.vlgmr.msra.gmra.mrb[0].mxu0 %v2807_v23  ;;  %v978_v0 = vrot.slane %v976_v60, 1  ;;  %s1089_s22 = sadd.s32 %s1088_s18, %s4328_s20  ;;  %v3908_v60 = vld [vmem:[%s4863_s3 + $0x120] sm:$0xff]   ;;  %p1812_p7 = scmp.gt.s32.totalorder %s4537_s30, 0 }
  0x2b   : > { %3460 = vmatpush3.bf16.msra.mxu0 %v3836_v22  ;;  %3475 = vmatprep.mubr.msk.bf16.mxu0 %vm4007_vm0, %v4006_v1  ;;  %v624_v46 = vor.u32 %v623_v41, %v619_v40  ;;  %s1090_s29 = sand.u32 4294901760, %s1089_s22  ;;  %v3896_v40 = vld [vmem:[%s4862_s2 + $0x170] sm:$0xff]   ;;  %p4553_p6 = pnand %p1817_p5, %p1816_p4 }
  0x2c   : > { %3456 = vmatmul.mubr.bf16.vlgmr.msra.gmra.mrb[0].mxu1 %v2807_v23  ;;  %3461 = vmatprep.subr.bf16.mxu0 %v4006_v1  ;;  %v979_v5 = vor.u32 %v978_v0, %v974_v63  ;;  %s4886_s29 = smov (%p1085_p3, %s1090_s29), 2143289344  ;;  %v3899_v41 = vld [vmem:[%s4863_s3 + $0xf0] sm:$0xff]   ;;  %v3913_v63 = vld [vmem:[%s4863_s3 + $0x168] sm:$0xff]   ;;  %p3077_p9 = scmp.lt.s32.totalorder %s4537_s30, 3 }
  0x2d   : > { %3480 = vmatpush3.bf16.msra.mxu1 %v3839_v24  ;;  %3495 = vmatprep.mubr.msk.bf16.mxu1 %vm4007_vm0, %v4006_v1  ;;  %s1093_s28 = sshrl.u32 %s4886_s29, 16  ;;  %s1096_s29 = scalar_lea.vmem %s4140_s16, %s3244_s9  ;;  %v3882_v24 = vld [vmem:[%s4862_s2 + $0xf8] sm:$0xff]   ;;  %v3912_v0 = vld [vmem:[%s4863_s3 + $0x130] sm:$0xff]  }
  0x2e   : > { %3481 = vmatprep.subr.bf16.mxu1 %v4006_v1  ;;  %s1099_s13 = sshll.u32 %s1093_s28, 16  ;;  %v1097_v18 = vld [vmem:[%s1096_s29] sm:$0xf]  ;;  %v1098_v19 = vld [vmem:[%s1096_s29 + $0x4] sm:$0xf]  ;;  %s1456_s29 = scalar_lea.vmem %s4230_s14, %s3244_s9 }
  0x2f   : > { %3462 = vmatpush3.bf16.msra.mxu0 %v3838_v25  ;;  %s1100_s12 = sor.u32 %s1099_s13, %s1093_s28  ;;  %v4426_v25 = vld [vmem:[#allocation2] sm:$0xff] }
  0x30   : > { %3463 = vmatprep.subr.bf16.mxu0 %v4006_v1  ;;  %v4414_v20 = vstv %s1100_s12  ;;  %v1458_v43 = vld [vmem:[%s1456_s29 + $0x4] sm:$0xf]  ;;  %s3082_s11 = scalar_select %p4553_p6, 0, 1 }
  0x31   : > { %3482 = vmatpush3.bf16.msra.mxu1 %v3841_v26  ;;  %v1103_v22 = vmul.bf16 %v4414_v20, %v1097_v18  ;;  %v1104_v23 = vmul.bf16 %v4414_v20, %v1098_v19  ;;  %v3885_v26 = vld [vmem:[%s4862_s2 + $0x138] sm:$0xff]   ;;  %s1813_s9 = scalar_select %p1812_p7, %s4537_s30, 0  ;;  %v3927_v18 = vld [vmem:[%s4862_s2 + $0x1e0] sm:$0xff]   ;;  %v3926_v19 = vld [vmem:[%s4862_s2 + $0x1a8] sm:$0xff]  }
  0x32   : > { %3483 = vmatprep.subr.bf16.mxu1 %v4006_v1  ;;  %s4576_s28 = scvt.s32.f32 %s3082_s11 }
  0x33   : > { %3464 = vmatpush3.bf16.msra.mxu0 %v3840_v27  ;;  %v3884_v27 = vld [vmem:[%s4862_s2 + $0x140] sm:$0xff]   ;;  %s4892_s9 = smov (!%p3077_p9, %s1813_s9), 3 }
  0x34   : > { %3465 = vmatprep.subr.bf16.mxu0 %v4006_v1  ;;  %p1823_p8 = scmp.ne.f32.partialorder %s4576_s28, %s4576_s28  ;;  %s3248_s15 = sshll.u32 %s4892_s9, 3 }
  0x35   : > { %3484 = vmatpush3.bf16.msra.mxu1 %v3843_v28  ;;  %v3887_v28 = vld [vmem:[%s4863_s3 + $0xc0] sm:$0xff]   ;;  %s1834_s22 = scalar_lea.vmem %s4140_s16, %s3248_s15  ;;  %s2194_s16 = scalar_lea.vmem %s4230_s14, %s3248_s15 }
  0x36   : > { %3485 = vmatprep.subr.bf16.mxu1 %v4006_v1  ;;  %s2794_s15 = sshll.u32 %s4177_s8, 2 }
  0x37   : > { %3466 = vmatpush3.bf16.msra.mxu0 %v3842_v29  ;;  %v3886_v29 = vld [vmem:[%s4862_s2 + $0x148] sm:$0xff]  }
  0x38   : > { %3467 = vmatprep.subr.bf16.mxu0 %v4006_v1 }
  0x39   : > { %3486 = vmatpush3.bf16.msra.mxu1 %v3845_v30  ;;  %v3889_v30 = vld [vmem:[%s4863_s3 + $0xc8] sm:$0xff]  }
  0x3a   : > { %3487 = vmatprep.subr.bf16.mxu1 %v4006_v1 }
  0x3b   : > { %3468 = vmatpush3.bf16.msra.mxu0 %v3844_v31  ;;  %v3888_v31 = vld [vmem:[%s4862_s2 + $0x150] sm:$0xff]  }
  0x3c   : > { %3469 = vmatprep.subr.bf16.mxu0 %v4006_v1 }
  0x3d   : > { %3488 = vmatpush3.bf16.msra.mxu1 %v3847_v32  ;;  %v3891_v32 = vld [vmem:[%s4863_s3 + $0xd0] sm:$0xff]  }
  0x3e   : > { %3489 = vmatprep.subr.bf16.mxu1 %v4006_v1 }
  0x3f   : > { %3470 = vmatpush3.bf16.msra.mxu0 %v3846_v33  ;;  %v3890_v33 = vld [vmem:[%s4862_s2 + $0x158] sm:$0xff]  }
  0x40   : > { %3471 = vmatprep.subr.bf16.mxu0 %v4006_v1 }
  0x41   : > { %3490 = vmatpush3.bf16.msra.mxu1 %v3849_v34  ;;  %v3893_v34 = vld [vmem:[%s4863_s3 + $0xd8] sm:$0xff]  }
  0x42   : > { %3491 = vmatprep.subr.bf16.mxu1 %v4006_v1 }
  0x43   : > { %3472 = vmatpush3.bf16.msra.mxu0 %v3848_v35  ;;  %v3892_v35 = vld [vmem:[%s4862_s2 + $0x160] sm:$0xff]  }
  0x44   : > { %3473 = vmatprep.subr.bf16.mxu0 %v4006_v1 }
  0x45   : > { %3492 = vmatpush3.bf16.msra.mxu1 %v3851_v37  ;;  %v3894_v37 = vld [vmem:[%s4862_s2 + $0x168] sm:$0xff]  }
  0x46   : > { %3493 = vmatprep.subr.bf16.mxu1 %v4006_v1 }
  0x47   : > { %3474 = vmatpush3.bf16.msra.mxu0 %v3850_v42  ;;  %v1457_v42 = vld [vmem:[%s1456_s29] sm:$0xf]  ;;  %s1824_s29 = sshrl.u32 %s4576_s28, 16 }
  0x48   : > { %3499 = vmatprep.subr.bf16.mxu0 %v4006_v1  ;;  %s1825_s12 = sand.u32 1, %s1824_s29 }
  0x49   : > { %3494 = vmatpush3.bf16.msra.mxu1 %v3853_v45  ;;  %s1826_s7 = sadd.s32 32767, %s1825_s12 }
  0x4a   : > { %3519 = vmatprep.subr.bf16.mxu1 %v4006_v1  ;;  %3476 = vmatmul.mubr.bf16.vlgmr.msra.gmra.mrb[4].mxu0 %v624_v46  ;;  %v3898_v46 = vld [vmem:[%s4862_s2 + $0x178] sm:$0xff]   ;;  %s1827_s29 = sadd.s32 %s1826_s7, %s4576_s28  ;;  %s318_s28 = scalar_lea.vmem %s4864_s4, %s2794_s15 }
  0x4b   : > { %3500 = vmatpush3.bf16.msra.mxu0 %v3852_v47  ;;  %3515 = vmatprep.mubr.msk.bf16.mxu0 %vm4007_vm0, %v4006_v1  ;;  %v1459_v47 = vmul.bf16 %v1457_v42, %v4414_v20  ;;  %s1828_s12 = sand.u32 4294901760, %s1827_s29  ;;  %v3942_v42 = vld [vmem:[%s4862_s2 + $0x228] sm:$0xff]  }
  0x4c   : > { %3496 = vmatmul.mubr.bf16.vlgmr.msra.gmra.mrb[4].mxu1 %v4264_v48  ;;  %3501 = vmatprep.subr.bf16.mxu0 %v4006_v1  ;;  %s4890_s12 = smov (%p1823_p8, %s1828_s12), 2143289344 }
  0x4d   : > { %3520 = vmatpush3.bf16.msra.mxu1 %v3855_v49  ;;  %3535 = vmatprep.mubr.msk.bf16.mxu1 %vm4007_vm0, %v4006_v1  ;;  %v3901_v49 = vld [vmem:[%s4863_s3 + $0xf8] sm:$0xff]   ;;  %s1831_s30 = sshrl.u32 %s4890_s12, 16 }
  0x4e   : > { %3521 = vmatprep.subr.bf16.mxu1 %v4006_v1  ;;  %s1837_s18 = sshll.u32 %s1831_s30, 16 }
  0x4f   : > { %3502 = vmatpush3.bf16.msra.mxu0 %v3854_v50  ;;  %s1838_s7 = sor.u32 %s1837_s18, %s1831_s30 }
  0x50   : > { %3503 = vmatprep.subr.bf16.mxu0 %v4006_v1 }
  0x51   : > { %3522 = vmatpush3.bf16.msra.mxu1 %v3857_v51  ;;  %v3900_v51 = vld [vmem:[%s4863_s3 + $0x100] sm:$0xff]  }
  0x52   : > { %3523 = vmatprep.subr.bf16.mxu1 %v4006_v1 }
  0x53   : > { %3504 = vmatpush3.bf16.msra.mxu0 %v3856_v52 }
  0x54   : > { %3505 = vmatprep.subr.bf16.mxu0 %v4006_v1 }
  0x55   : > { %3524 = vmatpush3.bf16.msra.mxu1 %v3859_v53  ;;  %v3903_v53 = vld [vmem:[%s4863_s3 + $0x140] sm:$0xff]  }
  0x56   : > { %3525 = vmatprep.subr.bf16.mxu1 %v4006_v1 }
  0x57   : > { %3506 = vmatpush3.bf16.msra.mxu0 %v3858_v54  ;;  %v3902_v54 = vld [vmem:[%s4863_s3 + $0x108] sm:$0xff]  }
  0x58   : > { %3507 = vmatprep.subr.bf16.mxu0 %v4006_v1 }
  0x59   : > { %3526 = vmatpush3.bf16.msra.mxu1 %v3861_v55  ;;  %v3905_v55 = vld [vmem:[%s4863_s3 + $0x148] sm:$0xff]  }
  0x5a   : > { %3527 = vmatprep.subr.bf16.mxu1 %v4006_v1 }
  0x5b   : > { %3508 = vmatpush3.bf16.msra.mxu0 %v3860_v56  ;;  %v3904_v56 = vld [vmem:[%s4863_s3 + $0x110] sm:$0xff]  }
  0x5c   : > { %3509 = vmatprep.subr.bf16.mxu0 %v4006_v1 }
  0x5d   : > { %3528 = vmatpush3.bf16.msra.mxu1 %v3863_v57  ;;  %v3907_v57 = vld [vmem:[%s4863_s3 + $0x150] sm:$0xff]  }
  0x5e   : > { %3529 = vmatprep.subr.bf16.mxu1 %v4006_v1 }
  0x5f   : > { %3510 = vmatpush3.bf16.msra.mxu0 %v3862_v58  ;;  %v3906_v58 = vld [vmem:[%s4863_s3 + $0x118] sm:$0xff]  }
  0x60   : > { %3511 = vmatprep.subr.bf16.mxu0 %v4006_v1 }
  0x61   : > { %3530 = vmatpush3.bf16.msra.mxu1 %v3865_v59  ;;  %v3909_v59 = vld [vmem:[%s4863_s3 + $0x158] sm:$0xff]  }
  0x62   : > { %3531 = vmatprep.subr.bf16.mxu1 %v4006_v1 }
  0x63   : > { %3512 = vmatpush3.bf16.msra.mxu0 %v3864_v61  ;;  %v3911_v61 = vld [vmem:[%s4863_s3 + $0x160] sm:$0xff]  }
  0x64   : > { %3513 = vmatprep.subr.bf16.mxu0 %v4006_v1 }
  0x65   : > { %3532 = vmatpush3.bf16.msra.mxu1 %v3867_v62  ;;  %v3910_v62 = vld [vmem:[%s4863_s3 + $0x128] sm:$0xff]  }
  0x66   : > { %3533 = vmatprep.subr.bf16.mxu1 %v4006_v1 }
  0x67   : > { %3514 = vmatpush3.bf16.msra.mxu0 %v3866_v2 }
  0x68   : > { %3539 = vmatprep.subr.bf16.mxu0 %v4006_v1 }
  0x69   : > { %3534 = vmatpush3.bf16.msra.mxu1 %v3869_v3  ;;  %v3915_v3 = vld [vmem:[%s4863_s3 + $0x170] sm:$0xff]  }
  0x6a   : > { %3559 = vmatprep.subr.bf16.mxu1 %v4006_v1  ;;  %3516 = vmatmul.mubr.bf16.vlgmr.msra.gmra.mrb[8].mxu0 %v4264_v48  ;;  %v1460_v48 = vmul.bf16 %v1458_v43, %v4414_v20  ;;  %v3929_v20 = vld [vmem:[%s4862_s2 + $0x1e8] sm:$0xff]  }
  0x6b   : > { %3540 = vmatpush3.bf16.msra.mxu0 %v3868_v4  ;;  %3555 = vmatprep.mubr.msk.bf16.mxu0 %vm4007_vm0, %v4006_v1  ;;  %v3914_v4 = vld [vmem:[%s4863_s3 + $0x138] sm:$0xff]   ;;  %v3945_v43 = vld [vmem:[%s4863_s3 + $0x1a8] sm:$0xff]  }
  0x6c   : > { %3536 = vmatmul.mubr.bf16.vlgmr.msra.gmra.mrb[8].mxu1 %v979_v5  ;;  %3541 = vmatprep.subr.bf16.mxu0 %v4006_v1  ;;  %v4509_v52 = vcombine.low %v1459_v47, %v1460_v48 }
  0x6d   : > { %3560 = vmatpush3.bf16.msra.mxu1 %v3871_v6  ;;  %3575 = vmatprep.mubr.msk.bf16.mxu1 %vm4007_vm0, %v4006_v1 }
  0x6e   : > { %3561 = vmatprep.subr.bf16.mxu1 %v4006_v1  ;;  %v1713_v2 = vshll.u32 %v4509_v52, 16  ;;  %v1711_v5 = vshrl.u32 %v4509_v52, 16 }
  0x6f   : > { %3542 = vmatpush3.bf16.msra.mxu0 %v3870_v7  ;;  %v3917_v7 = vld [vmem:[%s4863_s3 + $0x178] sm:$0xff]  }
  0x70   : > { %3543 = vmatprep.subr.bf16.mxu0 %v4006_v1  ;;  %v1715_v6 = vrot.slane %v1713_v2, 1  ;;  %v3949_v2 = vld [vmem:[%s4863_s3 + $0x1b8] sm:$0xff]  }
  0x71   : > { %3562 = vmatpush3.bf16.msra.mxu1 %v3873_v8  ;;  %v3916_v8 = vld [vmem:[%s4862_s2 + $0x180] sm:$0xff]  }
  0x72   : > { %3563 = vmatprep.subr.bf16.mxu1 %v4006_v1 }
  0x73   : > { %3544 = vmatpush3.bf16.msra.mxu0 %v3872_v9  ;;  %v1716_v9 = vor.u32 %v1715_v6, %v1711_v5  ;;  %v3951_v6 = vld [vmem:[%s4863_s3 + $0x200] sm:$0xff]  }
  0x74   : > { %3545 = vmatprep.subr.bf16.mxu0 %v4006_v1 }
  0x75   : > { %3564 = vmatpush3.bf16.msra.mxu1 %v3875_v10  ;;  %v3919_v10 = vld [vmem:[%s4862_s2 + $0x1c0] sm:$0xff]  }
  0x76   : > { %3565 = vmatprep.subr.bf16.mxu1 %v4006_v1 }
  0x77   : > { %3546 = vmatpush3.bf16.msra.mxu0 %v3874_v11  ;;  %v3918_v11 = vld [vmem:[%s4862_s2 + $0x188] sm:$0xff]  }
  0x78   : > { %3547 = vmatprep.subr.bf16.mxu0 %v4006_v1 }
  0x79   : > { %3566 = vmatpush3.bf16.msra.mxu1 %v3877_v12  ;;  %v3921_v12 = vld [vmem:[%s4862_s2 + $0x1c8] sm:$0xff]  }
  0x7a   : > { %3567 = vmatprep.subr.bf16.mxu1 %v4006_v1 }
  0x7b   : > { %3548 = vmatpush3.bf16.msra.mxu0 %v3876_v13  ;;  %v3920_v13 = vld [vmem:[%s4862_s2 + $0x190] sm:$0xff]  }
  0x7c   : > { %3549 = vmatprep.subr.bf16.mxu0 %v4006_v1 }
  0x7d   : > { %3568 = vmatpush3.bf16.msra.mxu1 %v3879_v14  ;;  %v3923_v14 = vld [vmem:[%s4862_s2 + $0x1d0] sm:$0xff]  }
  0x7e   : > { %3569 = vmatprep.subr.bf16.mxu1 %v4006_v1 }
  0x7f   : > { %3550 = vmatpush3.bf16.msra.mxu0 %v3878_v15  ;;  %v3922_v15 = vld [vmem:[%s4862_s2 + $0x198] sm:$0xff]  }
  0x80   : > { %3551 = vmatprep.subr.bf16.mxu0 %v4006_v1 }
  0x81   : > { %3570 = vmatpush3.bf16.msra.mxu1 %v3881_v16  ;;  %v3925_v16 = vld [vmem:[%s4862_s2 + $0x1d8] sm:$0xff]  }
  0x82   : > { %3571 = vmatprep.subr.bf16.mxu1 %v4006_v1  ;;  %v2946_v1 = vcombine.low %v1103_v22, %v1104_v23  ;;  %v1835_v22 = vld [vmem:[%s1834_s22] sm:$0xf]  ;;  %v1836_v23 = vld [vmem:[%s1834_s22 + $0x4] sm:$0xf]  ;;  %s2796_s22 = sshll.u32 %s4169_s10, 3 }
  0x83   : > { %3552 = vmatpush3.bf16.msra.mxu0 %v3880_v17  ;;  %v3924_v17 = vld [vmem:[%s4862_s2 + $0x1a0] sm:$0xff]   ;;  %s326_s13 = scalar_lea.vmem %s4865_s5, %s2796_s22  ;;  %s334_s20 = scalar_lea.vmem %s4866_s6, %s2796_s22 }
  0x84   : > { %3553 = vmatprep.subr.bf16.mxu0 %v4426_v25  ;;  %v1357_v39 = vshll.u32 %v2946_v1, 16  ;;  %v1355_v44 = vshrl.u32 %v2946_v1, 16 }
  0x85   : > { %3572 = vmatpush3.bf16.msra.mxu1 %v3883_v21  ;;  %v3928_v21 = vld [vmem:[%s4862_s2 + $0x1b0] sm:$0xff]  }
  0x86   : > { %3573 = vmatprep.subr.bf16.mxu1 %v4426_v25  ;;  %v1359_v45 = vrot.slane %v1357_v39, 1  ;;  %v3940_v39 = vld [vmem:[%s4862_s2 + $0x220] sm:$0xff]  }
  0x87   : > { %3554 = vmatpush3.bf16.msra.mxu0 %v3882_v24  ;;  %v4661_v24 = vstv %s1838_s7 }
  0x88   : > { %3579 = vmatprep.subr.bf16.mxu0 %v4426_v25  ;;  %v1360_v50 = vor.u32 %v1359_v45, %v1355_v44  ;;  %v371_v44 = vld [vmem:[#allocation2 + $0x9] sm:$0x7f] }
  0x89   : > { %3574 = vmatpush3.bf16.msra.mxu1 %v3885_v26  ;;  %v3931_v26 = vld [vmem:[%s4862_s2 + $0x1f0] sm:$0xff]  }
  0x8a   : > { %3599 = vmatprep.subr.bf16.mxu1 %v4426_v25  ;;  %3556 = vmatmul.mubr.bf16.vlgmr.msra.gmra.mrb[12].mxu0 %v2946_v1 }
  0x8b   : > { %3580 = vmatpush3.bf16.msra.mxu0 %v3884_v27  ;;  %3595 = vmatprep.mubr.msk.bf16.mxu0 %vm4007_vm0, %v4426_v25  ;;  %v1842_v27 = vmul.bf16 %v4661_v24, %v1836_v23 }
  0x8c   : > { %3576 = vmatmul.mubr.bf16.vlgmr.msra.gmra.mrb[12].mxu1 %v2946_v1  ;;  %3581 = vmatprep.subr.bf16.mxu0 %v4426_v25  ;;  %v1841_v1 = vmul.bf16 %v4661_v24, %v1835_v22 }
  0x8d   : > { %3600 = vmatpush3.bf16.msra.mxu1 %v3887_v28  ;;  %3615 = vmatprep.mubr.msk.bf16.mxu1 %vm4007_vm0, %v4426_v25  ;;  %v3930_v28 = vld [vmem:[%s4862_s2 + $0x1b8] sm:$0xff]  }
  0x8e   : > { %3601 = vmatprep.subr.bf16.mxu1 %v4426_v25 }
  0x8f   : > { %3582 = vmatpush3.bf16.msra.mxu0 %v3886_v29  ;;  %v3933_v29 = vld [vmem:[%s4862_s2 + $0x1f8] sm:$0xff]  }
  0x90   : > { %3583 = vmatprep.subr.bf16.mxu0 %v4426_v25 }
  0x91   : > { %3602 = vmatpush3.bf16.msra.mxu1 %v3889_v30  ;;  %v4678_v30 = vcombine.low %v1841_v1, %v1842_v27  ;;  %v3960_v27 = vld [vmem:[%s4863_s3 + $0x1f0] sm:$0xff]  }
  0x92   : > { %3603 = vmatprep.subr.bf16.mxu1 %v4426_v25 }
  0x93   : > { %3584 = vmatpush3.bf16.msra.mxu0 %v3888_v31  ;;  %v3932_v31 = vld [vmem:[%s4862_s2 + $0x200] sm:$0xff]  }
  0x94   : > { %3585 = vmatprep.subr.bf16.mxu0 %v4426_v25 }
  0x95   : > { %3604 = vmatpush3.bf16.msra.mxu1 %v3891_v32  ;;  %v3935_v32 = vld [vmem:[%s4863_s3 + $0x180] sm:$0xff]  }
  0x96   : > { %3605 = vmatprep.subr.bf16.mxu1 %v4426_v25 }
  0x97   : > { %3586 = vmatpush3.bf16.msra.mxu0 %v3890_v33  ;;  %v3934_v33 = vld [vmem:[%s4862_s2 + $0x208] sm:$0xff]  }
  0x98   : > { %3587 = vmatprep.subr.bf16.mxu0 %v4426_v25 }
  0x99   : > { %3606 = vmatpush3.bf16.msra.mxu1 %v3893_v34  ;;  %v3937_v34 = vld [vmem:[%s4863_s3 + $0x188] sm:$0xff]  }
  0x9a   : > { %3607 = vmatprep.subr.bf16.mxu1 %v4426_v25 }
  0x9b   : > { %3588 = vmatpush3.bf16.msra.mxu0 %v3892_v35  ;;  %v3936_v35 = vld [vmem:[%s4862_s2 + $0x210] sm:$0xff]  }
  0x9c   : > { %3589 = vmatprep.subr.bf16.mxu0 %v4426_v25 }
  0x9d   : > { %3608 = vmatpush3.bf16.msra.mxu1 %v3895_v36  ;;  %v3939_v36 = vld [vmem:[%s4863_s3 + $0x190] sm:$0xff]  }
  0x9e   : > { %3609 = vmatprep.subr.bf16.mxu1 %v4426_v25 }
  0x9f   : > { %3590 = vmatpush3.bf16.msra.mxu0 %v3894_v37  ;;  %v3938_v37 = vld [vmem:[%s4862_s2 + $0x218] sm:$0xff]  }
  0xa0   : > { %3591 = vmatprep.subr.bf16.mxu0 %v4426_v25 }
  0xa1   : > { %3610 = vmatpush3.bf16.msra.mxu1 %v3897_v38  ;;  %v3941_v38 = vld [vmem:[%s4863_s3 + $0x198] sm:$0xff]  }
  0xa2   : > { %3611 = vmatprep.subr.bf16.mxu1 %v4426_v25 }
  0xa3   : > { %3592 = vmatpush3.bf16.msra.mxu0 %v3896_v40  ;;  %v3943_v40 = vld [vmem:[%s4863_s3 + $0x1a0] sm:$0xff]  }
  0xa4   : > { %3593 = vmatprep.subr.bf16.mxu0 %v4426_v25 }
  0xa5   : > { %3612 = vmatpush3.bf16.msra.mxu1 %v3899_v41  ;;  %v370_v41 = vld [vmem:[#allocation2 + $0x1] sm:$0xff] }
  0xa6   : > { %3613 = vmatprep.subr.bf16.mxu1 %v4426_v25 }
  0xa7   : > { %3594 = vmatpush3.bf16.msra.mxu0 %v3898_v46 }
  0xa8   : > { %3619 = vmatprep.subr.bf16.mxu0 %v4426_v25 }
  0xa9   : > { %3614 = vmatpush3.bf16.msra.mxu1 %v3901_v49  ;;  %v2095_v49 = vshll.u32 %v4678_v30, 16 }
  0xaa   : > { %3639 = vmatprep.subr.bf16.mxu1 %v4426_v25  ;;  %3596 = vmatmul.mubr.bf16.vlgmr.msra.gmra.mrb[16].mxu0 %v1360_v50 }
  0xab   : > { %3620 = vmatpush3.bf16.msra.mxu0 %v3900_v51  ;;  %3635 = vmatprep.mubr.msk.bf16.mxu0 %vm4007_vm0, %v4426_v25  ;;  %v3944_v51 = vld [vmem:[%s4862_s2 + $0x230] sm:$0xff]  }
  0xac   : > { %3616 = vmatmul.mubr.bf16.vlgmr.msra.gmra.mrb[16].mxu1 %v4509_v52  ;;  %3621 = vmatprep.subr.bf16.mxu0 %v4426_v25 }
  0xad   : > { %3640 = vmatpush3.bf16.msra.mxu1 %v3903_v53  ;;  %3655 = vmatprep.mubr.msk.bf16.mxu1 %vm4007_vm0, %v4426_v25  ;;  %v3947_v53 = vld [vmem:[%s4863_s3 + $0x1b0] sm:$0xff]  }
  0xae   : > { %3641 = vmatprep.subr.bf16.mxu1 %v4426_v25 }
  0xaf   : > { %3622 = vmatpush3.bf16.msra.mxu0 %v3902_v54 }
  0xb0   : > { %3623 = vmatprep.subr.bf16.mxu0 %v4426_v25 }
  0xb1   : > { %3642 = vmatpush3.bf16.msra.mxu1 %v3905_v55 }
  0xb2   : > { %3643 = vmatprep.subr.bf16.mxu1 %v4426_v25 }
  0xb3   : > { %3624 = vmatpush3.bf16.msra.mxu0 %v3904_v56 }
  0xb4   : > { %3625 = vmatprep.subr.bf16.mxu0 %v4426_v25 }
  0xb5   : > { %3644 = vmatpush3.bf16.msra.mxu1 %v3907_v57  ;;  %v2195_v57 = vld [vmem:[%s2194_s16] sm:$0xf] }
  0xb6   : > { %3645 = vmatprep.subr.bf16.mxu1 %v4426_v25 }
  0xb7   : > { %3626 = vmatpush3.bf16.msra.mxu0 %v3906_v58  ;;  %v2196_v58 = vld [vmem:[%s2194_s16 + $0x4] sm:$0xf] }
  0xb8   : > { %3627 = vmatprep.subr.bf16.mxu0 %v4426_v25 }
  0xb9   : > { %3646 = vmatpush3.bf16.msra.mxu1 %v3909_v59 }
  0xba   : > { %3647 = vmatprep.subr.bf16.mxu1 %v4426_v25 }
  0xbb   : > { %3628 = vmatpush3.bf16.msra.mxu0 %v3908_v60  ;;  %v2093_v60 = vshrl.u32 %v4678_v30, 16 }
  0xbc   : > { %3629 = vmatprep.subr.bf16.mxu0 %v4426_v25 }
  0xbd   : > { %3648 = vmatpush3.bf16.msra.mxu1 %v3911_v61  ;;  %v2097_v61 = vrot.slane %v2095_v49, 1 }
  0xbe   : > { %3649 = vmatprep.subr.bf16.mxu1 %v4426_v25 }
  0xbf   : > { %3630 = vmatpush3.bf16.msra.mxu0 %v3910_v62  ;;  %v3946_v62 = vld [vmem:[%s4862_s2 + $0x238] sm:$0xff]  }
  0xc0   : > { %3631 = vmatprep.subr.bf16.mxu0 %v4426_v25 }
  0xc1   : > { %3650 = vmatpush3.bf16.msra.mxu1 %v3913_v63  ;;  %v2197_v63 = vmul.bf16 %v2195_v57, %v4661_v24 }
  0xc2   : > { %3651 = vmatprep.subr.bf16.mxu1 %v4426_v25 }
  0xc3   : > { %3632 = vmatpush3.bf16.msra.mxu0 %v3912_v0  ;;  %v2198_v0 = vmul.bf16 %v2196_v58, %v4661_v24 }
  0xc4   : > { %3633 = vmatprep.subr.bf16.mxu0 %v4426_v25 }
  0xc5   : > { %3652 = vmatpush3.bf16.msra.mxu1 %v3915_v3  ;;  %v2098_v3 = vor.u32 %v2097_v61, %v2093_v60  ;;  %v4762_v5 = vcombine.low %v2197_v63, %v2198_v0 }
  0xc6   : > { %3653 = vmatprep.subr.bf16.mxu1 %v4426_v25 }
  0xc7   : > { %3634 = vmatpush3.bf16.msra.mxu0 %v3914_v4  ;;  %v3948_v4 = vld [vmem:[%s4863_s3 + $0x1c0] sm:$0xff]  }
  0xc8   : > { %3659 = vmatprep.subr.bf16.mxu0 %v4426_v25 }
  0xc9   : > { %3654 = vmatpush3.bf16.msra.mxu1 %v3917_v7 }
  0xca   : > { %3679 = vmatprep.subr.bf16.mxu1 %v4426_v25  ;;  %3636 = vmatmul.mubr.bf16.vlgmr.msra.gmra.mrb[20].mxu0 %v4509_v52 }
  0xcb   : > { %3660 = vmatpush3.bf16.msra.mxu0 %v3916_v8  ;;  %3675 = vmatprep.mubr.msk.bf16.mxu0 %vm4007_vm0, %v4426_v25 }
  0xcc   : > { %3656 = vmatmul.mubr.bf16.vlgmr.msra.gmra.mrb[20].mxu1 %v1716_v9  ;;  %3661 = vmatprep.subr.bf16.mxu0 %v4426_v25  ;;  %v3950_v9 = vld [vmem:[%s4863_s3 + $0x1c8] sm:$0xff]  }
  0xcd   : > { %3680 = vmatpush3.bf16.msra.mxu1 %v3919_v10  ;;  %3695 = vmatprep.mubr.msk.bf16.mxu1 %vm4007_vm0, %v4426_v25  ;;  %v3953_v10 = vld [vmem:[%s4863_s3 + $0x208] sm:$0xff]  }
  0xce   : > { %3681 = vmatprep.subr.bf16.mxu1 %v4426_v25 }
  0xcf   : > { %3662 = vmatpush3.bf16.msra.mxu0 %v3918_v11  ;;  %v3952_v11 = vld [vmem:[%s4863_s3 + $0x1d0] sm:$0xff]  }
  0xd0   : > { %3663 = vmatprep.subr.bf16.mxu0 %v4426_v25 }
  0xd1   : > { %3682 = vmatpush3.bf16.msra.mxu1 %v3921_v12  ;;  %v3955_v12 = vld [vmem:[%s4863_s3 + $0x210] sm:$0xff]  }
  0xd2   : > { %3683 = vmatprep.subr.bf16.mxu1 %v4426_v25 }
  0xd3   : > { %3664 = vmatpush3.bf16.msra.mxu0 %v3920_v13  ;;  %v3954_v13 = vld [vmem:[%s4863_s3 + $0x1d8] sm:$0xff]  }
  0xd4   : > { %3665 = vmatprep.subr.bf16.mxu0 %v4426_v25 }
  0xd5   : > { %3684 = vmatpush3.bf16.msra.mxu1 %v3923_v14  ;;  %v3957_v14 = vld [vmem:[%s4863_s3 + $0x218] sm:$0xff]  }
  0xd6   : > { %3685 = vmatprep.subr.bf16.mxu1 %v4426_v25 }
  0xd7   : > { %3666 = vmatpush3.bf16.msra.mxu0 %v3922_v15  ;;  %v3956_v15 = vld [vmem:[%s4863_s3 + $0x1e0] sm:$0xff]  }
  0xd8   : > { %3667 = vmatprep.subr.bf16.mxu0 %v4426_v25 }
  0xd9   : > { %3686 = vmatpush3.bf16.msra.mxu1 %v3925_v16  ;;  %v3959_v16 = vld [vmem:[%s4863_s3 + $0x220] sm:$0xff]  }
  0xda   : > { %3687 = vmatprep.subr.bf16.mxu1 %v4426_v25 }
  0xdb   : > { %3668 = vmatpush3.bf16.msra.mxu0 %v3924_v17 }
  0xdc   : > { %3669 = vmatprep.subr.bf16.mxu0 %v4426_v25 }
  0xdd   : > { %3688 = vmatpush3.bf16.msra.mxu1 %v3927_v18  ;;  %v3958_v18 = vld [vmem:[%s4863_s3 + $0x1e8] sm:$0xff]  }
  0xde   : > { %3689 = vmatprep.subr.bf16.mxu1 %v4426_v25 }
  0xdf   : > { %3670 = vmatpush3.bf16.msra.mxu0 %v3926_v19 }
  0xe0   : > { %3671 = vmatprep.subr.bf16.mxu0 %v4426_v25 }
  0xe1   : > { %3690 = vmatpush3.bf16.msra.mxu1 %v3929_v20  ;;  %v3961_v20 = vld [vmem:[%s4863_s3 + $0x228] sm:$0xff]  }
  0xe2   : > { %3691 = vmatprep.subr.bf16.mxu1 %v4426_v25 }
  0xe3   : > { %3672 = vmatpush3.bf16.msra.mxu0 %v3928_v21 }
  0xe4   : > { %3673 = vmatprep.subr.bf16.mxu0 %v4426_v25 }
  0xe5   : > { %3692 = vmatpush3.bf16.msra.mxu1 %v3931_v26 }
  0xe6   : > { %3693 = vmatprep.subr.bf16.mxu1 %v4426_v25 }
  0xe7   : > { %3674 = vmatpush3.bf16.msra.mxu0 %v3930_v28 }
  0xe8   : > { %3699 = vmatprep.subr.bf16.mxu0 %v4426_v25 }
  0xe9   : > { %3694 = vmatpush3.bf16.msra.mxu1 %v3933_v29  ;;  %v2451_v29 = vshll.u32 %v4762_v5, 16 }
  0xea   : > { %3719 = vmatprep.subr.bf16.mxu1 %v4426_v25  ;;  %3676 = vmatmul.mubr.bf16.vlgmr.msra.gmra.mrb[24].mxu0 %v4678_v30 }
  0xeb   : > { %3700 = vmatpush3.bf16.msra.mxu0 %v3932_v31  ;;  %3715 = vmatprep.mubr.msk.bf16.mxu0 %vm4007_vm0, %v4426_v25 }
  0xec   : > { %3696 = vmatmul.mubr.bf16.vlgmr.msra.gmra.mrb[24].mxu1 %v4678_v30  ;;  %3701 = vmatprep.subr.bf16.mxu0 %v4426_v25 }
  0xed   : > { %3720 = vmatpush3.bf16.msra.mxu1 %v3935_v32  ;;  %3735 = vmatprep.mubr.msk.bf16.mxu1 %vm4007_vm0, %v4426_v25 }
  0xee   : > { %3721 = vmatprep.subr.bf16.mxu1 %v4426_v25 }
  0xef   : > { %3702 = vmatpush3.bf16.msra.mxu0 %v3934_v33  ;;  %v3963_v33 = vld [vmem:[%s4863_s3 + $0x230] sm:$0xff]  }
  0xf0   : > { %3703 = vmatprep.subr.bf16.mxu0 %v4426_v25 }
  0xf1   : > { %3722 = vmatpush3.bf16.msra.mxu1 %v3937_v34 }
  0xf2   : > { %3723 = vmatprep.subr.bf16.mxu1 %v4426_v25 }
  0xf3   : > { %3704 = vmatpush3.bf16.msra.mxu0 %v3936_v35  ;;  %v3962_v35 = vld [vmem:[%s4863_s3 + $0x1f8] sm:$0xff]  }
  0xf4   : > { %3705 = vmatprep.subr.bf16.mxu0 %v4426_v25 }
  0xf5   : > { %3724 = vmatpush3.bf16.msra.mxu1 %v3939_v36  ;;  %v2449_v36 = vshrl.u32 %v4762_v5, 16 }
  0xf6   : > { %3725 = vmatprep.subr.bf16.mxu1 %v4426_v25 }
  0xf7   : > { %3706 = vmatpush3.bf16.msra.mxu0 %v3938_v37  ;;  %v2453_v37 = vrot.slane %v2451_v29, 1 }
  0xf8   : > { %3707 = vmatprep.subr.bf16.mxu0 %v4426_v25 }
  0xf9   : > { %3726 = vmatpush3.bf16.msra.mxu1 %v3941_v38  ;;  %v3964_v38 = vld [vmem:[%s4863_s3 + $0x238] sm:$0xff]  }
  0xfa   : > { %3727 = vmatprep.subr.bf16.mxu1 %v4426_v25 }
  0xfb   : > { %3708 = vmatpush3.bf16.msra.mxu0 %v3940_v39  ;;  %v2454_v39 = vor.u32 %v2453_v37, %v2449_v36 }
  0xfc   : > { %3709 = vmatprep.subr.bf16.mxu0 %v4426_v25 }
  0xfd   : > { %3728 = vmatpush3.bf16.msra.mxu1 %v3943_v40  ;;  %v476_v45 = vpop.f32.mrb[0].mxu0 }
  0xfe   : > { %3729 = vmatprep.subr.bf16.mxu1 %v4426_v25  ;;  %v483_v46 = vadd.f32 %v476_v45, %v370_v41  ;;  %v3437_v47 = vpop.f32.mrb[1].mxu0 }
  0xff   : > { %v4737_v48 = vpop.f32.mrb[0].mxu1  ;;  %v479_v50 = vpop.f32.mrb[2].mxu0  ;;  %3710 = vmatpush3.bf16.msra.mxu0 %v3942_v42 }
 0x100   : > { %v3457_v52 = vpop.f32.mrb[1].mxu1  ;;  %485 = vst [vmem:[#allocation2 + $0x1] sm:$0xff] %v483_v46  ;;  %v484_v54 = vadd.f32 %v479_v50, %v371_v44  ;;  %v3438_v55 = vpop.f32.mrb[3].mxu0  ;;  %3711 = vmatprep.subr.bf16.mxu0 %v4426_v25 }
 0x101   : > { %3730 = vmatpush3.bf16.msra.mxu1 %v3945_v43  ;;  %v591_v56 = vpop.f32.mrb[2].mxu1 }
 0x102   : > { %v3458_v59 = vpop.f32.mrb[3].mxu1  ;;  %3731 = vmatprep.subr.bf16.mxu1 %v4426_v25  ;;  %486 = vst [vmem:[#allocation2 + $0x9] sm:$0x7f] %v484_v54 }
 0x103   : > { %3712 = vmatpush3.bf16.msra.mxu0 %v3944_v51 }
 0x104   : > { %3713 = vmatprep.subr.bf16.mxu0 %v4426_v25 }
 0x105   : > { %3732 = vmatpush3.bf16.msra.mxu1 %v3947_v53 }
 0x106   : > { %3733 = vmatprep.subr.bf16.mxu1 %v4426_v25 }
 0x107   : > { %3714 = vmatpush3.bf16.msra.mxu0 %v3946_v62  ;;  %v487_v17 = vld [vmem:[#allocation2] sm:$0xff] }
 0x108   : > { %3739 = vmatprep.subr.bf16.mxu0 %v4426_v25  ;;  %v595_v19 = vadd.f32 %v4737_v48, %v487_v17 }
 0x109   : > { %3734 = vmatpush3.bf16.msra.mxu1 %v3949_v2  ;;  %v488_v7 = vld [vmem:[#allocation2 + $0x8] sm:$0xff] }
 0x10a   : > { %3759 = vmatprep.subr.bf16.mxu1 %v4426_v25  ;;  %v596_v8 = vadd.f32 %v591_v56, %v488_v7  ;;  %3716 = vmatmul.mubr.bf16.vlgmr.msra.gmra.mrb[28].mxu0 %v2098_v3 }
 0x10b   : > { %3740 = vmatpush3.bf16.msra.mxu0 %v3948_v4  ;;  %3755 = vmatprep.mubr.msk.bf16.mxu0 %vm4007_vm0, %v4426_v25 }
 0x10c   : > { %3736 = vmatmul.mubr.bf16.vlgmr.msra.gmra.mrb[28].mxu1 %v4762_v5  ;;  %598 = vst [vmem:[#allocation2 + $0x8] sm:$0xff] %v596_v8  ;;  %3741 = vmatprep.subr.bf16.mxu0 %v4426_v25 }
 0x10d   : > { %3760 = vmatpush3.bf16.msra.mxu1 %v3951_v6  ;;  %3775 = vmatprep.mubr.msk.bf16.mxu1 %vm4007_vm0, %v4426_v25 }
 0x10e   : > { %3761 = vmatprep.subr.bf16.mxu1 %v4426_v25 }
 0x10f   : > { %3742 = vmatpush3.bf16.msra.mxu0 %v3950_v9 }
 0x110   : > { %3743 = vmatprep.subr.bf16.mxu0 %v4426_v25 }
 0x111   : > { %3762 = vmatpush3.bf16.msra.mxu1 %v3953_v10 }
 0x112   : > { %3763 = vmatprep.subr.bf16.mxu1 %v4426_v25 }
 0x113   : > { %3744 = vmatpush3.bf16.msra.mxu0 %v3952_v11  ;;  %v600_v26 = vld [vmem:[#allocation2 + $0x8] sm:$0x7f] }
 0x114   : > { %3745 = vmatprep.subr.bf16.mxu0 %v4426_v25 }
 0x115   : > { %3764 = vmatpush3.bf16.msra.mxu1 %v3955_v12 }
 0x116   : > { %3765 = vmatprep.subr.bf16.mxu1 %v4426_v25 }
 0x117   : > { %3746 = vmatpush3.bf16.msra.mxu0 %v3954_v13 }
 0x118   : > { %3747 = vmatprep.subr.bf16.mxu0 %v4426_v25 }
 0x119   : > { %3766 = vmatpush3.bf16.msra.mxu1 %v3957_v14 }
 0x11a   : > { %3767 = vmatprep.subr.bf16.mxu1 %v4426_v25 }
 0x11b   : > { %3748 = vmatpush3.bf16.msra.mxu0 %v3956_v15 }
 0x11c   : > { %3749 = vmatprep.subr.bf16.mxu0 %v4426_v25 }
 0x11d   : > { %3768 = vmatpush3.bf16.msra.mxu1 %v3959_v16  ;;  %v708_v21 = vpop.f32.mrb[4].mxu0 }
 0x11e   : > { %3769 = vmatprep.subr.bf16.mxu1 %v4426_v25  ;;  %v715_v22 = vadd.f32 %v708_v21, %v595_v19  ;;  %v3477_v23 = vpop.f32.mrb[5].mxu0 }
 0x11f   : > { %v831_v24 = vpop.f32.mrb[4].mxu1  ;;  %v711_v1 = vpop.f32.mrb[6].mxu0  ;;  %3750 = vmatpush3.bf16.msra.mxu0 %v3958_v18 }
 0x120   : > { %v3497_v28 = vpop.f32.mrb[5].mxu1  ;;  %717 = vst [vmem:[#allocation2] sm:$0xff] %v715_v22  ;;  %v716_v30 = vadd.f32 %v711_v1, %v600_v26  ;;  %v3478_v31 = vpop.f32.mrb[7].mxu0  ;;  %3751 = vmatprep.subr.bf16.mxu0 %v4426_v25 }
 0x121   : > { %3770 = vmatpush3.bf16.msra.mxu1 %v3961_v20  ;;  %v834_v32 = vpop.f32.mrb[6].mxu1 }
 0x122   : > { %v3498_v34 = vpop.f32.mrb[7].mxu1  ;;  %3771 = vmatprep.subr.bf16.mxu1 %v4426_v25  ;;  %718 = vst [vmem:[#allocation2 + $0x8] sm:$0x7f] %v716_v30 }
 0x123   : > { %3752 = vmatpush3.bf16.msra.mxu0 %v3960_v27 }
 0x124   : > { %3753 = vmatprep.subr.bf16.mxu0 %v4426_v25 }
 0x125   : > { %3772 = vmatpush3.bf16.msra.mxu1 %v3963_v33 }
 0x126   : > { %3773 = vmatprep.subr.bf16.mxu1 %v4426_v25 }
 0x127   : > { %3754 = vmatpush3.bf16.msra.mxu0 %v3962_v35 }
 0x129   : > { %3774 = vmatpush3.bf16.msra.mxu1 %v3964_v38  ;;  %v726_v40 = vld [vmem:[#allocation2 + $0x9] sm:$0x7f]  ;;  %v725_v41 = vld [vmem:[#allocation2 + $0x1] sm:$0xff] }
 0x12a   : > { %v838_v42 = vadd.f32 %v831_v24, %v725_v41  ;;  %v839_v43 = vadd.f32 %v834_v32, %v726_v40  ;;  %3756 = vmatmul.mubr.bf16.vlgmr.msra.gmra.mrb[32].mxu0 %v4762_v5 }
 0x12c   : > { %3776 = vmatmul.mubr.bf16.vlgmr.msra.gmra.mrb[32].mxu1 %v2454_v39  ;;  %840 = vst [vmem:[#allocation2 + $0x1] sm:$0xff] %v838_v42  ;;  %841 = vst [vmem:[#allocation2 + $0x9] sm:$0x7f] %v839_v43 }
 0x133   : > { %v842_v44 = vld [vmem:[#allocation2] sm:$0xff]  ;;  %v843_v49 = vld [vmem:[#allocation2 + $0x8] sm:$0xff] }
 0x13d   : > { %v943_v45 = vpop.f32.mrb[8].mxu0 }
 0x13e   : > { %v950_v46 = vadd.f32 %v943_v45, %v842_v44  ;;  %v3517_v47 = vpop.f32.mrb[9].mxu0 }
 0x13f   : > { %v1063_v48 = vpop.f32.mrb[8].mxu1  ;;  %v946_v50 = vpop.f32.mrb[10].mxu0 }
 0x140   : > { %v3537_v25 = vpop.f32.mrb[9].mxu1  ;;  %v951_v51 = vadd.f32 %v946_v50, %v843_v49  ;;  %v3518_v52 = vpop.f32.mrb[11].mxu0  ;;  %v1070_v53 = vadd.f32 %v1063_v48, %v950_v46 }
 0x141   : > { %v1066_v54 = vpop.f32.mrb[10].mxu1 }
 0x142   : > { %v3538_v55 = vpop.f32.mrb[11].mxu1  ;;  %953 = vst [vmem:[#allocation2 + $0x8] sm:$0xff] %v951_v51  ;;  %1072 = vst [vmem:[#allocation2] sm:$0xff] %v1070_v53 }
 0x149   : > { %v955_v56 = vld [vmem:[#allocation2 + $0x8] sm:$0x7f] }
 0x14a   : > { %v1071_v57 = vadd.f32 %v1066_v54, %v955_v56 }
 0x14c   : > { %1073 = vst [vmem:[#allocation2 + $0x8] sm:$0x7f] %v1071_v57 }
 0x153   : > { %v1105_v58 = vld [vmem:[#allocation2 + $0x1] sm:$0xff]  ;;  %v1106_v63 = vld [vmem:[#allocation2 + $0x9] sm:$0x7f] }
 0x15d   : > { %v1212_v59 = vpop.f32.mrb[12].mxu0 }
 0x15e   : > { %v1219_v60 = vadd.f32 %v1212_v59, %v1105_v58  ;;  %v3557_v61 = vpop.f32.mrb[13].mxu0 }
 0x15f   : > { %v1324_v62 = vpop.f32.mrb[12].mxu1  ;;  %v1215_v0 = vpop.f32.mrb[14].mxu0 }
 0x160   : > { %v3577_v2 = vpop.f32.mrb[13].mxu1  ;;  %1221 = vst [vmem:[#allocation2 + $0x1] sm:$0xff] %v1219_v60  ;;  %v1220_v3 = vadd.f32 %v1215_v0, %v1106_v63  ;;  %v3558_v4 = vpop.f32.mrb[15].mxu0 }
 0x161   : > { %v1327_v5 = vpop.f32.mrb[14].mxu1 }
 0x162   : > { %v3578_v6 = vpop.f32.mrb[15].mxu1  ;;  %1222 = vst [vmem:[#allocation2 + $0x9] sm:$0x7f] %v1220_v3 }
 0x167   : > { %v1223_v9 = vld [vmem:[#allocation2] sm:$0xff] }
 0x168   : > { %v1331_v10 = vadd.f32 %v1324_v62, %v1223_v9 }
 0x169   : > { %v1224_v7 = vld [vmem:[#allocation2 + $0x8] sm:$0xff] }
 0x16a   : > { %v1332_v8 = vadd.f32 %v1327_v5, %v1224_v7 }
 0x16c   : > { %1334 = vst [vmem:[#allocation2 + $0x8] sm:$0xff] %v1332_v8 }
 0x173   : > { %v1336_v15 = vld [vmem:[#allocation2 + $0x8] sm:$0x7f] }
 0x17d   : > { %v1444_v11 = vpop.f32.mrb[16].mxu0 }
 0x17e   : > { %v1451_v12 = vadd.f32 %v1444_v11, %v1331_v10  ;;  %v3597_v13 = vpop.f32.mrb[17].mxu0 }
 0x17f   : > { %v1568_v14 = vpop.f32.mrb[16].mxu1  ;;  %v1447_v16 = vpop.f32.mrb[18].mxu0 }
 0x180   : > { %v3617_v17 = vpop.f32.mrb[17].mxu1  ;;  %1453 = vst [vmem:[#allocation2] sm:$0xff] %v1451_v12  ;;  %v1452_v18 = vadd.f32 %v1447_v16, %v1336_v15  ;;  %v3598_v19 = vpop.f32.mrb[19].mxu0 }
 0x181   : > { %v1571_v20 = vpop.f32.mrb[18].mxu1 }
 0x182   : > { %v3618_v21 = vpop.f32.mrb[19].mxu1  ;;  %1454 = vst [vmem:[#allocation2 + $0x8] sm:$0x7f] %v1452_v18 }
 0x189   : > { %v1461_v22 = vld [vmem:[#allocation2 + $0x1] sm:$0xff]  ;;  %v1462_v23 = vld [vmem:[#allocation2 + $0x9] sm:$0x7f] }
 0x18a   : > { %v1575_v24 = vadd.f32 %v1568_v14, %v1461_v22  ;;  %v1576_v26 = vadd.f32 %v1571_v20, %v1462_v23 }
 0x18c   : > { %1577 = vst [vmem:[#allocation2 + $0x1] sm:$0xff] %v1575_v24  ;;  %1578 = vst [vmem:[#allocation2 + $0x9] sm:$0x7f] %v1576_v26 }
 0x193   : > { %v1579_v1 = vld [vmem:[#allocation2] sm:$0xff]  ;;  %v1580_v31 = vld [vmem:[#allocation2 + $0x8] sm:$0xff] }
 0x19d   : > { %v1680_v27 = vpop.f32.mrb[20].mxu0 }
 0x19e   : > { %v1687_v28 = vadd.f32 %v1680_v27, %v1579_v1  ;;  %v3637_v29 = vpop.f32.mrb[21].mxu0 }
 0x19f   : > { %v1800_v30 = vpop.f32.mrb[20].mxu1  ;;  %v1683_v32 = vpop.f32.mrb[22].mxu0 }
 0x1a0   : > { %v3657_v33 = vpop.f32.mrb[21].mxu1  ;;  %v1688_v34 = vadd.f32 %v1683_v32, %v1580_v31  ;;  %v3638_v35 = vpop.f32.mrb[23].mxu0  ;;  %v1807_v36 = vadd.f32 %v1800_v30, %v1687_v28 }
 0x1a1   : > { %v1803_v37 = vpop.f32.mrb[22].mxu1 }
 0x1a2   : > { %v3658_v38 = vpop.f32.mrb[23].mxu1  ;;  %1690 = vst [vmem:[#allocation2 + $0x8] sm:$0xff] %v1688_v34  ;;  %1809 = vst [vmem:[#allocation2] sm:$0xff] %v1807_v36 }
 0x1a9   : > { %v1692_v39 = vld [vmem:[#allocation2 + $0x8] sm:$0x7f] }
 0x1aa   : > { %v1808_v40 = vadd.f32 %v1803_v37, %v1692_v39 }
 0x1ac   : > { %1810 = vst [vmem:[#allocation2 + $0x8] sm:$0x7f] %v1808_v40 }
 0x1b3   : > { %v1843_v41 = vld [vmem:[#allocation2 + $0x1] sm:$0xff]  ;;  %v1844_v46 = vld [vmem:[#allocation2 + $0x9] sm:$0x7f] }
 0x1bd   : > { %v1950_v42 = vpop.f32.mrb[24].mxu0 }
 0x1be   : > { %v1957_v43 = vadd.f32 %v1950_v42, %v1843_v41  ;;  %v3677_v44 = vpop.f32.mrb[25].mxu0 }
 0x1bf   : > { %v2062_v45 = vpop.f32.mrb[24].mxu1  ;;  %v1953_v47 = vpop.f32.mrb[26].mxu0 }
 0x1c0   : > { %v3697_v48 = vpop.f32.mrb[25].mxu1  ;;  %1959 = vst [vmem:[#allocation2 + $0x1] sm:$0xff] %v1957_v43  ;;  %v1958_v49 = vadd.f32 %v1953_v47, %v1844_v46  ;;  %v3678_v50 = vpop.f32.mrb[27].mxu0 }
 0x1c1   : > { %v2065_v25 = vpop.f32.mrb[26].mxu1 }
 0x1c2   : > { %v3698_v51 = vpop.f32.mrb[27].mxu1  ;;  %1960 = vst [vmem:[#allocation2 + $0x9] sm:$0x7f] %v1958_v49 }
 0x1c7   : > { %v1961_v54 = vld [vmem:[#allocation2] sm:$0xff] }
 0x1c8   : > { %v2069_v55 = vadd.f32 %v2062_v45, %v1961_v54 }
 0x1c9   : > { %v1962_v52 = vld [vmem:[#allocation2 + $0x8] sm:$0xff] }
 0x1ca   : > { %v2070_v53 = vadd.f32 %v2065_v25, %v1962_v52 }
 0x1cc   : > { %2072 = vst [vmem:[#allocation2 + $0x8] sm:$0xff] %v2070_v53 }
 0x1d3   : > { %v2074_v60 = vld [vmem:[#allocation2 + $0x8] sm:$0x7f] }
 0x1dd   : > { %v2182_v56 = vpop.f32.mrb[28].mxu0 }
 0x1de   : > { %v2189_v57 = vadd.f32 %v2182_v56, %v2069_v55  ;;  %v3717_v58 = vpop.f32.mrb[29].mxu0 }
 0x1df   : > { %v2306_v59 = vpop.f32.mrb[28].mxu1  ;;  %v2185_v61 = vpop.f32.mrb[30].mxu0 }
 0x1e0   : > { %v3737_v62 = vpop.f32.mrb[29].mxu1  ;;  %2191 = vst [vmem:[#allocation2] sm:$0xff] %v2189_v57  ;;  %v2190_v63 = vadd.f32 %v2185_v61, %v2074_v60  ;;  %v3718_v0 = vpop.f32.mrb[31].mxu0 }
 0x1e1   : > { %v2309_v2 = vpop.f32.mrb[30].mxu1 }
 0x1e2   : > { %v3738_v3 = vpop.f32.mrb[31].mxu1  ;;  %2192 = vst [vmem:[#allocation2 + $0x8] sm:$0x7f] %v2190_v63 }
 0x1e9   : > { %v2199_v4 = vld [vmem:[#allocation2 + $0x1] sm:$0xff]  ;;  %v2200_v5 = vld [vmem:[#allocation2 + $0x9] sm:$0x7f] }
 0x1ea   : > { %v2313_v6 = vadd.f32 %v2306_v59, %v2199_v4  ;;  %v2314_v7 = vadd.f32 %v2309_v2, %v2200_v5 }
 0x1ec   : > { %2315 = vst [vmem:[#allocation2 + $0x1] sm:$0xff] %v2313_v6  ;;  %2316 = vst [vmem:[#allocation2 + $0x9] sm:$0x7f] %v2314_v7 }
 0x1f3   : > { %v2317_v8 = vld [vmem:[#allocation2] sm:$0xff]  ;;  %v2318_v13 = vld [vmem:[#allocation2 + $0x8] sm:$0xff] }
 0x1fd   : > { %v2418_v9 = vpop.f32.mrb[32].mxu0 }
 0x1fe   : > { %v2425_v10 = vadd.f32 %v2418_v9, %v2317_v8  ;;  %v3757_v11 = vpop.f32.mrb[33].mxu0 }
 0x1ff   : > { %v2538_v12 = vpop.f32.mrb[32].mxu1  ;;  %v2421_v14 = vpop.f32.mrb[34].mxu0 }
 0x200   : > { %v3777_v15 = vpop.f32.mrb[33].mxu1  ;;  %v2426_v16 = vadd.f32 %v2421_v14, %v2318_v13  ;;  %v3758_v17 = vpop.f32.mrb[35].mxu0  ;;  %v2545_v18 = vadd.f32 %v2538_v12, %v2425_v10 }
 0x201   : > { %v2541_v19 = vpop.f32.mrb[34].mxu1 }
 0x202   : > { %v3778_v20 = vpop.f32.mrb[35].mxu1  ;;  %2428 = vst [vmem:[#allocation2 + $0x8] sm:$0xff] %v2426_v16  ;;  %2547 = vst [vmem:[#allocation2] sm:$0xff] %v2545_v18  ;;  %v2569_v24 = vmul.f32 %v2545_v18, %v2545_v18 }
 0x209   : > { %v2430_v21 = vld [vmem:[#allocation2 + $0x8] sm:$0x7f] }
 0x20a   : > { %v2546_v22 = vadd.f32 %v2541_v19, %v2430_v21 }
 0x20c   : > { %2548 = vst [vmem:[#allocation2 + $0x8] sm:$0x7f] %v2546_v22 }
 0x213   : > { %v2550_v23 = vld [vmem:[#allocation2 + $0x8] sm:$0xff] }
 0x214   : > { %v3255_v26 = vpack.c.bf16 %v2550_v23, %v2545_v18  ;;  %v2561_v1 = vadd.f32 %v2550_v23, %v2545_v18  ;;  %v2570_v27 = vmul.f32 %v2550_v23, %v2550_v23 }
 0x216   : > { %3256 = vst [vmem:[%s318_s28] sm:$0xff] %v3255_v26   ;;  %v2562_v28 = vrot.slane %v2561_v1, 4  ;;  %v2571_v29 = vadd.f32 %v2570_v27, %v2569_v24 }
 0x218   : > { %v2563_v30 = vadd.f32 %v2562_v28, %v2561_v1  ;;  %v2572_v31 = vrot.slane %v2571_v29, 4 }
 0x21a   : > { %v2564_v32 = vrot.slane %v2563_v30, 2  ;;  %v2573_v33 = vadd.f32 %v2572_v31, %v2571_v29 }
 0x21c   : > { %v2565_v34 = vadd.f32 %v2564_v32, %v2563_v30  ;;  %v2574_v35 = vrot.slane %v2573_v33, 2 }
 0x21e   : > { %v2566_v36 = vrot.slane %v2565_v34, 1  ;;  %v2575_v37 = vadd.f32 %v2574_v35, %v2573_v33 }
 0x220   : > { %v2567_v38 = vadd.f32 %v2566_v36, %v2565_v34  ;;  %v2576_v39 = vrot.slane %v2575_v37, 1 }
 0x222   : > { %2568 = vst [vmem:[%s326_s13] sm:$0xff] %v2567_v38  ;;  %v2577_v40 = vadd.f32 %v2576_v39, %v2575_v37 }
 0x224   : > { %2578 = vst [vmem:[%s334_s20] sm:$0xff] %v2577_v40 }
 0x225 PF: > { %s17_s25 = sadd.s32 1, %s4004_s25   ;;  %s4869_s21 = smov %s3996_s23 }
 0x226   : > { %p14_p10 = scmp.ge.s32.totalorder %s17_s25, 10   ;;  %s4870_s22 = smov %s4000_s24 }
 0x227   : > { %s4871_s23 = smov %s4874_s26  ;;  %s4872_s24 = smov %s4878_s27 }
 0x228   :  { %16 = sbr.rel (!%p14_p10) target bundleno = 3 (0x3), region = 115 }

// kernel: decoder_block3d_forward.6
= control target key start
LH: loop header
LB: loop body
LE: loop exit
PB: predicated region body
PF: predicated region fallthrough
CT: control target
= control target key end

     0   :  { %s2387_s21 = smov 0   ;;  %s2389_s22 = smov 0   ;;  %s2853_s0 = inlined_call_operand.vmem [shape: bf16[2,4,16,128], index: 0, kind: input, shape index: {}]   ;;  %s2854_s1 = inlined_call_operand.vmem [shape: bf16[3,3,128,128], index: 1, kind: input, shape index: {}]   ;;  %s2855_s2 = inlined_call_operand.vmem [shape: f32[1,128], index: 2, kind: input, shape index: {}]   ;;  %s2856_s3 = inlined_call_operand.vmem [shape: f32[1,128], index: 3, kind: input, shape index: {}]   ;;  %s2857_s4 = inlined_call_operand.vmem [shape: bf16[2,4,16,128], index: 4, kind: output, shape index: {0}]   ;;  %s2858_s5 = inlined_call_operand.vmem [shape: f32[2,4,8,128], index: 5, kind: output, shape index: {1}]   ;;  %s2859_s6 = inlined_call_operand.vmem [shape: f32[2,4,8,128], index: 6, kind: output, shape index: {2}]  }
   0x1   :  { %s2391_s23 = smov 0   ;;  %s2393_s24 = smov 0  }
   0x2   :  { %s2395_s25 = smov 0  }
   0x3 LB: > { %s26_s26 = sadd.s32 1, %s2340_s23  ;;  %s29_s27 = sadd.s32 1, %s2344_s24  ;;  %s2348_s25 = sphi %s2395_s25, %s17_s25   ;;  %s2344_s24 = sphi %s2393_s24, %s2866_s24   ;;  %s2340_s23 = sphi %s2391_s23, %s2865_s23   ;;  %s2336_s22 = sphi %s2389_s22, %s2864_s22   ;;  %s2332_s21 = sphi %s2387_s21, %s2863_s21  }
   0x4   : > { %p27_p0 = scmp.ge.s32.totalorder %s26_s26, 4  ;;  %p1666_p1 = scmp.ge.s32.totalorder %s2348_s25, 1 }
   0x5   : > { %p235_p2 = scmp.lt.s32.totalorder %s2348_s25, 9 }
   0x6   : > { %s2868_s26 = smov (%p27_p0, %s26_s26), 0  ;;  %s2870_s27 = smov (!%p27_p0, %s29_s27), %s2344_s24 }
   0x7   : > { %p236_p3 = pnand %p1666_p1, %p235_p2  ;;  %p31_p4 = scmp.ge.s32.totalorder %s2870_s27, 2 }
   0x8   : > { %v2238_v0 = vld [vmem:[%s2854_s1] sm:$0xff] (!%p236_p3)   ;;  %v2350_v1 = vmov (!%p236_p3), 0.0   ;;  %v2239_v2 = vld [vmem:[%s2854_s1 + $0x8] sm:$0xff] (!%p236_p3)   ;;  %vm2351_vm0 = vmmov (!%p236_p3), 0   ;;  %p285_p5 = scmp.lt.s32.totalorder (!%p236_p3), %s2336_s22, 1  ;;  %s320_s10 = sadd.s32 (!%p236_p3), 4294967295, %s2332_s21 }
   0x9   : > { %s2872_s27 = smov (%p31_p4, %s2870_s27), 0  ;;  %239 = sbr.rel (%p236_p3) target bundleno = 411 (0x19b), region = 36 }
   0xa   : > { %2016 = vmatprep.subr.bf16.mxu0 (!%p236_p3), %v2350_v1  ;;  %316 = vst [vmem:[#allocation2] sm:$0xff] (!%p236_p3), %v2350_v1  ;;  %317 = vst [vmem:[#allocation2 + $0x8] sm:$0xff] (!%p236_p3), %v2350_v1  ;;  %2036 = vmatprep.subr.bf16.mxu1 (!%p236_p3), %v2350_v1  ;;  %v2241_v3 = vld [vmem:[%s2854_s1 + $0x40] sm:$0xff] (!%p236_p3)   ;;  %v2243_v4 = vld [vmem:[%s2854_s1 + $0x48] sm:$0xff] (!%p236_p3)   ;;  %p321_p6 = scmp.gt.s32.totalorder (!%p236_p3), %s320_s10, 0  ;;  %p1676_p7 = scmp.lt.s32.totalorder (!%p236_p3), %s320_s10, 3 }
   0xb   : > { %2017 = vmatpush3.bf16.msra.mxu0 (!%p236_p3), %v2238_v0  ;;  %2032 = vmatprep.mubr.msk.bf16.mxu0 (!%p236_p3), %vm2351_vm0, %v2350_v1  ;;  %v2240_v5 = vld [vmem:[%s2854_s1 + $0x10] sm:$0xff] (!%p236_p3)   ;;  %p325_p8 = scmp.ge.s32.totalorder (!%p236_p3), %s320_s10, 0  ;;  %v2242_v7 = vld [vmem:[%s2854_s1 + $0x18] sm:$0xff] (!%p236_p3)   ;;  %p326_p9 = scmp.lt.s32.totalorder (!%p236_p3), %s320_s10, 4  ;;  %v2244_v8 = vld [vmem:[%s2854_s1 + $0x20] sm:$0xff] (!%p236_p3)  }
   0xc   : > { %2018 = vmatprep.subr.bf16.mxu0 (!%p236_p3), %v2350_v1  ;;  %2052 = vmatprep.mubr.msk.bf16.mxu1 (!%p236_p3), %vm2351_vm0, %v2350_v1  ;;  %v2245_v6 = vld [vmem:[%s2854_s1 + $0x50] sm:$0xff] (!%p236_p3)   ;;  %v2247_v9 = vld [vmem:[%s2854_s1 + $0x58] sm:$0xff] (!%p236_p3)   ;;  %v2481_v10 = vld [vmem:[%s2855_s2] ss:$0 sm:$0xff] (!%p236_p3)  ;;  %p292_p11 = scmp.lt.s32.totalorder (!%p236_p3), %s2332_s21, 3  ;;  %p703_p12 = scmp.gt.s32.totalorder (!%p236_p3), %s2332_s21, 0 }
   0xd   : > { %2037 = vmatpush3.bf16.msra.mxu1 (!%p236_p3), %v2241_v3  ;;  %p2472_p10 = pnand (!%p236_p3), %p326_p9, %p325_p8  ;;  %v2486_v11 = vld [vmem:[%s2856_s3] ss:$0 sm:$0xff] (!%p236_p3)  ;;  %v2246_v18 = vld [vmem:[%s2854_s1 + $0x28] sm:$0xff] (!%p236_p3)   ;;  %v2248_v21 = vld [vmem:[%s2854_s1 + $0x30] sm:$0xff] (!%p236_p3)   ;;  %p707_p13 = scmp.ge.s32.totalorder (!%p236_p3), %s2332_s21, 0 }
   0xe   : > { %2038 = vmatprep.subr.bf16.mxu1 (!%p236_p3), %v2350_v1  ;;  %v2249_v15 = vld [vmem:[%s2854_s1 + $0x60] sm:$0xff] (!%p236_p3)   ;;  %v2251_v22 = vld [vmem:[%s2854_s1 + $0x68] sm:$0xff] (!%p236_p3)   ;;  %v2253_v28 = vld [vmem:[%s2854_s1 + $0x70] sm:$0xff] (!%p236_p3)   ;;  %p708_p0 = scmp.lt.s32.totalorder (!%p236_p3), %s2332_s21, 4 }
   0xf   : > { %2019 = vmatpush3.bf16.msra.mxu0 (!%p236_p3), %v2239_v2  ;;  %v2250_v29 = vld [vmem:[%s2854_s1 + $0x38] sm:$0xff] (!%p236_p3)   ;;  %v2252_v32 = vld [vmem:[%s2854_s1 + $0x80] sm:$0xff] (!%p236_p3)   ;;  %v2254_v34 = vld [vmem:[%s2854_s1 + $0x88] sm:$0xff] (!%p236_p3)  }
  0x10   : > { %s2874_s22 = smov (!%p285_p5, %s2336_s22), 1  ;;  %2020 = vmatprep.subr.bf16.mxu0 %v2350_v1  ;;  %v2255_v31 = vld [vmem:[%s2854_s1 + $0x78] sm:$0xff]   ;;  %v2257_v33 = vld [vmem:[%s2854_s1 + $0xc0] sm:$0xff]   ;;  %v2259_v35 = vld [vmem:[%s2854_s1 + $0xc8] sm:$0xff]   ;;  %p2579_p1 = pnand %p708_p0, %p707_p13 }
  0x11   : > { %s1906_s15 = sshll.u32 %s2874_s22, 5  ;;  %2039 = vmatpush3.bf16.msra.mxu1 %v2243_v4  ;;  %s1670_s30 = sshll.u32 %s2874_s22, 3  ;;  %v2256_v36 = vld [vmem:[%s2854_s1 + $0x90] sm:$0xff]   ;;  %v2258_v39 = vld [vmem:[%s2854_s1 + $0x98] sm:$0xff]   ;;  %v2260_v43 = vld [vmem:[%s2854_s1 + $0xa0] sm:$0xff]  }
  0x12   : > { %s322_s16 = scalar_select %p321_p6, %s320_s10, 0  ;;  %2040 = vmatprep.subr.bf16.mxu1 %v2350_v1  ;;  %v2261_v37 = vld [vmem:[%s2854_s1 + $0xd0] sm:$0xff]   ;;  %v2263_v42 = vld [vmem:[%s2854_s1 + $0xd8] sm:$0xff]   ;;  %v2265_v46 = vld [vmem:[%s2854_s1 + $0xe0] sm:$0xff]  }
  0x13   : > { %s2459_s28 = scalar_lea.vmem %s2853_s0, %s1906_s15  ;;  %2021 = vmatpush3.bf16.msra.mxu0 %v2240_v5  ;;  %s1672_s13 = sshll.u32 %s2874_s22, 2  ;;  %v2262_v47 = vld [vmem:[%s2854_s1 + $0xa8] sm:$0xff]   ;;  %v2264_v53 = vld [vmem:[%s2854_s1 + $0xb0] sm:$0xff]   ;;  %v2266_v59 = vld [vmem:[%s2854_s1 + $0xb8] sm:$0xff]  }
  0x14   : > { %s2876_s16 = smov (!%p1676_p7, %s322_s16), 3  ;;  %2022 = vmatprep.subr.bf16.mxu0 %v2350_v1  ;;  %v2267_v52 = vld [vmem:[%s2854_s1 + $0xe8] sm:$0xff]   ;;  %v2269_v57 = vld [vmem:[%s2854_s1 + $0xf0] sm:$0xff]   ;;  %v2271_v63 = vld [vmem:[%s2854_s1 + $0xf8] sm:$0xff]  }
  0x15   : > { %s1909_s9 = sshll.u32 %s2876_s16, 3  ;;  %2041 = vmatpush3.bf16.msra.mxu1 %v2245_v6  ;;  %v2268_v0 = vld [vmem:[%s2854_s1 + $0x100] sm:$0xff]  }
  0x16   : > { %s333_s14 = scalar_lea.vmem %s2459_s28, %s1909_s9  ;;  %2042 = vmatprep.subr.bf16.mxu1 %v2350_v1  ;;  %v2273_v6 = vld [vmem:[%s2854_s1 + $0x140] sm:$0xff]  }
  0x17   : > { %2023 = vmatpush3.bf16.msra.mxu0 %v2242_v7  ;;  %v1919_v12 = vld [vmem:[%s333_s14] sm:$0xff]   ;;  %s1681_s18 = scalar_select %p2472_p10, 0, 1  ;;  %v2270_v7 = vld [vmem:[%s2854_s1 + $0x108] sm:$0xff]  }
  0x18   : > { %2024 = vmatprep.subr.bf16.mxu0 %v2350_v1  ;;  %v1920_v13 = vunpack.c.l.bf16 %v1919_v12  ;;  %v1921_v14 = vunpack.c.h.bf16 %v1919_v12  ;;  %s293_s19 = scalar_select %p292_p11, %s2332_s21, 3  ;;  %v2272_v12 = vld [vmem:[%s2854_s1 + $0x110] sm:$0xff]  }
  0x19   : > { %2043 = vmatpush3.bf16.msra.mxu1 %v2247_v9  ;;  %s330_s9 = scvt.s32.f32 %s1681_s18 }
  0x1a   : > { %v344_v16 = vmul.f32 %v1920_v13, %v2481_v10  ;;  %v345_v17 = vmul.f32 %v1921_v14, %v2481_v10  ;;  %2044 = vmatprep.subr.bf16.mxu1 %v2350_v1  ;;  %s1669_s11 = sshll.u32 %s293_s19, 1  ;;  %s2511_s14 = sadd.s32 %s1672_s13, %s293_s19 }
  0x1b   : > { %2025 = vmatpush3.bf16.msra.mxu0 %v2244_v8  ;;  %s2508_s12 = sadd.s32 %s1670_s30, %s1669_s11  ;;  %v356_v25 = vstv %s330_s9  ;;  %s2576_s9 = sadd.s32 1, %s2332_s21 }
  0x1c   : > { %2026 = vmatprep.subr.bf16.mxu0 %v2350_v1  ;;  %v352_v19 = vadd.f32 %v2486_v11, %v344_v16  ;;  %v353_v20 = vadd.f32 %v2486_v11, %v345_v17  ;;  %s704_s7 = scalar_select %p703_p12, %s2332_s21, 0 }
  0x1d   : > { %2045 = vmatpush3.bf16.msra.mxu1 %v2249_v15  ;;  %p1075_p2 = scmp.gt.s32.totalorder %s2576_s9, 0  ;;  %p1822_p3 = scmp.lt.s32.totalorder %s2576_s9, 3 }
  0x1e   : > { %v354_v23 = vmax.f32 %v352_v19, 0.0  ;;  %v355_v24 = vmax.f32 %v353_v20, 0.0  ;;  %2046 = vmatprep.subr.bf16.mxu1 %v2350_v1  ;;  %s2878_s7 = smov (!%p292_p11, %s704_s7), 3  ;;  %p1079_p4 = scmp.ge.s32.totalorder %s2576_s9, 0  ;;  %v2274_v20 = vld [vmem:[%s2854_s1 + $0x118] sm:$0xff]  }
  0x1f   : > { %2027 = vmatpush3.bf16.msra.mxu0 %v2246_v18  ;;  %s1912_s16 = sshll.u32 %s2878_s7, 3  ;;  %p1080_p5 = scmp.lt.s32.totalorder %s2576_s9, 4 }
  0x20   : > { %2028 = vmatprep.subr.bf16.mxu0 %v2350_v1  ;;  %v357_v26 = vmul.f32 %v356_v25, %v354_v23  ;;  %v358_v27 = vmul.f32 %v356_v25, %v355_v24  ;;  %s715_s20 = scalar_lea.vmem %s2459_s28, %s1912_s16  ;;  %v2276_v23 = vld [vmem:[%s2854_s1 + $0x120] sm:$0xff]   ;;  %v2278_v25 = vld [vmem:[%s2854_s1 + $0x128] sm:$0xff]  }
  0x21   : > { %2047 = vmatpush3.bf16.msra.mxu1 %v2251_v22  ;;  %v1923_v38 = vld [vmem:[%s715_s20] sm:$0xff]   ;;  %s1747_s16 = scalar_select %p2579_p1, 0, 1  ;;  %v2279_v22 = vld [vmem:[%s2854_s1 + $0x158] sm:$0xff]  }
  0x22   : > { %2048 = vmatprep.subr.bf16.mxu1 %v2350_v1  ;;  %v2530_v30 = vpack.c.bf16 %v358_v27, %v357_v26  ;;  %v1924_v40 = vunpack.c.l.bf16 %v1923_v38  ;;  %v1925_v41 = vunpack.c.h.bf16 %v1923_v38  ;;  %s1076_s18 = scalar_select %p1075_p2, %s2576_s9, 0  ;;  %v2281_v24 = vld [vmem:[%s2854_s1 + $0x160] sm:$0xff]   ;;  %v2283_v26 = vld [vmem:[%s2854_s1 + $0x168] sm:$0xff]   ;;  %v2280_v27 = vld [vmem:[%s2854_s1 + $0x130] sm:$0xff]  }
  0x23   : > { %2029 = vmatpush3.bf16.msra.mxu0 %v2248_v21  ;;  %s712_s29 = scvt.s32.f32 %s1747_s16  ;;  %p2630_p6 = pnand %p1080_p5, %p1079_p4  ;;  %v2291_v38 = vld [vmem:[%s2854_s1 + $0x1c8] sm:$0xff]  }
  0x24   : > { %2030 = vmatprep.subr.bf16.mxu0 %v2350_v1  ;;  %v720_v44 = vmul.f32 %v1924_v40, %v2481_v10  ;;  %v721_v45 = vmul.f32 %v1925_v41, %v2481_v10  ;;  %v605_v48 = vshll.u32 %v2530_v30, 16  ;;  %v603_v49 = vshrl.u32 %v2530_v30, 16  ;;  %s2880_s18 = smov (!%p1822_p3, %s1076_s18), 3  ;;  %v2293_v40 = vld [vmem:[%s2854_s1 + $0x1d0] sm:$0xff]   ;;  %v2290_v41 = vld [vmem:[%s2854_s1 + $0x198] sm:$0xff]   ;;  %s1673_s20 = sshll.u32 %s2511_s14, 3 }
  0x25   : > { %2049 = vmatpush3.bf16.msra.mxu1 %v2253_v28  ;;  %v726_v58 = vstv %s712_s29  ;;  %s1915_s21 = sshll.u32 %s2880_s18, 3  ;;  %s314_s8 = scalar_lea.vmem %s2859_s6, %s1673_s20 }
  0x26   : > { %2050 = vmatprep.subr.bf16.mxu1 %v2350_v1  ;;  %v722_v50 = vadd.f32 %v2486_v11, %v720_v44  ;;  %v723_v51 = vadd.f32 %v2486_v11, %v721_v45  ;;  %v607_v54 = vrot.slane %v605_v48, 1  ;;  %s1087_s17 = scalar_lea.vmem %s2459_s28, %s1915_s21  ;;  %v2297_v44 = vld [vmem:[%s2854_s1 + $0x1e0] sm:$0xff]   ;;  %v2294_v45 = vld [vmem:[%s2854_s1 + $0x1a8] sm:$0xff]   ;;  %v2301_v48 = vld [vmem:[%s2854_s1 + $0x1f0] sm:$0xff]   ;;  %s306_s28 = scalar_lea.vmem %s2858_s5, %s1673_s20 }
  0x27   : > { %2031 = vmatpush3.bf16.msra.mxu0 %v2250_v29  ;;  %s1827_s29 = scalar_select %p2630_p6, 0, 1  ;;  %v1927_v2 = vld [vmem:[%s1087_s17] sm:$0xff]   ;;  %v2285_v29 = vld [vmem:[%s2854_s1 + $0x170] sm:$0xff]  }
  0x28   : > { %2056 = vmatprep.subr.bf16.mxu0 %v2350_v1  ;;  %v724_v55 = vmax.f32 %v722_v50, 0.0  ;;  %v725_v56 = vmax.f32 %v723_v51, 0.0  ;;  %v608_v62 = vor.u32 %v607_v54, %v603_v49  ;;  %v1928_v4 = vunpack.c.l.bf16 %v1927_v2  ;;  %v2298_v49 = vld [vmem:[%s2854_s1 + $0x1b8] sm:$0xff]   ;;  %v2300_v51 = vld [vmem:[%s2854_s1 + $0x200] sm:$0xff]   ;;  %s1671_s17 = sshll.u32 %s2508_s12, 2 }
  0x29   : > { %2051 = vmatpush3.bf16.msra.mxu1 %v2255_v31  ;;  %v1929_v5 = vunpack.c.h.bf16 %v1927_v2  ;;  %s1084_s7 = scvt.s32.f32 %s1827_s29  ;;  %v2303_v50 = vld [vmem:[%s2854_s1 + $0x1f8] sm:$0xff]   ;;  %v361_v2 = vld [vmem:[#allocation2 + $0x9] sm:$0x7f]  ;;  %s298_s19 = scalar_lea.vmem %s2857_s4, %s1671_s17 }
  0x2a   : > { %2033 = vmatmul.mubr.bf16.vlgmr.msra.gmra.mrb[0].mxu0 %v2530_v30  ;;  %2076 = vmatprep.subr.bf16.mxu1 %v2350_v1  ;;  %v727_v60 = vmul.f32 %v726_v58, %v724_v55  ;;  %v728_v61 = vmul.f32 %v726_v58, %v725_v56  ;;  %v1092_v8 = vmul.f32 %v1928_v4, %v2481_v10  ;;  %v2305_v54 = vld [vmem:[%s2854_s1 + $0x218] sm:$0xff]   ;;  %v2306_v55 = vld [vmem:[%s2854_s1 + $0x220] sm:$0xff]   ;;  %v2307_v56 = vld [vmem:[%s2854_s1 + $0x228] sm:$0xff]  }
  0x2b   : > { %2057 = vmatpush3.bf16.msra.mxu0 %v2252_v32  ;;  %2072 = vmatprep.mubr.msk.bf16.mxu0 %vm2351_vm0, %v2350_v1  ;;  %v1093_v9 = vmul.f32 %v1929_v5, %v2481_v10  ;;  %v2275_v10 = vld [vmem:[%s2854_s1 + $0x148] sm:$0xff]   ;;  %v1098_v15 = vstv %s1084_s7  ;;  %v2308_v58 = vld [vmem:[%s2854_s1 + $0x230] sm:$0xff]  }
  0x2c   : > { %2058 = vmatprep.subr.bf16.mxu0 %v2350_v1  ;;  %2053 = vmatmul.mubr.bf16.vlgmr.msra.gmra.mrb[0].mxu1 %v2530_v30  ;;  %v2645_v3 = vpack.c.bf16 %v728_v61, %v727_v60  ;;  %v1094_v13 = vadd.f32 %v2486_v11, %v1092_v8  ;;  %v2282_v30 = vld [vmem:[%s2854_s1 + $0x138] sm:$0xff]  }
  0x2d   : > { %2077 = vmatpush3.bf16.msra.mxu1 %v2257_v33  ;;  %2092 = vmatprep.mubr.msk.bf16.mxu1 %vm2351_vm0, %v2350_v1  ;;  %v1095_v14 = vadd.f32 %v2486_v11, %v1093_v9  ;;  %v2277_v11 = vld [vmem:[%s2854_s1 + $0x150] sm:$0xff]   ;;  %v2287_v33 = vld [vmem:[%s2854_s1 + $0x178] sm:$0xff]  }
  0x2e   : > { %2078 = vmatprep.subr.bf16.mxu1 %v2350_v1  ;;  %v1096_v16 = vmax.f32 %v1094_v13, 0.0  ;;  %v976_v28 = vshll.u32 %v2645_v3, 16  ;;  %v974_v31 = vshrl.u32 %v2645_v3, 16  ;;  %v2309_v61 = vld [vmem:[%s2854_s1 + $0x238] sm:$0xff]  }
  0x2f   : > { %2059 = vmatpush3.bf16.msra.mxu0 %v2254_v34  ;;  %v1097_v17 = vmax.f32 %v1095_v14, 0.0  ;;  %v2284_v34 = vld [vmem:[%s2854_s1 + $0x180] sm:$0xff]  }
  0x30   : > { %2060 = vmatprep.subr.bf16.mxu0 %v2350_v1  ;;  %v1099_v18 = vmul.f32 %v1098_v15, %v1096_v16  ;;  %v978_v32 = vrot.slane %v976_v28, 1 }
  0x31   : > { %2079 = vmatpush3.bf16.msra.mxu1 %v2259_v35  ;;  %v1100_v19 = vmul.f32 %v1098_v15, %v1097_v17 }
  0x32   : > { %2080 = vmatprep.subr.bf16.mxu1 %v2350_v1  ;;  %v979_v35 = vor.u32 %v978_v32, %v974_v31 }
  0x33   : > { %2061 = vmatpush3.bf16.msra.mxu0 %v2256_v36  ;;  %v2679_v21 = vpack.c.bf16 %v1100_v19, %v1099_v18  ;;  %v2289_v36 = vld [vmem:[%s2854_s1 + $0x1c0] sm:$0xff]  }
  0x34   : > { %2062 = vmatprep.subr.bf16.mxu0 %v2350_v1 }
  0x35   : > { %2081 = vmatpush3.bf16.msra.mxu1 %v2261_v37  ;;  %v2286_v37 = vld [vmem:[%s2854_s1 + $0x188] sm:$0xff]  }
  0x36   : > { %2082 = vmatprep.subr.bf16.mxu1 %v2350_v1 }
  0x37   : > { %2063 = vmatpush3.bf16.msra.mxu0 %v2258_v39  ;;  %v2288_v39 = vld [vmem:[%s2854_s1 + $0x190] sm:$0xff]  }
  0x38   : > { %2064 = vmatprep.subr.bf16.mxu0 %v2350_v1 }
  0x39   : > { %2083 = vmatpush3.bf16.msra.mxu1 %v2263_v42  ;;  %v2295_v42 = vld [vmem:[%s2854_s1 + $0x1d8] sm:$0xff]  }
  0x3a   : > { %2084 = vmatprep.subr.bf16.mxu1 %v2350_v1 }
  0x3b   : > { %2065 = vmatpush3.bf16.msra.mxu0 %v2260_v43  ;;  %v2292_v43 = vld [vmem:[%s2854_s1 + $0x1a0] sm:$0xff]  }
  0x3c   : > { %2066 = vmatprep.subr.bf16.mxu0 %v2350_v1 }
  0x3d   : > { %2085 = vmatpush3.bf16.msra.mxu1 %v2265_v46  ;;  %v2299_v46 = vld [vmem:[%s2854_s1 + $0x1e8] sm:$0xff]  }
  0x3e   : > { %2086 = vmatprep.subr.bf16.mxu1 %v2350_v1 }
  0x3f   : > { %2067 = vmatpush3.bf16.msra.mxu0 %v2262_v47  ;;  %v2296_v47 = vld [vmem:[%s2854_s1 + $0x1b0] sm:$0xff]  }
  0x40   : > { %2068 = vmatprep.subr.bf16.mxu0 %v2350_v1 }
  0x41   : > { %2087 = vmatpush3.bf16.msra.mxu1 %v2267_v52  ;;  %v2302_v52 = vld [vmem:[%s2854_s1 + $0x208] sm:$0xff]  }
  0x42   : > { %2088 = vmatprep.subr.bf16.mxu1 %v2350_v1 }
  0x43   : > { %2069 = vmatpush3.bf16.msra.mxu0 %v2264_v53  ;;  %v2304_v53 = vld [vmem:[%s2854_s1 + $0x210] sm:$0xff]  }
  0x44   : > { %2070 = vmatprep.subr.bf16.mxu0 %v2350_v1 }
  0x45   : > { %2089 = vmatpush3.bf16.msra.mxu1 %v2269_v57  ;;  %v1348_v57 = vshll.u32 %v2679_v21, 16 }
  0x46   : > { %2090 = vmatprep.subr.bf16.mxu1 %v2350_v1 }
  0x47   : > { %2071 = vmatpush3.bf16.msra.mxu0 %v2266_v59  ;;  %v1346_v59 = vshrl.u32 %v2679_v21, 16  ;;  %v1350_v60 = vrot.slane %v1348_v57, 1 }
  0x48   : > { %2096 = vmatprep.subr.bf16.mxu0 %v2350_v1 }
  0x49   : > { %2091 = vmatpush3.bf16.msra.mxu1 %v2271_v63  ;;  %v360_v63 = vld [vmem:[#allocation2 + $0x1] sm:$0xff] }
  0x4a   : > { %2073 = vmatmul.mubr.bf16.vlgmr.msra.gmra.mrb[4].mxu0 %v608_v62  ;;  %2116 = vmatprep.subr.bf16.mxu1 %v2350_v1  ;;  %v1351_v62 = vor.u32 %v1350_v60, %v1346_v59 }
  0x4b   : > { %2097 = vmatpush3.bf16.msra.mxu0 %v2268_v0  ;;  %2112 = vmatprep.mubr.msk.bf16.mxu0 %vm2351_vm0, %v2350_v1 }
  0x4c   : > { %2098 = vmatprep.subr.bf16.mxu0 %v2350_v1  ;;  %2093 = vmatmul.mubr.bf16.vlgmr.msra.gmra.mrb[4].mxu1 %v2645_v3 }
  0x4d   : > { %2117 = vmatpush3.bf16.msra.mxu1 %v2273_v6  ;;  %2132 = vmatprep.mubr.msk.bf16.mxu1 %vm2351_vm0, %v2350_v1 }
  0x4e   : > { %2118 = vmatprep.subr.bf16.mxu1 %v2350_v1 }
  0x4f   : > { %2099 = vmatpush3.bf16.msra.mxu0 %v2270_v7 }
  0x50   : > { %2100 = vmatprep.subr.bf16.mxu0 %v2350_v1 }
  0x51   : > { %2119 = vmatpush3.bf16.msra.mxu1 %v2275_v10 }
  0x52   : > { %2120 = vmatprep.subr.bf16.mxu1 %v2350_v1 }
  0x53   : > { %2101 = vmatpush3.bf16.msra.mxu0 %v2272_v12 }
  0x54   : > { %2102 = vmatprep.subr.bf16.mxu0 %v2350_v1 }
  0x55   : > { %2121 = vmatpush3.bf16.msra.mxu1 %v2277_v11 }
  0x56   : > { %2122 = vmatprep.subr.bf16.mxu1 %v2350_v1 }
  0x57   : > { %2103 = vmatpush3.bf16.msra.mxu0 %v2274_v20 }
  0x58   : > { %2104 = vmatprep.subr.bf16.mxu0 %v2350_v1 }
  0x59   : > { %2123 = vmatpush3.bf16.msra.mxu1 %v2279_v22 }
  0x5a   : > { %2124 = vmatprep.subr.bf16.mxu1 %v2350_v1 }
  0x5b   : > { %2105 = vmatpush3.bf16.msra.mxu0 %v2276_v23 }
  0x5c   : > { %2106 = vmatprep.subr.bf16.mxu0 %v2350_v1 }
  0x5d   : > { %2125 = vmatpush3.bf16.msra.mxu1 %v2281_v24 }
  0x5e   : > { %2126 = vmatprep.subr.bf16.mxu1 %v2350_v1 }
  0x5f   : > { %2107 = vmatpush3.bf16.msra.mxu0 %v2278_v25 }
  0x60   : > { %2108 = vmatprep.subr.bf16.mxu0 %v2350_v1 }
  0x61   : > { %2127 = vmatpush3.bf16.msra.mxu1 %v2283_v26 }
  0x62   : > { %2128 = vmatprep.subr.bf16.mxu1 %v2350_v1 }
  0x63   : > { %2109 = vmatpush3.bf16.msra.mxu0 %v2280_v27 }
  0x64   : > { %2110 = vmatprep.subr.bf16.mxu0 %v2350_v1 }
  0x65   : > { %2129 = vmatpush3.bf16.msra.mxu1 %v2285_v29 }
  0x66   : > { %2130 = vmatprep.subr.bf16.mxu1 %v2350_v1 }
  0x67   : > { %2111 = vmatpush3.bf16.msra.mxu0 %v2282_v30 }
  0x68   : > { %2136 = vmatprep.subr.bf16.mxu0 %v2350_v1 }
  0x69   : > { %2131 = vmatpush3.bf16.msra.mxu1 %v2287_v33 }
  0x6a   : > { %2113 = vmatmul.mubr.bf16.vlgmr.msra.gmra.mrb[8].mxu0 %v2645_v3  ;;  %2156 = vmatprep.subr.bf16.mxu1 %v2350_v1 }
  0x6b   : > { %2137 = vmatpush3.bf16.msra.mxu0 %v2284_v34  ;;  %2152 = vmatprep.mubr.msk.bf16.mxu0 %vm2351_vm0, %v2350_v1 }
  0x6c   : > { %2138 = vmatprep.subr.bf16.mxu0 %v2350_v1  ;;  %2133 = vmatmul.mubr.bf16.vlgmr.msra.gmra.mrb[8].mxu1 %v979_v35 }
  0x6d   : > { %2157 = vmatpush3.bf16.msra.mxu1 %v2289_v36  ;;  %2172 = vmatprep.mubr.msk.bf16.mxu1 %vm2351_vm0, %v2350_v1 }
  0x6e   : > { %2158 = vmatprep.subr.bf16.mxu1 %v2350_v1 }
  0x6f   : > { %2139 = vmatpush3.bf16.msra.mxu0 %v2286_v37 }
  0x70   : > { %2140 = vmatprep.subr.bf16.mxu0 %v2350_v1 }
  0x71   : > { %2159 = vmatpush3.bf16.msra.mxu1 %v2291_v38 }
  0x72   : > { %2160 = vmatprep.subr.bf16.mxu1 %v2350_v1 }
  0x73   : > { %2141 = vmatpush3.bf16.msra.mxu0 %v2288_v39 }
  0x74   : > { %2142 = vmatprep.subr.bf16.mxu0 %v2350_v1 }
  0x75   : > { %2161 = vmatpush3.bf16.msra.mxu1 %v2293_v40 }
  0x76   : > { %2162 = vmatprep.subr.bf16.mxu1 %v2350_v1 }
  0x77   : > { %2143 = vmatpush3.bf16.msra.mxu0 %v2290_v41 }
  0x78   : > { %2144 = vmatprep.subr.bf16.mxu0 %v2350_v1 }
  0x79   : > { %2163 = vmatpush3.bf16.msra.mxu1 %v2295_v42 }
  0x7a   : > { %2164 = vmatprep.subr.bf16.mxu1 %v2350_v1 }
  0x7b   : > { %2145 = vmatpush3.bf16.msra.mxu0 %v2292_v43 }
  0x7c   : > { %2146 = vmatprep.subr.bf16.mxu0 %v2350_v1 }
  0x7d   : > { %2165 = vmatpush3.bf16.msra.mxu1 %v2297_v44 }
  0x7e   : > { %2166 = vmatprep.subr.bf16.mxu1 %v2350_v1 }
  0x7f   : > { %2147 = vmatpush3.bf16.msra.mxu0 %v2294_v45 }
  0x80   : > { %2148 = vmatprep.subr.bf16.mxu0 %v2350_v1 }
  0x81   : > { %2167 = vmatpush3.bf16.msra.mxu1 %v2299_v46 }
  0x82   : > { %2168 = vmatprep.subr.bf16.mxu1 %v2350_v1 }
  0x83   : > { %2149 = vmatpush3.bf16.msra.mxu0 %v2296_v47 }
  0x84   : > { %2150 = vmatprep.subr.bf16.mxu0 %v2350_v1 }
  0x85   : > { %2169 = vmatpush3.bf16.msra.mxu1 %v2301_v48 }
  0x86   : > { %2170 = vmatprep.subr.bf16.mxu1 %v2350_v1 }
  0x87   : > { %2151 = vmatpush3.bf16.msra.mxu0 %v2298_v49 }
  0x88   : > { %2176 = vmatprep.subr.bf16.mxu0 %v2350_v1 }
  0x89   : > { %2171 = vmatpush3.bf16.msra.mxu1 %v2303_v50 }
  0x8a   : > { %2153 = vmatmul.mubr.bf16.vlgmr.msra.gmra.mrb[12].mxu0 %v2679_v21 }
  0x8b   : > { %2177 = vmatpush3.bf16.msra.mxu0 %v2300_v51  ;;  %2192 = vmatprep.mubr.msk.bf16.mxu0 %vm2351_vm0, %v2350_v1 }
  0x8c   : > { %2178 = vmatprep.subr.bf16.mxu0 %v2350_v1  ;;  %2173 = vmatmul.mubr.bf16.vlgmr.msra.gmra.mrb[12].mxu1 %v2679_v21 }
  0x8f   : > { %2179 = vmatpush3.bf16.msra.mxu0 %v2302_v52 }
  0x90   : > { %2180 = vmatprep.subr.bf16.mxu0 %v2350_v1 }
  0x93   : > { %2181 = vmatpush3.bf16.msra.mxu0 %v2304_v53 }
  0x94   : > { %2182 = vmatprep.subr.bf16.mxu0 %v2350_v1 }
  0x97   : > { %2183 = vmatpush3.bf16.msra.mxu0 %v2305_v54 }
  0x98   : > { %2184 = vmatprep.subr.bf16.mxu0 %v2350_v1 }
  0x9b   : > { %2185 = vmatpush3.bf16.msra.mxu0 %v2306_v55 }
  0x9c   : > { %2186 = vmatprep.subr.bf16.mxu0 %v2350_v1 }
  0x9f   : > { %2187 = vmatpush3.bf16.msra.mxu0 %v2307_v56 }
  0xa0   : > { %2188 = vmatprep.subr.bf16.mxu0 %v2350_v1 }
  0xa3   : > { %2189 = vmatpush3.bf16.msra.mxu0 %v2308_v58 }
  0xa4   : > { %2190 = vmatprep.subr.bf16.mxu0 %v2350_v1 }
  0xa7   : > { %2191 = vmatpush3.bf16.msra.mxu0 %v2309_v61 }
  0xaa   : > { %2193 = vmatmul.mubr.bf16.vlgmr.msra.gmra.mrb[16].mxu0 %v1351_v62 }
  0xfd   : > { %v460_v0 = vpop.f32.mrb[0].mxu0 }
  0xfe   : > { %v467_v3 = vadd.f32 %v460_v0, %v360_v63  ;;  %v2034_v4 = vpop.f32.mrb[1].mxu0 }
  0xff   : > { %v463_v5 = vpop.f32.mrb[2].mxu0  ;;  %v572_v8 = vpop.f32.mrb[0].mxu1 }
 0x100   : > { %469 = vst [vmem:[#allocation2 + $0x1] sm:$0xff] %v467_v3  ;;  %v468_v6 = vadd.f32 %v463_v5, %v361_v2  ;;  %v2035_v7 = vpop.f32.mrb[3].mxu0  ;;  %v2054_v9 = vpop.f32.mrb[1].mxu1 }
 0x101   : > { %v575_v12 = vpop.f32.mrb[2].mxu1 }
 0x102   : > { %470 = vst [vmem:[#allocation2 + $0x9] sm:$0x7f] %v468_v6  ;;  %v2055_v13 = vpop.f32.mrb[3].mxu1 }
 0x107   : > { %v471_v1 = vld [vmem:[#allocation2] sm:$0xff] }
 0x108   : > { %v579_v15 = vadd.f32 %v572_v8, %v471_v1 }
 0x109   : > { %v472_v14 = vld [vmem:[#allocation2 + $0x8] sm:$0xff] }
 0x10a   : > { %v580_v10 = vadd.f32 %v575_v12, %v472_v14 }
 0x10c   : > { %582 = vst [vmem:[#allocation2 + $0x8] sm:$0xff] %v580_v10 }
 0x113   : > { %v584_v19 = vld [vmem:[#allocation2 + $0x8] sm:$0x7f] }
 0x11d   : > { %v692_v16 = vpop.f32.mrb[4].mxu0 }
 0x11e   : > { %v699_v17 = vadd.f32 %v692_v16, %v579_v15  ;;  %v2074_v18 = vpop.f32.mrb[5].mxu0 }
 0x11f   : > { %v695_v11 = vpop.f32.mrb[6].mxu0  ;;  %v831_v22 = vpop.f32.mrb[4].mxu1 }
 0x120   : > { %701 = vst [vmem:[#allocation2] sm:$0xff] %v699_v17  ;;  %v700_v20 = vadd.f32 %v695_v11, %v584_v19  ;;  %v2075_v21 = vpop.f32.mrb[7].mxu0  ;;  %v2094_v23 = vpop.f32.mrb[5].mxu1 }
 0x121   : > { %v834_v24 = vpop.f32.mrb[6].mxu1 }
 0x122   : > { %702 = vst [vmem:[#allocation2 + $0x8] sm:$0x7f] %v700_v20  ;;  %v2095_v25 = vpop.f32.mrb[7].mxu1 }
 0x129   : > { %v730_v26 = vld [vmem:[#allocation2 + $0x1] sm:$0xff]  ;;  %v731_v27 = vld [vmem:[#allocation2 + $0x9] sm:$0x7f] }
 0x12a   : > { %v838_v28 = vadd.f32 %v831_v22, %v730_v26  ;;  %v839_v29 = vadd.f32 %v834_v24, %v731_v27 }
 0x12c   : > { %840 = vst [vmem:[#allocation2 + $0x1] sm:$0xff] %v838_v28  ;;  %841 = vst [vmem:[#allocation2 + $0x9] sm:$0x7f] %v839_v29 }
 0x133   : > { %v842_v30 = vld [vmem:[#allocation2] sm:$0xff]  ;;  %v843_v34 = vld [vmem:[#allocation2 + $0x8] sm:$0xff] }
 0x13d   : > { %v943_v31 = vpop.f32.mrb[8].mxu0 }
 0x13e   : > { %v950_v32 = vadd.f32 %v943_v31, %v842_v30  ;;  %v2114_v33 = vpop.f32.mrb[9].mxu0 }
 0x13f   : > { %v946_v35 = vpop.f32.mrb[10].mxu0  ;;  %v1063_v38 = vpop.f32.mrb[8].mxu1 }
 0x140   : > { %v951_v36 = vadd.f32 %v946_v35, %v843_v34  ;;  %v2115_v37 = vpop.f32.mrb[11].mxu0  ;;  %v1070_v39 = vadd.f32 %v1063_v38, %v950_v32  ;;  %v2134_v40 = vpop.f32.mrb[9].mxu1 }
 0x141   : > { %v1066_v41 = vpop.f32.mrb[10].mxu1 }
 0x142   : > { %953 = vst [vmem:[#allocation2 + $0x8] sm:$0xff] %v951_v36  ;;  %1072 = vst [vmem:[#allocation2] sm:$0xff] %v1070_v39  ;;  %v2135_v42 = vpop.f32.mrb[11].mxu1 }
 0x149   : > { %v955_v43 = vld [vmem:[#allocation2 + $0x8] sm:$0x7f] }
 0x14a   : > { %v1071_v44 = vadd.f32 %v1066_v41, %v955_v43 }
 0x14c   : > { %1073 = vst [vmem:[#allocation2 + $0x8] sm:$0x7f] %v1071_v44 }
 0x153   : > { %v1102_v45 = vld [vmem:[#allocation2 + $0x1] sm:$0xff]  ;;  %v1103_v49 = vld [vmem:[#allocation2 + $0x9] sm:$0x7f] }
 0x15d   : > { %v1203_v46 = vpop.f32.mrb[12].mxu0 }
 0x15e   : > { %v1210_v47 = vadd.f32 %v1203_v46, %v1102_v45  ;;  %v2154_v48 = vpop.f32.mrb[13].mxu0 }
 0x15f   : > { %v1206_v50 = vpop.f32.mrb[14].mxu0  ;;  %v1315_v53 = vpop.f32.mrb[12].mxu1 }
 0x160   : > { %1212 = vst [vmem:[#allocation2 + $0x1] sm:$0xff] %v1210_v47  ;;  %v1211_v51 = vadd.f32 %v1206_v50, %v1103_v49  ;;  %v2155_v52 = vpop.f32.mrb[15].mxu0  ;;  %v2174_v54 = vpop.f32.mrb[13].mxu1 }
 0x161   : > { %v1318_v55 = vpop.f32.mrb[14].mxu1 }
 0x162   : > { %1213 = vst [vmem:[#allocation2 + $0x9] sm:$0x7f] %v1211_v51  ;;  %v2175_v56 = vpop.f32.mrb[15].mxu1 }
 0x167   : > { %v1214_v59 = vld [vmem:[#allocation2] sm:$0xff] }
 0x168   : > { %v1322_v60 = vadd.f32 %v1315_v53, %v1214_v59 }
 0x169   : > { %v1215_v57 = vld [vmem:[#allocation2 + $0x8] sm:$0xff] }
 0x16a   : > { %v1323_v58 = vadd.f32 %v1318_v55, %v1215_v57 }
 0x16c   : > { %1325 = vst [vmem:[#allocation2 + $0x8] sm:$0xff] %v1323_v58 }
 0x173   : > { %v1327_v0 = vld [vmem:[#allocation2 + $0x8] sm:$0x7f] }
 0x17d   : > { %v1435_v61 = vpop.f32.mrb[16].mxu0 }
 0x17e   : > { %v1442_v62 = vadd.f32 %v1435_v61, %v1322_v60  ;;  %v2194_v63 = vpop.f32.mrb[17].mxu0 }
 0x17f   : > { %v1438_v2 = vpop.f32.mrb[18].mxu0 }
 0x180   : > { %1444 = vst [vmem:[#allocation2] sm:$0xff] %v1442_v62  ;;  %v1443_v3 = vadd.f32 %v1438_v2, %v1327_v0  ;;  %v2195_v4 = vpop.f32.mrb[19].mxu0  ;;  %v1466_v6 = vmul.f32 %v1442_v62, %v1442_v62 }
 0x182   : > { %1445 = vst [vmem:[#allocation2 + $0x8] sm:$0x7f] %v1443_v3 }
 0x189   : > { %v1447_v5 = vld [vmem:[#allocation2 + $0x8] sm:$0xff] }
 0x18a   : > { %v1933_v7 = vpack.c.bf16 %v1447_v5, %v1442_v62  ;;  %v1458_v8 = vadd.f32 %v1447_v5, %v1442_v62  ;;  %v1467_v9 = vmul.f32 %v1447_v5, %v1447_v5 }
 0x18c   : > { %1934 = vst [vmem:[%s298_s19] sm:$0xff] %v1933_v7   ;;  %v1459_v12 = vrot.slane %v1458_v8, 4  ;;  %v1468_v13 = vadd.f32 %v1467_v9, %v1466_v6 }
 0x18e   : > { %v1460_v14 = vadd.f32 %v1459_v12, %v1458_v8  ;;  %v1469_v10 = vrot.slane %v1468_v13, 4 }
 0x190   : > { %v1461_v1 = vrot.slane %v1460_v14, 2  ;;  %v1470_v15 = vadd.f32 %v1469_v10, %v1468_v13 }
 0x192   : > { %v1462_v16 = vadd.f32 %v1461_v1, %v1460_v14  ;;  %v1471_v17 = vrot.slane %v1470_v15, 2 }
 0x194   : > { %v1463_v18 = vrot.slane %v1462_v16, 1  ;;  %v1472_v19 = vadd.f32 %v1471_v17, %v1470_v15 }
 0x196   : > { %v1464_v11 = vadd.f32 %v1463_v18, %v1462_v16  ;;  %v1473_v20 = vrot.slane %v1472_v19, 1 }
 0x198   : > { %1465 = vst [vmem:[%s306_s28] sm:$0xff] %v1464_v11  ;;  %v1474_v21 = vadd.f32 %v1473_v20, %v1472_v19 }
 0x19a   : > { %1475 = vst [vmem:[%s314_s8] sm:$0xff] %v1474_v21 }
 0x19b PF: > { %s17_s25 = sadd.s32 1, %s2348_s25   ;;  %s2863_s21 = smov %s2340_s23 }
 0x19c   : > { %p14_p7 = scmp.ge.s32.totalorder %s17_s25, 10   ;;  %s2864_s22 = smov %s2344_s24 }
 0x19d   : > { %s2865_s23 = smov %s2868_s26  ;;  %s2866_s24 = smov %s2872_s27 }
 0x19e   :  { %16 = sbr.rel (!%p14_p7) target bundleno = 3 (0x3), region = 101 }

// kernel: decoder_block3d_forward.7
= control target key start
LH: loop header
LB: loop body
LE: loop exit
PB: predicated region body
PF: predicated region fallthrough
CT: control target
= control target key end

     0   :  { %s303_s0 = inlined_call_operand.vmem [shape: bf16[128,128], index: 0, kind: input, shape index: {}]   ;;  %s304_s1 = inlined_call_operand.vmem [shape: f32[1,128], index: 1, kind: input, shape index: {}]   ;;  %s305_s2 = inlined_call_operand.vmem [shape: f32[1,128], index: 2, kind: input, shape index: {}]   ;;  %s306_s3 = inlined_call_operand.vmem [shape: f32[128,128], index: 3, kind: output, shape index: {}]  }
   0x1   :  { %v131_v0 = vld [vmem:[%s303_s0] sm:$0xff]   ;;  %v162_v4 = vld [vmem:[%s303_s0 + $0x8] sm:$0xff]   ;;  %v163_v5 = vld [vmem:[%s303_s0 + $0x10] sm:$0xff]  }
   0x2   :  { %v195_v1 = vld [vmem:[%s304_s1] ss:$0 sm:$0xff]  ;;  %v132_v2 = vunpack.c.l.bf16 %v131_v0  ;;  %v133_v3 = vunpack.c.h.bf16 %v131_v0  ;;  %v164_v6 = vld [vmem:[%s303_s0 + $0x18] sm:$0xff]   ;;  %v136_v8 = vunpack.c.l.bf16 %v162_v4  ;;  %v137_v9 = vunpack.c.h.bf16 %v162_v4  ;;  %v166_v33 = vld [vmem:[%s303_s0 + $0x28] sm:$0xff]  }
   0x3   :  { %v209_v7 = vld [vmem:[%s305_s2] ss:$0 sm:$0xff]  ;;  %v140_v10 = vunpack.c.l.bf16 %v163_v5  ;;  %v141_v11 = vunpack.c.h.bf16 %v163_v5  ;;  %v144_v14 = vunpack.c.l.bf16 %v164_v6  ;;  %v145_v15 = vunpack.c.h.bf16 %v164_v6  ;;  %v167_v34 = vld [vmem:[%s303_s0 + $0x30] sm:$0xff]   ;;  %v168_v39 = vld [vmem:[%s303_s0 + $0x38] sm:$0xff]  }
   0x4   :  { %v53_v12 = vmul.f32 %v132_v2, %v195_v1  ;;  %v54_v13 = vmul.f32 %v133_v3, %v195_v1  ;;  %v55_v16 = vmul.f32 %v136_v8, %v195_v1  ;;  %v56_v17 = vmul.f32 %v137_v9, %v195_v1  ;;  %v165_v28 = vld [vmem:[%s303_s0 + $0x20] sm:$0xff]  }
   0x5   :  { %v57_v18 = vmul.f32 %v140_v10, %v195_v1  ;;  %v58_v19 = vmul.f32 %v141_v11, %v195_v1  ;;  %v59_v22 = vmul.f32 %v144_v14, %v195_v1  ;;  %v60_v23 = vmul.f32 %v145_v15, %v195_v1 }
   0x6   :  { %v76_v20 = vadd.f32 %v209_v7, %v53_v12  ;;  %v77_v21 = vadd.f32 %v209_v7, %v54_v13  ;;  %v78_v24 = vadd.f32 %v209_v7, %v55_v16  ;;  %v79_v25 = vadd.f32 %v209_v7, %v56_v17 }
   0x7   :  { %v80_v26 = vadd.f32 %v209_v7, %v57_v18  ;;  %v81_v27 = vadd.f32 %v209_v7, %v58_v19  ;;  %v82_v31 = vadd.f32 %v209_v7, %v59_v22  ;;  %v83_v32 = vadd.f32 %v209_v7, %v60_v23 }
   0x8   :  { %v92_v29 = vmax.f32 %v76_v20, 0.0  ;;  %v93_v30 = vmax.f32 %v77_v21, 0.0  ;;  %v94_v35 = vmax.f32 %v78_v24, 0.0  ;;  %v95_v36 = vmax.f32 %v79_v25, 0.0 }
   0x9   :  { %v96_v37 = vmax.f32 %v80_v26, 0.0  ;;  %v97_v38 = vmax.f32 %v81_v27, 0.0  ;;  %v98_v40 = vmax.f32 %v82_v31, 0.0  ;;  %v99_v41 = vmax.f32 %v83_v32, 0.0 }
   0xa   :  { %108 = vst [vmem:[%s306_s3] sm:$0xff] %v92_v29  ;;  %109 = vst [vmem:[%s306_s3 + $0x8] sm:$0xff] %v93_v30  ;;  %v148_v42 = vunpack.c.l.bf16 %v165_v28  ;;  %v149_v43 = vunpack.c.h.bf16 %v165_v28  ;;  %v152_v44 = vunpack.c.l.bf16 %v166_v33  ;;  %v153_v45 = vunpack.c.h.bf16 %v166_v33 }
   0xb   :  { %110 = vst [vmem:[%s306_s3 + $0x10] sm:$0xff] %v94_v35  ;;  %111 = vst [vmem:[%s306_s3 + $0x18] sm:$0xff] %v95_v36  ;;  %v156_v46 = vunpack.c.l.bf16 %v167_v34  ;;  %v157_v47 = vunpack.c.h.bf16 %v167_v34  ;;  %v160_v50 = vunpack.c.l.bf16 %v168_v39  ;;  %v161_v51 = vunpack.c.h.bf16 %v168_v39 }
   0xc   :  { %112 = vst [vmem:[%s306_s3 + $0x20] sm:$0xff] %v96_v37  ;;  %113 = vst [vmem:[%s306_s3 + $0x28] sm:$0xff] %v97_v38  ;;  %v61_v48 = vmul.f32 %v148_v42, %v195_v1  ;;  %v62_v49 = vmul.f32 %v149_v43, %v195_v1  ;;  %v63_v52 = vmul.f32 %v152_v44, %v195_v1 }
   0xd   :  { %114 = vst [vmem:[%s306_s3 + $0x30] sm:$0xff] %v98_v40  ;;  %115 = vst [vmem:[%s306_s3 + $0x38] sm:$0xff] %v99_v41  ;;  %v64_v53 = vmul.f32 %v153_v45, %v195_v1  ;;  %v65_v54 = vmul.f32 %v156_v46, %v195_v1  ;;  %v66_v55 = vmul.f32 %v157_v47, %v195_v1 }
   0xe   :  { %v84_v56 = vadd.f32 %v209_v7, %v61_v48  ;;  %v85_v57 = vadd.f32 %v209_v7, %v62_v49  ;;  %v67_v58 = vmul.f32 %v160_v50, %v195_v1  ;;  %v68_v59 = vmul.f32 %v161_v51, %v195_v1 }
   0xf   :  { %v86_v60 = vadd.f32 %v209_v7, %v63_v52  ;;  %v87_v61 = vadd.f32 %v209_v7, %v64_v53  ;;  %v88_v62 = vadd.f32 %v209_v7, %v65_v54  ;;  %v89_v63 = vadd.f32 %v209_v7, %v66_v55 }
  0x10   :  { %v100_v0 = vmax.f32 %v84_v56, 0.0  ;;  %v101_v2 = vmax.f32 %v85_v57, 0.0  ;;  %v90_v3 = vadd.f32 %v209_v7, %v67_v58  ;;  %v91_v4 = vadd.f32 %v209_v7, %v68_v59 }
  0x11   :  { %v102_v5 = vmax.f32 %v86_v60, 0.0  ;;  %v103_v6 = vmax.f32 %v87_v61, 0.0  ;;  %v104_v8 = vmax.f32 %v88_v62, 0.0  ;;  %v105_v9 = vmax.f32 %v89_v63, 0.0 }
  0x12   :  { %116 = vst [vmem:[%s306_s3 + $0x40] sm:$0xff] %v100_v0  ;;  %117 = vst [vmem:[%s306_s3 + $0x48] sm:$0xff] %v101_v2  ;;  %v106_v1 = vmax.f32 %v90_v3, 0.0  ;;  %v107_v10 = vmax.f32 %v91_v4, 0.0 }
  0x13   :  { %118 = vst [vmem:[%s306_s3 + $0x50] sm:$0xff] %v102_v5  ;;  %119 = vst [vmem:[%s306_s3 + $0x58] sm:$0xff] %v103_v6 }
  0x14   :  { %120 = vst [vmem:[%s306_s3 + $0x60] sm:$0xff] %v104_v8  ;;  %121 = vst [vmem:[%s306_s3 + $0x68] sm:$0xff] %v105_v9 }
  0x15   :  { %122 = vst [vmem:[%s306_s3 + $0x70] sm:$0xff] %v106_v1  ;;  %123 = vst [vmem:[%s306_s3 + $0x78] sm:$0xff] %v107_v10 }

</bundles_post_ra>
